<compile_context>
chip_gen: v7x
topology: tpu7x:2x2x1
jax: 0.10.0
libtpu: 0.0.40
codegen_flags: <defaults>
</compile_context>

<pallas_src>
import functools

import jax
import jax.numpy as jnp
from jax.experimental import pallas as pl
from jax.experimental.pallas import tpu as pltpu

# ---------------- small, deterministic config (module defaults where possible) -----
VOCAB = 32               # len(vocab)
VOCAB_PAD = 128          # lane-dense logits slab width (sliced back to VOCAB in JAX)
EMB = 128                # embedding_dim (module default)
HID = 128                # encoder/decoder hidden_size (module default, num_layers=1)
LATENT = 64              # latent_dim (module default)
ENC_OUT_DIMS = (128, 128)  # encoder_out_dim_list (module default)
PAD_IDX = 0
B = 2                    # batch
T = 8                    # sequence length
WDT = jnp.bfloat16       # MXU operand dtype (accumulation stays f32)


# ---------------- the single fused kernel ----------------
def _fused_vae_kernel(
        enc_idx_ref, dec_idx_ref, emb_ref,
        enc_wih_ref, enc_whh_ref, enc_b_ref,
        w1_ref, b1_ref, w2_ref, b2_ref,
        w_mulv_ref, b_mulv_ref, eps_ref,
        w_l2hc_ref, b_l2hc_ref,
        dec_wih_ref, dec_whh_ref, dec_b_ref,
        w_d2v_ref, b_d2v_ref,
        mulv_ref, logits_ref,
        *, t_len, bsz, hid, vocab, latent, deterministic):
    n = t_len * bsz
    wdt = emb_ref.dtype                       # bf16 matmul-operand dtype

    def mm(x, w):                             # MXU matmul, f32 accumulation
        return jnp.dot(x.astype(wdt), w.astype(wdt),
                       preferred_element_type=jnp.float32)

    emb = emb_ref[...]

    def embed(idx_ref):                       # one-hot @ table on the MXU
        ids = idx_ref[...]                                          # [n, 1] int32
        iota = jax.lax.broadcasted_iota(jnp.int32, (n, vocab), 1)   # lanes = vocab
        onehot = (iota == ids).astype(wdt)                          # [n, V]
        return jnp.dot(onehot, emb, preferred_element_type=jnp.float32)

    # ---- embeddings + hoisted input projections for ALL timesteps ----
    enc_gx = mm(embed(enc_idx_ref), enc_wih_ref[...]) + enc_b_ref[...]   # [n, 4H]
    dec_gx = mm(embed(dec_idx_ref), dec_wih_ref[...]) + dec_b_ref[...]   # [n, 4H]

    def lstm_step(gx_t, h, c, whh):
        gates = gx_t + mm(h, whh)             # [B, 4H], PyTorch i,f,g,o order
        i = jax.nn.sigmoid(gates[:, 0 * hid:1 * hid])
        f = jax.nn.sigmoid(gates[:, 1 * hid:2 * hid])
        g = jnp.tanh(gates[:, 2 * hid:3 * hid])
        o = jax.nn.sigmoid(gates[:, 3 * hid:4 * hid])
        c = f * c + i * g
        h = o * jnp.tanh(c)
        return h, c

    # ---- encoder recurrence: h/c carried in vregs, fully unrolled (T small) ----
    enc_whh = enc_whh_ref[...]
    h = jnp.zeros((bsz, hid), jnp.float32)
    c = jnp.zeros((bsz, hid), jnp.float32)
    for t in range(t_len):
        h, c = lstm_step(enc_gx[t * bsz:(t + 1) * bsz, :], h, c, enc_whh)
    # only the last hidden state is consumed; the [T,B,H] sequence never hits HBM.

    # ---- encoder2out MLP (Linear + Sigmoid) x 2 + fused (mu | logvar) head ----
    hm = jax.nn.sigmoid(mm(h, w1_ref[...]) + b1_ref[...])
    hm = jax.nn.sigmoid(mm(hm, w2_ref[...]) + b2_ref[...])
    mulv = mm(hm, w_mulv_ref[...]) + b_mulv_ref[...]                # [B, 2*latent]
    mulv_ref[...] = mulv
    mu, logvar = mulv[:, :latent], mulv[:, latent:]

    # ---- reparameterization ----
    z = mu if deterministic else mu + jnp.exp(0.5 * logvar) * eps_ref[...]

    # ---- latent -> decoder initial state, fused (h0 | c0) matmul ----
    hc = mm(z, w_l2hc_ref[...]) + b_l2hc_ref[...]                   # [B, 2H]
    h, c = hc[:, :hid], hc[:, hid:]

    # ---- decoder recurrence (teacher forcing) ----
    dec_whh = dec_whh_ref[...]
    outs = []
    for t in range(t_len):
        h, c = lstm_step(dec_gx[t * bsz:(t + 1) * bsz, :], h, c, dec_whh)
        outs.append(h)
    dec_h = jnp.concatenate(outs, axis=0)                           # [n, H] time-major

    # ---- decoder2vocab as one batched matmul, lane-dense 128-wide output ----
    logits_ref[...] = mm(dec_h, w_d2v_ref[...]) + b_d2v_ref[...]

    # TODO(synk): the free-running decode branch (out_seq=None, autoregressive
    # Categorical sampling / argmax feedback loop) is data-dependent control flow
    # and is not implemented here.


# ---------------- wrapper: pad batch to 8 sublanes, one pallas_call ----------------
@functools.partial(jax.jit, static_argnames=("deterministic",))
def smiles_vae_forward(params, in_seq, out_seq, eps, deterministic=False):
    bsz, t_len = in_seq.shape
    b_pad = max(8, -(-bsz // 8) * 8)          # pad batch to a multiple of 8 sublanes

    def prep_idx(seq):                        # [B, T] -> time-major [T*B_pad, 1] int32
        seq_p = jnp.pad(seq.astype(jnp.int32), ((0, b_pad - bsz), (0, 0)),
                        constant_values=PAD_IDX)
        return jnp.transpose(seq_p).reshape(t_len * b_pad, 1)

    enc_idx = prep_idx(in_seq)
    dec_idx = prep_idx(out_seq)
    eps_p = jnp.pad(eps.astype(jnp.float32), ((0, b_pad - bsz), (0, 0)))

    kernel = functools.partial(
        _fused_vae_kernel, t_len=t_len, bsz=b_pad, hid=HID,
        vocab=VOCAB, latent=LATENT, deterministic=deterministic)

    vspec = pl.BlockSpec(memory_space=pltpu.MemorySpace.VMEM)
    mulv, logits_pad = pl.pallas_call(
        kernel,
        out_shape=(jax.ShapeDtypeStruct((b_pad, 2 * LATENT), jnp.float32),
                   jax.ShapeDtypeStruct((t_len * b_pad, VOCAB_PAD), jnp.float32)),
        in_specs=[vspec] * 20,
        out_specs=(vspec, vspec),
    )(enc_idx, dec_idx, params["emb"],
      params["enc_wih"], params["enc_whh"], params["enc_b"],
      params["w1"], params["b1"], params["w2"], params["b2"],
      params["w_mulv"], params["b_mulv"], eps_p,
      params["w_l2hc"], params["b_l2hc"],
      params["dec_wih"], params["dec_whh"], params["dec_b"],
      params["w_d2v"], params["b_d2v"])

    mu = mulv[:bsz, :LATENT]
    logvar = mulv[:bsz, LATENT:]
    logits = logits_pad.reshape(t_len, b_pad, VOCAB_PAD)[:, :bsz, :VOCAB]
    logits = jnp.transpose(logits, (1, 0, 2))            # [B, T, V] (batch_first)
    return logits[:, :-1], mu, logvar                    # out_seq_vocab_logit[:, :-1]


# ---------------- parameter init (deterministic, synthetic) ----------------
def init_params(key):
    ks = iter(jax.random.split(key, 32))

    def u(shape, fan_in, dtype):
        s = float(fan_in) ** -0.5
        return jax.random.uniform(next(ks), shape, jnp.float32, -s, s).astype(dtype)

    p = {}
    emb = jax.random.normal(next(ks), (VOCAB, EMB), jnp.float32) * 0.1
    p["emb"] = emb.at[PAD_IDX].set(0.0).astype(WDT)          # padding_idx row = 0

    # encoder LSTM: weights pre-transposed to [in, 4H], PyTorch i,f,g,o order,
    # bias folded as b_ih + b_hh.
    p["enc_wih"] = u((EMB, 4 * HID), HID, WDT)
    p["enc_whh"] = u((HID, 4 * HID), HID, WDT)
    p["enc_b"] = (u((1, 4 * HID), HID, jnp.float32)
                  + u((1, 4 * HID), HID, jnp.float32))

    # encoder2out: (Linear + Sigmoid) x 2
    p["w1"] = u((HID, ENC_OUT_DIMS[0]), HID, WDT)
    p["b1"] = u((1, ENC_OUT_DIMS[0]), HID, jnp.float32)
    p["w2"] = u((ENC_OUT_DIMS[0], ENC_OUT_DIMS[1]), ENC_OUT_DIMS[0], WDT)
    p["b2"] = u((1, ENC_OUT_DIMS[1]), ENC_OUT_DIMS[0], jnp.float32)

    # encoder_out2mu / encoder_out2logvar fused column-wise ([:, :L]=mu, [:, L:]=logvar)
    p["w_mulv"] = u((ENC_OUT_DIMS[1], 2 * LATENT), ENC_OUT_DIMS[1], WDT)
    p["b_mulv"] = u((1, 2 * LATENT), ENC_OUT_DIMS[1], jnp.float32)

    # latent2dech / latent2decc fused column-wise ([:, :H]=h0, [:, H:]=c0), num_layers=1
    p["w_l2hc"] = u((LATENT, 2 * HID), LATENT, WDT)
    p["b_l2hc"] = u((1, 2 * HID), LATENT, jnp.float32)
    # TODO(synk): latent2emb exists in the module but is unused in forward(); omitted.

    # decoder LSTM
    p["dec_wih"] = u((EMB, 4 * HID), HID, WDT)
    p["dec_whh"] = u((HID, 4 * HID), HID, WDT)
    p["dec_b"] = (u((1, 4 * HID), HID, jnp.float32)
                  + u((1, 4 * HID), HID, jnp.float32))

    # decoder2vocab, zero-padded to a lane-dense 128-wide output slab
    w_d2v = u((HID, VOCAB), HID, jnp.float32)
    b_d2v = u((1, VOCAB), HID, jnp.float32)
    p["w_d2v"] = jnp.zeros((HID, VOCAB_PAD), jnp.float32).at[:, :VOCAB].set(w_d2v).astype(WDT)
    p["b_d2v"] = jnp.zeros((1, VOCAB_PAD), jnp.float32).at[:, :VOCAB].set(b_d2v)
    return p


if __name__ == "__main__":
    key = jax.random.PRNGKey(0)
    k_params, k_in, k_out, k_eps = jax.random.split(key, 4)

    params = init_params(k_params)
    in_seq = jax.random.randint(k_in, (B, T), 0, VOCAB, dtype=jnp.int32)
    out_seq = jax.random.randint(k_out, (B, T), 0, VOCAB, dtype=jnp.int32)
    eps = jax.random.normal(k_eps, (B, LATENT), jnp.float32)

    logits, mu, logvar = smiles_vae_forward(params, in_seq, out_seq, eps,
                                            deterministic=False)
    jax.block_until_ready((logits, mu, logvar))

    assert logits.shape == (B, T - 1, VOCAB)
    assert mu.shape == (B, LATENT) and logvar.shape == (B, LATENT)
    print("KERNEL_OK")
</pallas_src>

<mosaic_0001>
module attributes {stable_mosaic.version = 11 : i64} {
  func.func @_fused_vae_kernel(%arg0: memref<64x1xi32, #tpu.memory_space<vmem>>, %arg1: memref<64x1xi32, #tpu.memory_space<vmem>>, %arg2: memref<32x128xbf16, #tpu.memory_space<vmem>>, %arg3: memref<128x512xbf16, #tpu.memory_space<vmem>>, %arg4: memref<128x512xbf16, #tpu.memory_space<vmem>>, %arg5: memref<1x512xf32, #tpu.memory_space<vmem>>, %arg6: memref<128x128xbf16, #tpu.memory_space<vmem>>, %arg7: memref<1x128xf32, #tpu.memory_space<vmem>>, %arg8: memref<128x128xbf16, #tpu.memory_space<vmem>>, %arg9: memref<1x128xf32, #tpu.memory_space<vmem>>, %arg10: memref<128x128xbf16, #tpu.memory_space<vmem>>, %arg11: memref<1x128xf32, #tpu.memory_space<vmem>>, %arg12: memref<8x64xf32, #tpu.memory_space<vmem>>, %arg13: memref<64x256xbf16, #tpu.memory_space<vmem>>, %arg14: memref<1x256xf32, #tpu.memory_space<vmem>>, %arg15: memref<128x512xbf16, #tpu.memory_space<vmem>>, %arg16: memref<128x512xbf16, #tpu.memory_space<vmem>>, %arg17: memref<1x512xf32, #tpu.memory_space<vmem>>, %arg18: memref<128x128xbf16, #tpu.memory_space<vmem>>, %arg19: memref<1x128xf32, #tpu.memory_space<vmem>>, %arg20: memref<8x128xf32, #tpu.memory_space<vmem>>, %arg21: memref<64x128xf32, #tpu.memory_space<vmem>>) attributes {dimension_semantics = [], scalar_prefetch = 0 : i64, scratch_operands = 0 : i64, tpu.core_type = #tpu.core_type<tc>} {
    %c0 = arith.constant 0 : index
    %c0_0 = arith.constant 0 : index
    %0 = vector.load %arg2[%c0, %c0_0] : memref<32x128xbf16, #tpu.memory_space<vmem>>, vector<32x128xbf16>
    %c0_1 = arith.constant 0 : index
    %c0_2 = arith.constant 0 : index
    %1 = vector.load %arg0[%c0_1, %c0_2] : memref<64x1xi32, #tpu.memory_space<vmem>>, vector<64x1xi32>
    %2 = tpu.iota {dimensions = array<i32: 1>} : vector<64x32xi32>
    %3 = vector.broadcast %1 : vector<64x1xi32> to vector<64x32xi32>
    %4 = arith.cmpi eq, %2, %3 : vector<64x32xi32>
    %5 = arith.extui %4 : vector<64x32xi1> to vector<64x32xi32>
    %6 = arith.sitofp %5 : vector<64x32xi32> to vector<64x32xf32>
    %7 = arith.truncf %6 : vector<64x32xf32> to vector<64x32xbf16>
    %cst = arith.constant dense<0.000000e+00> : vector<64x128xf32>
    %8 = tpu.matmul %7, %0, %cst {dimension_numbers = #tpu.dot_dimension_numbers<[1], [0], [0], [1], [0, 0, 1, 1], [], []>} : vector<64x32xbf16>, vector<32x128xbf16>, vector<64x128xf32> -> vector<64x128xf32>
    %c0_3 = arith.constant 0 : index
    %c0_4 = arith.constant 0 : index
    %9 = vector.load %arg3[%c0_3, %c0_4] : memref<128x512xbf16, #tpu.memory_space<vmem>>, vector<128x512xbf16>
    %10 = arith.truncf %8 : vector<64x128xf32> to vector<64x128xbf16>
    %cst_5 = arith.constant dense<0.000000e+00> : vector<64x512xf32>
    %11 = tpu.matmul %10, %9, %cst_5 {dimension_numbers = #tpu.dot_dimension_numbers<[1], [0], [0], [1], [0, 0, 1, 1], [], []>} : vector<64x128xbf16>, vector<128x512xbf16>, vector<64x512xf32> -> vector<64x512xf32>
    %c0_6 = arith.constant 0 : index
    %c0_7 = arith.constant 0 : index
    %12 = vector.load %arg5[%c0_6, %c0_7] : memref<1x512xf32, #tpu.memory_space<vmem>>, vector<1x512xf32>
    %13 = vector.broadcast %12 : vector<1x512xf32> to vector<64x512xf32>
    %14 = arith.addf %11, %13 : vector<64x512xf32>
    %c0_8 = arith.constant 0 : index
    %c0_9 = arith.constant 0 : index
    %15 = vector.load %arg1[%c0_8, %c0_9] : memref<64x1xi32, #tpu.memory_space<vmem>>, vector<64x1xi32>
    %16 = tpu.iota {dimensions = array<i32: 1>} : vector<64x32xi32>
    %17 = vector.broadcast %15 : vector<64x1xi32> to vector<64x32xi32>
    %18 = arith.cmpi eq, %16, %17 : vector<64x32xi32>
    %19 = arith.extui %18 : vector<64x32xi1> to vector<64x32xi32>
    %20 = arith.sitofp %19 : vector<64x32xi32> to vector<64x32xf32>
    %21 = arith.truncf %20 : vector<64x32xf32> to vector<64x32xbf16>
    %cst_10 = arith.constant dense<0.000000e+00> : vector<64x128xf32>
    %22 = tpu.matmul %21, %0, %cst_10 {dimension_numbers = #tpu.dot_dimension_numbers<[1], [0], [0], [1], [0, 0, 1, 1], [], []>} : vector<64x32xbf16>, vector<32x128xbf16>, vector<64x128xf32> -> vector<64x128xf32>
    %c0_11 = arith.constant 0 : index
    %c0_12 = arith.constant 0 : index
    %23 = vector.load %arg15[%c0_11, %c0_12] : memref<128x512xbf16, #tpu.memory_space<vmem>>, vector<128x512xbf16>
    %24 = arith.truncf %22 : vector<64x128xf32> to vector<64x128xbf16>
    %cst_13 = arith.constant dense<0.000000e+00> : vector<64x512xf32>
    %25 = tpu.matmul %24, %23, %cst_13 {dimension_numbers = #tpu.dot_dimension_numbers<[1], [0], [0], [1], [0, 0, 1, 1], [], []>} : vector<64x128xbf16>, vector<128x512xbf16>, vector<64x512xf32> -> vector<64x512xf32>
    %c0_14 = arith.constant 0 : index
    %c0_15 = arith.constant 0 : index
    %26 = vector.load %arg17[%c0_14, %c0_15] : memref<1x512xf32, #tpu.memory_space<vmem>>, vector<1x512xf32>
    %27 = vector.broadcast %26 : vector<1x512xf32> to vector<64x512xf32>
    %28 = arith.addf %25, %27 : vector<64x512xf32>
    %c0_16 = arith.constant 0 : index
    %c0_17 = arith.constant 0 : index
    %29 = vector.load %arg4[%c0_16, %c0_17] : memref<128x512xbf16, #tpu.memory_space<vmem>>, vector<128x512xbf16>
    %cst_18 = arith.constant 0.000000e+00 : f32
    %30 = vector.broadcast %cst_18 : f32 to vector<8x128xf32>
    %cst_19 = arith.constant 0.000000e+00 : f32
    %31 = vector.broadcast %cst_19 : f32 to vector<8x128xf32>
    %32 = vector.extract_strided_slice %14 {offsets = [0, 0], sizes = [8, 512], strides = [1, 1]} : vector<64x512xf32> to vector<8x512xf32>
    %33 = arith.truncf %30 : vector<8x128xf32> to vector<8x128xbf16>
    %cst_20 = arith.constant dense<0.000000e+00> : vector<8x512xf32>
    %34 = tpu.matmul %33, %29, %cst_20 {dimension_numbers = #tpu.dot_dimension_numbers<[1], [0], [0], [1], [0, 0, 1, 1], [], []>} : vector<8x128xbf16>, vector<128x512xbf16>, vector<8x512xf32> -> vector<8x512xf32>
    %35 = arith.addf %32, %34 : vector<8x512xf32>
    %36 = vector.extract_strided_slice %35 {offsets = [0, 0], sizes = [8, 128], strides = [1, 1]} : vector<8x512xf32> to vector<8x128xf32>
    %37 = arith.negf %36 : vector<8x128xf32>
    %38 = math.exp %37 : vector<8x128xf32>
    %cst_21 = arith.constant 1.000000e+00 : f32
    %39 = vector.broadcast %cst_21 : f32 to vector<8x128xf32>
    %40 = arith.addf %39, %38 : vector<8x128xf32>
    %41 = arith.divf %39, %40 : vector<8x128xf32>
    %42 = vector.extract_strided_slice %35 {offsets = [0, 128], sizes = [8, 128], strides = [1, 1]} : vector<8x512xf32> to vector<8x128xf32>
    %43 = arith.negf %42 : vector<8x128xf32>
    %44 = math.exp %43 : vector<8x128xf32>
    %cst_22 = arith.constant 1.000000e+00 : f32
    %45 = vector.broadcast %cst_22 : f32 to vector<8x128xf32>
    %46 = arith.addf %45, %44 : vector<8x128xf32>
    %47 = arith.divf %45, %46 : vector<8x128xf32>
    %48 = vector.extract_strided_slice %35 {offsets = [0, 256], sizes = [8, 128], strides = [1, 1]} : vector<8x512xf32> to vector<8x128xf32>
    %49 = math.tanh %48 : vector<8x128xf32>
    %50 = vector.extract_strided_slice %35 {offsets = [0, 384], sizes = [8, 128], strides = [1, 1]} : vector<8x512xf32> to vector<8x128xf32>
    %51 = arith.negf %50 : vector<8x128xf32>
    %52 = math.exp %51 : vector<8x128xf32>
    %cst_23 = arith.constant 1.000000e+00 : f32
    %53 = vector.broadcast %cst_23 : f32 to vector<8x128xf32>
    %54 = arith.addf %53, %52 : vector<8x128xf32>
    %55 = arith.divf %53, %54 : vector<8x128xf32>
    %56 = arith.mulf %47, %31 : vector<8x128xf32>
    %57 = arith.mulf %41, %49 : vector<8x128xf32>
    %58 = arith.addf %56, %57 : vector<8x128xf32>
    %59 = math.tanh %58 : vector<8x128xf32>
    %60 = arith.mulf %55, %59 : vector<8x128xf32>
    %61 = vector.extract_strided_slice %14 {offsets = [8, 0], sizes = [8, 512], strides = [1, 1]} : vector<64x512xf32> to vector<8x512xf32>
    %62 = arith.truncf %60 : vector<8x128xf32> to vector<8x128xbf16>
    %cst_24 = arith.constant dense<0.000000e+00> : vector<8x512xf32>
    %63 = tpu.matmul %62, %29, %cst_24 {dimension_numbers = #tpu.dot_dimension_numbers<[1], [0], [0], [1], [0, 0, 1, 1], [], []>} : vector<8x128xbf16>, vector<128x512xbf16>, vector<8x512xf32> -> vector<8x512xf32>
    %64 = arith.addf %61, %63 : vector<8x512xf32>
    %65 = vector.extract_strided_slice %64 {offsets = [0, 0], sizes = [8, 128], strides = [1, 1]} : vector<8x512xf32> to vector<8x128xf32>
    %66 = arith.negf %65 : vector<8x128xf32>
    %67 = math.exp %66 : vector<8x128xf32>
    %cst_25 = arith.constant 1.000000e+00 : f32
    %68 = vector.broadcast %cst_25 : f32 to vector<8x128xf32>
    %69 = arith.addf %68, %67 : vector<8x128xf32>
    %70 = arith.divf %68, %69 : vector<8x128xf32>
    %71 = vector.extract_strided_slice %64 {offsets = [0, 128], sizes = [8, 128], strides = [1, 1]} : vector<8x512xf32> to vector<8x128xf32>
    %72 = arith.negf %71 : vector<8x128xf32>
    %73 = math.exp %72 : vector<8x128xf32>
    %cst_26 = arith.constant 1.000000e+00 : f32
    %74 = vector.broadcast %cst_26 : f32 to vector<8x128xf32>
    %75 = arith.addf %74, %73 : vector<8x128xf32>
    %76 = arith.divf %74, %75 : vector<8x128xf32>
    %77 = vector.extract_strided_slice %64 {offsets = [0, 256], sizes = [8, 128], strides = [1, 1]} : vector<8x512xf32> to vector<8x128xf32>
    %78 = math.tanh %77 : vector<8x128xf32>
    %79 = vector.extract_strided_slice %64 {offsets = [0, 384], sizes = [8, 128], strides = [1, 1]} : vector<8x512xf32> to vector<8x128xf32>
    %80 = arith.negf %79 : vector<8x128xf32>
    %81 = math.exp %80 : vector<8x128xf32>
    %cst_27 = arith.constant 1.000000e+00 : f32
    %82 = vector.broadcast %cst_27 : f32 to vector<8x128xf32>
    %83 = arith.addf %82, %81 : vector<8x128xf32>
    %84 = arith.divf %82, %83 : vector<8x128xf32>
    %85 = arith.mulf %76, %58 : vector<8x128xf32>
    %86 = arith.mulf %70, %78 : vector<8x128xf32>
    %87 = arith.addf %85, %86 : vector<8x128xf32>
    %88 = math.tanh %87 : vector<8x128xf32>
    %89 = arith.mulf %84, %88 : vector<8x128xf32>
    %90 = vector.extract_strided_slice %14 {offsets = [16, 0], sizes = [8, 512], strides = [1, 1]} : vector<64x512xf32> to vector<8x512xf32>
    %91 = arith.truncf %89 : vector<8x128xf32> to vector<8x128xbf16>
    %cst_28 = arith.constant dense<0.000000e+00> : vector<8x512xf32>
    %92 = tpu.matmul %91, %29, %cst_28 {dimension_numbers = #tpu.dot_dimension_numbers<[1], [0], [0], [1], [0, 0, 1, 1], [], []>} : vector<8x128xbf16>, vector<128x512xbf16>, vector<8x512xf32> -> vector<8x512xf32>
    %93 = arith.addf %90, %92 : vector<8x512xf32>
    %94 = vector.extract_strided_slice %93 {offsets = [0, 0], sizes = [8, 128], strides = [1, 1]} : vector<8x512xf32> to vector<8x128xf32>
    %95 = arith.negf %94 : vector<8x128xf32>
    %96 = math.exp %95 : vector<8x128xf32>
    %cst_29 = arith.constant 1.000000e+00 : f32
    %97 = vector.broadcast %cst_29 : f32 to vector<8x128xf32>
    %98 = arith.addf %97, %96 : vector<8x128xf32>
    %99 = arith.divf %97, %98 : vector<8x128xf32>
    %100 = vector.extract_strided_slice %93 {offsets = [0, 128], sizes = [8, 128], strides = [1, 1]} : vector<8x512xf32> to vector<8x128xf32>
    %101 = arith.negf %100 : vector<8x128xf32>
    %102 = math.exp %101 : vector<8x128xf32>
    %cst_30 = arith.constant 1.000000e+00 : f32
    %103 = vector.broadcast %cst_30 : f32 to vector<8x128xf32>
    %104 = arith.addf %103, %102 : vector<8x128xf32>
    %105 = arith.divf %103, %104 : vector<8x128xf32>
    %106 = vector.extract_strided_slice %93 {offsets = [0, 256], sizes = [8, 128], strides = [1, 1]} : vector<8x512xf32> to vector<8x128xf32>
    %107 = math.tanh %106 : vector<8x128xf32>
    %108 = vector.extract_strided_slice %93 {offsets = [0, 384], sizes = [8, 128], strides = [1, 1]} : vector<8x512xf32> to vector<8x128xf32>
    %109 = arith.negf %108 : vector<8x128xf32>
    %110 = math.exp %109 : vector<8x128xf32>
    %cst_31 = arith.constant 1.000000e+00 : f32
    %111 = vector.broadcast %cst_31 : f32 to vector<8x128xf32>
    %112 = arith.addf %111, %110 : vector<8x128xf32>
    %113 = arith.divf %111, %112 : vector<8x128xf32>
    %114 = arith.mulf %105, %87 : vector<8x128xf32>
    %115 = arith.mulf %99, %107 : vector<8x128xf32>
    %116 = arith.addf %114, %115 : vector<8x128xf32>
    %117 = math.tanh %116 : vector<8x128xf32>
    %118 = arith.mulf %113, %117 : vector<8x128xf32>
    %119 = vector.extract_strided_slice %14 {offsets = [24, 0], sizes = [8, 512], strides = [1, 1]} : vector<64x512xf32> to vector<8x512xf32>
    %120 = arith.truncf %118 : vector<8x128xf32> to vector<8x128xbf16>
    %cst_32 = arith.constant dense<0.000000e+00> : vector<8x512xf32>
    %121 = tpu.matmul %120, %29, %cst_32 {dimension_numbers = #tpu.dot_dimension_numbers<[1], [0], [0], [1], [0, 0, 1, 1], [], []>} : vector<8x128xbf16>, vector<128x512xbf16>, vector<8x512xf32> -> vector<8x512xf32>
    %122 = arith.addf %119, %121 : vector<8x512xf32>
    %123 = vector.extract_strided_slice %122 {offsets = [0, 0], sizes = [8, 128], strides = [1, 1]} : vector<8x512xf32> to vector<8x128xf32>
    %124 = arith.negf %123 : vector<8x128xf32>
    %125 = math.exp %124 : vector<8x128xf32>
    %cst_33 = arith.constant 1.000000e+00 : f32
    %126 = vector.broadcast %cst_33 : f32 to vector<8x128xf32>
    %127 = arith.addf %126, %125 : vector<8x128xf32>
    %128 = arith.divf %126, %127 : vector<8x128xf32>
    %129 = vector.extract_strided_slice %122 {offsets = [0, 128], sizes = [8, 128], strides = [1, 1]} : vector<8x512xf32> to vector<8x128xf32>
    %130 = arith.negf %129 : vector<8x128xf32>
    %131 = math.exp %130 : vector<8x128xf32>
    %cst_34 = arith.constant 1.000000e+00 : f32
    %132 = vector.broadcast %cst_34 : f32 to vector<8x128xf32>
    %133 = arith.addf %132, %131 : vector<8x128xf32>
    %134 = arith.divf %132, %133 : vector<8x128xf32>
    %135 = vector.extract_strided_slice %122 {offsets = [0, 256], sizes = [8, 128], strides = [1, 1]} : vector<8x512xf32> to vector<8x128xf32>
    %136 = math.tanh %135 : vector<8x128xf32>
    %137 = vector.extract_strided_slice %122 {offsets = [0, 384], sizes = [8, 128], strides = [1, 1]} : vector<8x512xf32> to vector<8x128xf32>
    %138 = arith.negf %137 : vector<8x128xf32>
    %139 = math.exp %138 : vector<8x128xf32>
    %cst_35 = arith.constant 1.000000e+00 : f32
    %140 = vector.broadcast %cst_35 : f32 to vector<8x128xf32>
    %141 = arith.addf %140, %139 : vector<8x128xf32>
    %142 = arith.divf %140, %141 : vector<8x128xf32>
    %143 = arith.mulf %134, %116 : vector<8x128xf32>
    %144 = arith.mulf %128, %136 : vector<8x128xf32>
    %145 = arith.addf %143, %144 : vector<8x128xf32>
    %146 = math.tanh %145 : vector<8x128xf32>
    %147 = arith.mulf %142, %146 : vector<8x128xf32>
    %148 = vector.extract_strided_slice %14 {offsets = [32, 0], sizes = [8, 512], strides = [1, 1]} : vector<64x512xf32> to vector<8x512xf32>
    %149 = arith.truncf %147 : vector<8x128xf32> to vector<8x128xbf16>
    %cst_36 = arith.constant dense<0.000000e+00> : vector<8x512xf32>
    %150 = tpu.matmul %149, %29, %cst_36 {dimension_numbers = #tpu.dot_dimension_numbers<[1], [0], [0], [1], [0, 0, 1, 1], [], []>} : vector<8x128xbf16>, vector<128x512xbf16>, vector<8x512xf32> -> vector<8x512xf32>
    %151 = arith.addf %148, %150 : vector<8x512xf32>
    %152 = vector.extract_strided_slice %151 {offsets = [0, 0], sizes = [8, 128], strides = [1, 1]} : vector<8x512xf32> to vector<8x128xf32>
    %153 = arith.negf %152 : vector<8x128xf32>
    %154 = math.exp %153 : vector<8x128xf32>
    %cst_37 = arith.constant 1.000000e+00 : f32
    %155 = vector.broadcast %cst_37 : f32 to vector<8x128xf32>
    %156 = arith.addf %155, %154 : vector<8x128xf32>
    %157 = arith.divf %155, %156 : vector<8x128xf32>
    %158 = vector.extract_strided_slice %151 {offsets = [0, 128], sizes = [8, 128], strides = [1, 1]} : vector<8x512xf32> to vector<8x128xf32>
    %159 = arith.negf %158 : vector<8x128xf32>
    %160 = math.exp %159 : vector<8x128xf32>
    %cst_38 = arith.constant 1.000000e+00 : f32
    %161 = vector.broadcast %cst_38 : f32 to vector<8x128xf32>
    %162 = arith.addf %161, %160 : vector<8x128xf32>
    %163 = arith.divf %161, %162 : vector<8x128xf32>
    %164 = vector.extract_strided_slice %151 {offsets = [0, 256], sizes = [8, 128], strides = [1, 1]} : vector<8x512xf32> to vector<8x128xf32>
    %165 = math.tanh %164 : vector<8x128xf32>
    %166 = vector.extract_strided_slice %151 {offsets = [0, 384], sizes = [8, 128], strides = [1, 1]} : vector<8x512xf32> to vector<8x128xf32>
    %167 = arith.negf %166 : vector<8x128xf32>
    %168 = math.exp %167 : vector<8x128xf32>
    %cst_39 = arith.constant 1.000000e+00 : f32
    %169 = vector.broadcast %cst_39 : f32 to vector<8x128xf32>
    %170 = arith.addf %169, %168 : vector<8x128xf32>
    %171 = arith.divf %169, %170 : vector<8x128xf32>
    %172 = arith.mulf %163, %145 : vector<8x128xf32>
    %173 = arith.mulf %157, %165 : vector<8x128xf32>
    %174 = arith.addf %172, %173 : vector<8x128xf32>
    %175 = math.tanh %174 : vector<8x128xf32>
    %176 = arith.mulf %171, %175 : vector<8x128xf32>
    %177 = vector.extract_strided_slice %14 {offsets = [40, 0], sizes = [8, 512], strides = [1, 1]} : vector<64x512xf32> to vector<8x512xf32>
    %178 = arith.truncf %176 : vector<8x128xf32> to vector<8x128xbf16>
    %cst_40 = arith.constant dense<0.000000e+00> : vector<8x512xf32>
    %179 = tpu.matmul %178, %29, %cst_40 {dimension_numbers = #tpu.dot_dimension_numbers<[1], [0], [0], [1], [0, 0, 1, 1], [], []>} : vector<8x128xbf16>, vector<128x512xbf16>, vector<8x512xf32> -> vector<8x512xf32>
    %180 = arith.addf %177, %179 : vector<8x512xf32>
    %181 = vector.extract_strided_slice %180 {offsets = [0, 0], sizes = [8, 128], strides = [1, 1]} : vector<8x512xf32> to vector<8x128xf32>
    %182 = arith.negf %181 : vector<8x128xf32>
    %183 = math.exp %182 : vector<8x128xf32>
    %cst_41 = arith.constant 1.000000e+00 : f32
    %184 = vector.broadcast %cst_41 : f32 to vector<8x128xf32>
    %185 = arith.addf %184, %183 : vector<8x128xf32>
    %186 = arith.divf %184, %185 : vector<8x128xf32>
    %187 = vector.extract_strided_slice %180 {offsets = [0, 128], sizes = [8, 128], strides = [1, 1]} : vector<8x512xf32> to vector<8x128xf32>
    %188 = arith.negf %187 : vector<8x128xf32>
    %189 = math.exp %188 : vector<8x128xf32>
    %cst_42 = arith.constant 1.000000e+00 : f32
    %190 = vector.broadcast %cst_42 : f32 to vector<8x128xf32>
    %191 = arith.addf %190, %189 : vector<8x128xf32>
    %192 = arith.divf %190, %191 : vector<8x128xf32>
    %193 = vector.extract_strided_slice %180 {offsets = [0, 256], sizes = [8, 128], strides = [1, 1]} : vector<8x512xf32> to vector<8x128xf32>
    %194 = math.tanh %193 : vector<8x128xf32>
    %195 = vector.extract_strided_slice %180 {offsets = [0, 384], sizes = [8, 128], strides = [1, 1]} : vector<8x512xf32> to vector<8x128xf32>
    %196 = arith.negf %195 : vector<8x128xf32>
    %197 = math.exp %196 : vector<8x128xf32>
    %cst_43 = arith.constant 1.000000e+00 : f32
    %198 = vector.broadcast %cst_43 : f32 to vector<8x128xf32>
    %199 = arith.addf %198, %197 : vector<8x128xf32>
    %200 = arith.divf %198, %199 : vector<8x128xf32>
    %201 = arith.mulf %192, %174 : vector<8x128xf32>
    %202 = arith.mulf %186, %194 : vector<8x128xf32>
    %203 = arith.addf %201, %202 : vector<8x128xf32>
    %204 = math.tanh %203 : vector<8x128xf32>
    %205 = arith.mulf %200, %204 : vector<8x128xf32>
    %206 = vector.extract_strided_slice %14 {offsets = [48, 0], sizes = [8, 512], strides = [1, 1]} : vector<64x512xf32> to vector<8x512xf32>
    %207 = arith.truncf %205 : vector<8x128xf32> to vector<8x128xbf16>
    %cst_44 = arith.constant dense<0.000000e+00> : vector<8x512xf32>
    %208 = tpu.matmul %207, %29, %cst_44 {dimension_numbers = #tpu.dot_dimension_numbers<[1], [0], [0], [1], [0, 0, 1, 1], [], []>} : vector<8x128xbf16>, vector<128x512xbf16>, vector<8x512xf32> -> vector<8x512xf32>
    %209 = arith.addf %206, %208 : vector<8x512xf32>
    %210 = vector.extract_strided_slice %209 {offsets = [0, 0], sizes = [8, 128], strides = [1, 1]} : vector<8x512xf32> to vector<8x128xf32>
    %211 = arith.negf %210 : vector<8x128xf32>
    %212 = math.exp %211 : vector<8x128xf32>
    %cst_45 = arith.constant 1.000000e+00 : f32
    %213 = vector.broadcast %cst_45 : f32 to vector<8x128xf32>
    %214 = arith.addf %213, %212 : vector<8x128xf32>
    %215 = arith.divf %213, %214 : vector<8x128xf32>
    %216 = vector.extract_strided_slice %209 {offsets = [0, 128], sizes = [8, 128], strides = [1, 1]} : vector<8x512xf32> to vector<8x128xf32>
    %217 = arith.negf %216 : vector<8x128xf32>
    %218 = math.exp %217 : vector<8x128xf32>
    %cst_46 = arith.constant 1.000000e+00 : f32
    %219 = vector.broadcast %cst_46 : f32 to vector<8x128xf32>
    %220 = arith.addf %219, %218 : vector<8x128xf32>
    %221 = arith.divf %219, %220 : vector<8x128xf32>
    %222 = vector.extract_strided_slice %209 {offsets = [0, 256], sizes = [8, 128], strides = [1, 1]} : vector<8x512xf32> to vector<8x128xf32>
    %223 = math.tanh %222 : vector<8x128xf32>
    %224 = vector.extract_strided_slice %209 {offsets = [0, 384], sizes = [8, 128], strides = [1, 1]} : vector<8x512xf32> to vector<8x128xf32>
    %225 = arith.negf %224 : vector<8x128xf32>
    %226 = math.exp %225 : vector<8x128xf32>
    %cst_47 = arith.constant 1.000000e+00 : f32
    %227 = vector.broadcast %cst_47 : f32 to vector<8x128xf32>
    %228 = arith.addf %227, %226 : vector<8x128xf32>
    %229 = arith.divf %227, %228 : vector<8x128xf32>
    %230 = arith.mulf %221, %203 : vector<8x128xf32>
    %231 = arith.mulf %215, %223 : vector<8x128xf32>
    %232 = arith.addf %230, %231 : vector<8x128xf32>
    %233 = math.tanh %232 : vector<8x128xf32>
    %234 = arith.mulf %229, %233 : vector<8x128xf32>
    %235 = vector.extract_strided_slice %14 {offsets = [56, 0], sizes = [8, 512], strides = [1, 1]} : vector<64x512xf32> to vector<8x512xf32>
    %236 = arith.truncf %234 : vector<8x128xf32> to vector<8x128xbf16>
    %cst_48 = arith.constant dense<0.000000e+00> : vector<8x512xf32>
    %237 = tpu.matmul %236, %29, %cst_48 {dimension_numbers = #tpu.dot_dimension_numbers<[1], [0], [0], [1], [0, 0, 1, 1], [], []>} : vector<8x128xbf16>, vector<128x512xbf16>, vector<8x512xf32> -> vector<8x512xf32>
    %238 = arith.addf %235, %237 : vector<8x512xf32>
    %239 = vector.extract_strided_slice %238 {offsets = [0, 0], sizes = [8, 128], strides = [1, 1]} : vector<8x512xf32> to vector<8x128xf32>
    %240 = arith.negf %239 : vector<8x128xf32>
    %241 = math.exp %240 : vector<8x128xf32>
    %cst_49 = arith.constant 1.000000e+00 : f32
    %242 = vector.broadcast %cst_49 : f32 to vector<8x128xf32>
    %243 = arith.addf %242, %241 : vector<8x128xf32>
    %244 = arith.divf %242, %243 : vector<8x128xf32>
    %245 = vector.extract_strided_slice %238 {offsets = [0, 128], sizes = [8, 128], strides = [1, 1]} : vector<8x512xf32> to vector<8x128xf32>
    %246 = arith.negf %245 : vector<8x128xf32>
    %247 = math.exp %246 : vector<8x128xf32>
    %cst_50 = arith.constant 1.000000e+00 : f32
    %248 = vector.broadcast %cst_50 : f32 to vector<8x128xf32>
    %249 = arith.addf %248, %247 : vector<8x128xf32>
    %250 = arith.divf %248, %249 : vector<8x128xf32>
    %251 = vector.extract_strided_slice %238 {offsets = [0, 256], sizes = [8, 128], strides = [1, 1]} : vector<8x512xf32> to vector<8x128xf32>
    %252 = math.tanh %251 : vector<8x128xf32>
    %253 = vector.extract_strided_slice %238 {offsets = [0, 384], sizes = [8, 128], strides = [1, 1]} : vector<8x512xf32> to vector<8x128xf32>
    %254 = arith.negf %253 : vector<8x128xf32>
    %255 = math.exp %254 : vector<8x128xf32>
    %cst_51 = arith.constant 1.000000e+00 : f32
    %256 = vector.broadcast %cst_51 : f32 to vector<8x128xf32>
    %257 = arith.addf %256, %255 : vector<8x128xf32>
    %258 = arith.divf %256, %257 : vector<8x128xf32>
    %259 = arith.mulf %250, %232 : vector<8x128xf32>
    %260 = arith.mulf %244, %252 : vector<8x128xf32>
    %261 = arith.addf %259, %260 : vector<8x128xf32>
    %262 = math.tanh %261 : vector<8x128xf32>
    %263 = arith.mulf %258, %262 : vector<8x128xf32>
    %c0_52 = arith.constant 0 : index
    %c0_53 = arith.constant 0 : index
    %264 = vector.load %arg6[%c0_52, %c0_53] : memref<128x128xbf16, #tpu.memory_space<vmem>>, vector<128x128xbf16>
    %265 = arith.truncf %263 : vector<8x128xf32> to vector<8x128xbf16>
    %cst_54 = arith.constant dense<0.000000e+00> : vector<8x128xf32>
    %266 = tpu.matmul %265, %264, %cst_54 {dimension_numbers = #tpu.dot_dimension_numbers<[1], [0], [0], [1], [0, 0, 1, 1], [], []>} : vector<8x128xbf16>, vector<128x128xbf16>, vector<8x128xf32> -> vector<8x128xf32>
    %c0_55 = arith.constant 0 : index
    %c0_56 = arith.constant 0 : index
    %267 = vector.load %arg7[%c0_55, %c0_56] : memref<1x128xf32, #tpu.memory_space<vmem>>, vector<1x128xf32>
    %268 = vector.broadcast %267 : vector<1x128xf32> to vector<8x128xf32>
    %269 = arith.addf %266, %268 : vector<8x128xf32>
    %270 = arith.negf %269 : vector<8x128xf32>
    %271 = math.exp %270 : vector<8x128xf32>
    %cst_57 = arith.constant 1.000000e+00 : f32
    %272 = vector.broadcast %cst_57 : f32 to vector<8x128xf32>
    %273 = arith.addf %272, %271 : vector<8x128xf32>
    %274 = arith.divf %272, %273 : vector<8x128xf32>
    %c0_58 = arith.constant 0 : index
    %c0_59 = arith.constant 0 : index
    %275 = vector.load %arg8[%c0_58, %c0_59] : memref<128x128xbf16, #tpu.memory_space<vmem>>, vector<128x128xbf16>
    %276 = arith.truncf %274 : vector<8x128xf32> to vector<8x128xbf16>
    %cst_60 = arith.constant dense<0.000000e+00> : vector<8x128xf32>
    %277 = tpu.matmul %276, %275, %cst_60 {dimension_numbers = #tpu.dot_dimension_numbers<[1], [0], [0], [1], [0, 0, 1, 1], [], []>} : vector<8x128xbf16>, vector<128x128xbf16>, vector<8x128xf32> -> vector<8x128xf32>
    %c0_61 = arith.constant 0 : index
    %c0_62 = arith.constant 0 : index
    %278 = vector.load %arg9[%c0_61, %c0_62] : memref<1x128xf32, #tpu.memory_space<vmem>>, vector<1x128xf32>
    %279 = vector.broadcast %278 : vector<1x128xf32> to vector<8x128xf32>
    %280 = arith.addf %277, %279 : vector<8x128xf32>
    %281 = arith.negf %280 : vector<8x128xf32>
    %282 = math.exp %281 : vector<8x128xf32>
    %cst_63 = arith.constant 1.000000e+00 : f32
    %283 = vector.broadcast %cst_63 : f32 to vector<8x128xf32>
    %284 = arith.addf %283, %282 : vector<8x128xf32>
    %285 = arith.divf %283, %284 : vector<8x128xf32>
    %c0_64 = arith.constant 0 : index
    %c0_65 = arith.constant 0 : index
    %286 = vector.load %arg10[%c0_64, %c0_65] : memref<128x128xbf16, #tpu.memory_space<vmem>>, vector<128x128xbf16>
    %287 = arith.truncf %285 : vector<8x128xf32> to vector<8x128xbf16>
    %cst_66 = arith.constant dense<0.000000e+00> : vector<8x128xf32>
    %288 = tpu.matmul %287, %286, %cst_66 {dimension_numbers = #tpu.dot_dimension_numbers<[1], [0], [0], [1], [0, 0, 1, 1], [], []>} : vector<8x128xbf16>, vector<128x128xbf16>, vector<8x128xf32> -> vector<8x128xf32>
    %c0_67 = arith.constant 0 : index
    %c0_68 = arith.constant 0 : index
    %289 = vector.load %arg11[%c0_67, %c0_68] : memref<1x128xf32, #tpu.memory_space<vmem>>, vector<1x128xf32>
    %290 = vector.broadcast %289 : vector<1x128xf32> to vector<8x128xf32>
    %291 = arith.addf %288, %290 : vector<8x128xf32>
    %c0_69 = arith.constant 0 : index
    %c0_70 = arith.constant 0 : index
    %292 = vector.load %arg20[%c0_69, %c0_70] : memref<8x128xf32, #tpu.memory_space<vmem>>, vector<8x128xf32>
    tpu.vector_store %arg20[%c0_69, %c0_70], %291 {strides = array<i32>} : memref<8x128xf32, #tpu.memory_space<vmem>>, vector<8x128xf32>,
    %293 = vector.extract_strided_slice %291 {offsets = [0, 0], sizes = [8, 64], strides = [1, 1]} : vector<8x128xf32> to vector<8x64xf32>
    %294 = vector.extract_strided_slice %291 {offsets = [0, 64], sizes = [8, 64], strides = [1, 1]} : vector<8x128xf32> to vector<8x64xf32>
    %cst_71 = arith.constant 5.000000e-01 : f32
    %295 = vector.broadcast %cst_71 : f32 to vector<8x64xf32>
    %296 = arith.mulf %295, %294 : vector<8x64xf32>
    %297 = math.exp %296 : vector<8x64xf32>
    %c0_72 = arith.constant 0 : index
    %c0_73 = arith.constant 0 : index
    %298 = vector.load %arg12[%c0_72, %c0_73] : memref<8x64xf32, #tpu.memory_space<vmem>>, vector<8x64xf32>
    %299 = arith.mulf %297, %298 : vector<8x64xf32>
    %300 = arith.addf %293, %299 : vector<8x64xf32>
    %c0_74 = arith.constant 0 : index
    %c0_75 = arith.constant 0 : index
    %301 = vector.load %arg13[%c0_74, %c0_75] : memref<64x256xbf16, #tpu.memory_space<vmem>>, vector<64x256xbf16>
    %302 = arith.truncf %300 : vector<8x64xf32> to vector<8x64xbf16>
    %cst_76 = arith.constant dense<0.000000e+00> : vector<8x256xf32>
    %303 = tpu.matmul %302, %301, %cst_76 {dimension_numbers = #tpu.dot_dimension_numbers<[1], [0], [0], [1], [0, 0, 1, 1], [], []>} : vector<8x64xbf16>, vector<64x256xbf16>, vector<8x256xf32> -> vector<8x256xf32>
    %c0_77 = arith.constant 0 : index
    %c0_78 = arith.constant 0 : index
    %304 = vector.load %arg14[%c0_77, %c0_78] : memref<1x256xf32, #tpu.memory_space<vmem>>, vector<1x256xf32>
    %305 = vector.broadcast %304 : vector<1x256xf32> to vector<8x256xf32>
    %306 = arith.addf %303, %305 : vector<8x256xf32>
    %307 = vector.extract_strided_slice %306 {offsets = [0, 0], sizes = [8, 128], strides = [1, 1]} : vector<8x256xf32> to vector<8x128xf32>
    %308 = vector.extract_strided_slice %306 {offsets = [0, 128], sizes = [8, 128], strides = [1, 1]} : vector<8x256xf32> to vector<8x128xf32>
    %c0_79 = arith.constant 0 : index
    %c0_80 = arith.constant 0 : index
    %309 = vector.load %arg16[%c0_79, %c0_80] : memref<128x512xbf16, #tpu.memory_space<vmem>>, vector<128x512xbf16>
    %310 = vector.extract_strided_slice %28 {offsets = [0, 0], sizes = [8, 512], strides = [1, 1]} : vector<64x512xf32> to vector<8x512xf32>
    %311 = arith.truncf %307 : vector<8x128xf32> to vector<8x128xbf16>
    %cst_81 = arith.constant dense<0.000000e+00> : vector<8x512xf32>
    %312 = tpu.matmul %311, %309, %cst_81 {dimension_numbers = #tpu.dot_dimension_numbers<[1], [0], [0], [1], [0, 0, 1, 1], [], []>} : vector<8x128xbf16>, vector<128x512xbf16>, vector<8x512xf32> -> vector<8x512xf32>
    %313 = arith.addf %310, %312 : vector<8x512xf32>
    %314 = vector.extract_strided_slice %313 {offsets = [0, 0], sizes = [8, 128], strides = [1, 1]} : vector<8x512xf32> to vector<8x128xf32>
    %315 = arith.negf %314 : vector<8x128xf32>
    %316 = math.exp %315 : vector<8x128xf32>
    %cst_82 = arith.constant 1.000000e+00 : f32
    %317 = vector.broadcast %cst_82 : f32 to vector<8x128xf32>
    %318 = arith.addf %317, %316 : vector<8x128xf32>
    %319 = arith.divf %317, %318 : vector<8x128xf32>
    %320 = vector.extract_strided_slice %313 {offsets = [0, 128], sizes = [8, 128], strides = [1, 1]} : vector<8x512xf32> to vector<8x128xf32>
    %321 = arith.negf %320 : vector<8x128xf32>
    %322 = math.exp %321 : vector<8x128xf32>
    %cst_83 = arith.constant 1.000000e+00 : f32
    %323 = vector.broadcast %cst_83 : f32 to vector<8x128xf32>
    %324 = arith.addf %323, %322 : vector<8x128xf32>
    %325 = arith.divf %323, %324 : vector<8x128xf32>
    %326 = vector.extract_strided_slice %313 {offsets = [0, 256], sizes = [8, 128], strides = [1, 1]} : vector<8x512xf32> to vector<8x128xf32>
    %327 = math.tanh %326 : vector<8x128xf32>
    %328 = vector.extract_strided_slice %313 {offsets = [0, 384], sizes = [8, 128], strides = [1, 1]} : vector<8x512xf32> to vector<8x128xf32>
    %329 = arith.negf %328 : vector<8x128xf32>
    %330 = math.exp %329 : vector<8x128xf32>
    %cst_84 = arith.constant 1.000000e+00 : f32
    %331 = vector.broadcast %cst_84 : f32 to vector<8x128xf32>
    %332 = arith.addf %331, %330 : vector<8x128xf32>
    %333 = arith.divf %331, %332 : vector<8x128xf32>
    %334 = arith.mulf %325, %308 : vector<8x128xf32>
    %335 = arith.mulf %319, %327 : vector<8x128xf32>
    %336 = arith.addf %334, %335 : vector<8x128xf32>
    %337 = math.tanh %336 : vector<8x128xf32>
    %338 = arith.mulf %333, %337 : vector<8x128xf32>
    %339 = vector.extract_strided_slice %28 {offsets = [8, 0], sizes = [8, 512], strides = [1, 1]} : vector<64x512xf32> to vector<8x512xf32>
    %340 = arith.truncf %338 : vector<8x128xf32> to vector<8x128xbf16>
    %cst_85 = arith.constant dense<0.000000e+00> : vector<8x512xf32>
    %341 = tpu.matmul %340, %309, %cst_85 {dimension_numbers = #tpu.dot_dimension_numbers<[1], [0], [0], [1], [0, 0, 1, 1], [], []>} : vector<8x128xbf16>, vector<128x512xbf16>, vector<8x512xf32> -> vector<8x512xf32>
    %342 = arith.addf %339, %341 : vector<8x512xf32>
    %343 = vector.extract_strided_slice %342 {offsets = [0, 0], sizes = [8, 128], strides = [1, 1]} : vector<8x512xf32> to vector<8x128xf32>
    %344 = arith.negf %343 : vector<8x128xf32>
    %345 = math.exp %344 : vector<8x128xf32>
    %cst_86 = arith.constant 1.000000e+00 : f32
    %346 = vector.broadcast %cst_86 : f32 to vector<8x128xf32>
    %347 = arith.addf %346, %345 : vector<8x128xf32>
    %348 = arith.divf %346, %347 : vector<8x128xf32>
    %349 = vector.extract_strided_slice %342 {offsets = [0, 128], sizes = [8, 128], strides = [1, 1]} : vector<8x512xf32> to vector<8x128xf32>
    %350 = arith.negf %349 : vector<8x128xf32>
    %351 = math.exp %350 : vector<8x128xf32>
    %cst_87 = arith.constant 1.000000e+00 : f32
    %352 = vector.broadcast %cst_87 : f32 to vector<8x128xf32>
    %353 = arith.addf %352, %351 : vector<8x128xf32>
    %354 = arith.divf %352, %353 : vector<8x128xf32>
    %355 = vector.extract_strided_slice %342 {offsets = [0, 256], sizes = [8, 128], strides = [1, 1]} : vector<8x512xf32> to vector<8x128xf32>
    %356 = math.tanh %355 : vector<8x128xf32>
    %357 = vector.extract_strided_slice %342 {offsets = [0, 384], sizes = [8, 128], strides = [1, 1]} : vector<8x512xf32> to vector<8x128xf32>
    %358 = arith.negf %357 : vector<8x128xf32>
    %359 = math.exp %358 : vector<8x128xf32>
    %cst_88 = arith.constant 1.000000e+00 : f32
    %360 = vector.broadcast %cst_88 : f32 to vector<8x128xf32>
    %361 = arith.addf %360, %359 : vector<8x128xf32>
    %362 = arith.divf %360, %361 : vector<8x128xf32>
    %363 = arith.mulf %354, %336 : vector<8x128xf32>
    %364 = arith.mulf %348, %356 : vector<8x128xf32>
    %365 = arith.addf %363, %364 : vector<8x128xf32>
    %366 = math.tanh %365 : vector<8x128xf32>
    %367 = arith.mulf %362, %366 : vector<8x128xf32>
    %368 = vector.extract_strided_slice %28 {offsets = [16, 0], sizes = [8, 512], strides = [1, 1]} : vector<64x512xf32> to vector<8x512xf32>
    %369 = arith.truncf %367 : vector<8x128xf32> to vector<8x128xbf16>
    %cst_89 = arith.constant dense<0.000000e+00> : vector<8x512xf32>
    %370 = tpu.matmul %369, %309, %cst_89 {dimension_numbers = #tpu.dot_dimension_numbers<[1], [0], [0], [1], [0, 0, 1, 1], [], []>} : vector<8x128xbf16>, vector<128x512xbf16>, vector<8x512xf32> -> vector<8x512xf32>
    %371 = arith.addf %368, %370 : vector<8x512xf32>
    %372 = vector.extract_strided_slice %371 {offsets = [0, 0], sizes = [8, 128], strides = [1, 1]} : vector<8x512xf32> to vector<8x128xf32>
    %373 = arith.negf %372 : vector<8x128xf32>
    %374 = math.exp %373 : vector<8x128xf32>
    %cst_90 = arith.constant 1.000000e+00 : f32
    %375 = vector.broadcast %cst_90 : f32 to vector<8x128xf32>
    %376 = arith.addf %375, %374 : vector<8x128xf32>
    %377 = arith.divf %375, %376 : vector<8x128xf32>
    %378 = vector.extract_strided_slice %371 {offsets = [0, 128], sizes = [8, 128], strides = [1, 1]} : vector<8x512xf32> to vector<8x128xf32>
    %379 = arith.negf %378 : vector<8x128xf32>
    %380 = math.exp %379 : vector<8x128xf32>
    %cst_91 = arith.constant 1.000000e+00 : f32
    %381 = vector.broadcast %cst_91 : f32 to vector<8x128xf32>
    %382 = arith.addf %381, %380 : vector<8x128xf32>
    %383 = arith.divf %381, %382 : vector<8x128xf32>
    %384 = vector.extract_strided_slice %371 {offsets = [0, 256], sizes = [8, 128], strides = [1, 1]} : vector<8x512xf32> to vector<8x128xf32>
    %385 = math.tanh %384 : vector<8x128xf32>
    %386 = vector.extract_strided_slice %371 {offsets = [0, 384], sizes = [8, 128], strides = [1, 1]} : vector<8x512xf32> to vector<8x128xf32>
    %387 = arith.negf %386 : vector<8x128xf32>
    %388 = math.exp %387 : vector<8x128xf32>
    %cst_92 = arith.constant 1.000000e+00 : f32
    %389 = vector.broadcast %cst_92 : f32 to vector<8x128xf32>
    %390 = arith.addf %389, %388 : vector<8x128xf32>
    %391 = arith.divf %389, %390 : vector<8x128xf32>
    %392 = arith.mulf %383, %365 : vector<8x128xf32>
    %393 = arith.mulf %377, %385 : vector<8x128xf32>
    %394 = arith.addf %392, %393 : vector<8x128xf32>
    %395 = math.tanh %394 : vector<8x128xf32>
    %396 = arith.mulf %391, %395 : vector<8x128xf32>
    %397 = vector.extract_strided_slice %28 {offsets = [24, 0], sizes = [8, 512], strides = [1, 1]} : vector<64x512xf32> to vector<8x512xf32>
    %398 = arith.truncf %396 : vector<8x128xf32> to vector<8x128xbf16>
    %cst_93 = arith.constant dense<0.000000e+00> : vector<8x512xf32>
    %399 = tpu.matmul %398, %309, %cst_93 {dimension_numbers = #tpu.dot_dimension_numbers<[1], [0], [0], [1], [0, 0, 1, 1], [], []>} : vector<8x128xbf16>, vector<128x512xbf16>, vector<8x512xf32> -> vector<8x512xf32>
    %400 = arith.addf %397, %399 : vector<8x512xf32>
    %401 = vector.extract_strided_slice %400 {offsets = [0, 0], sizes = [8, 128], strides = [1, 1]} : vector<8x512xf32> to vector<8x128xf32>
    %402 = arith.negf %401 : vector<8x128xf32>
    %403 = math.exp %402 : vector<8x128xf32>
    %cst_94 = arith.constant 1.000000e+00 : f32
    %404 = vector.broadcast %cst_94 : f32 to vector<8x128xf32>
    %405 = arith.addf %404, %403 : vector<8x128xf32>
    %406 = arith.divf %404, %405 : vector<8x128xf32>
    %407 = vector.extract_strided_slice %400 {offsets = [0, 128], sizes = [8, 128], strides = [1, 1]} : vector<8x512xf32> to vector<8x128xf32>
    %408 = arith.negf %407 : vector<8x128xf32>
    %409 = math.exp %408 : vector<8x128xf32>
    %cst_95 = arith.constant 1.000000e+00 : f32
    %410 = vector.broadcast %cst_95 : f32 to vector<8x128xf32>
    %411 = arith.addf %410, %409 : vector<8x128xf32>
    %412 = arith.divf %410, %411 : vector<8x128xf32>
    %413 = vector.extract_strided_slice %400 {offsets = [0, 256], sizes = [8, 128], strides = [1, 1]} : vector<8x512xf32> to vector<8x128xf32>
    %414 = math.tanh %413 : vector<8x128xf32>
    %415 = vector.extract_strided_slice %400 {offsets = [0, 384], sizes = [8, 128], strides = [1, 1]} : vector<8x512xf32> to vector<8x128xf32>
    %416 = arith.negf %415 : vector<8x128xf32>
    %417 = math.exp %416 : vector<8x128xf32>
    %cst_96 = arith.constant 1.000000e+00 : f32
    %418 = vector.broadcast %cst_96 : f32 to vector<8x128xf32>
    %419 = arith.addf %418, %417 : vector<8x128xf32>
    %420 = arith.divf %418, %419 : vector<8x128xf32>
    %421 = arith.mulf %412, %394 : vector<8x128xf32>
    %422 = arith.mulf %406, %414 : vector<8x128xf32>
    %423 = arith.addf %421, %422 : vector<8x128xf32>
    %424 = math.tanh %423 : vector<8x128xf32>
    %425 = arith.mulf %420, %424 : vector<8x128xf32>
    %426 = vector.extract_strided_slice %28 {offsets = [32, 0], sizes = [8, 512], strides = [1, 1]} : vector<64x512xf32> to vector<8x512xf32>
    %427 = arith.truncf %425 : vector<8x128xf32> to vector<8x128xbf16>
    %cst_97 = arith.constant dense<0.000000e+00> : vector<8x512xf32>
    %428 = tpu.matmul %427, %309, %cst_97 {dimension_numbers = #tpu.dot_dimension_numbers<[1], [0], [0], [1], [0, 0, 1, 1], [], []>} : vector<8x128xbf16>, vector<128x512xbf16>, vector<8x512xf32> -> vector<8x512xf32>
    %429 = arith.addf %426, %428 : vector<8x512xf32>
    %430 = vector.extract_strided_slice %429 {offsets = [0, 0], sizes = [8, 128], strides = [1, 1]} : vector<8x512xf32> to vector<8x128xf32>
    %431 = arith.negf %430 : vector<8x128xf32>
    %432 = math.exp %431 : vector<8x128xf32>
    %cst_98 = arith.constant 1.000000e+00 : f32
    %433 = vector.broadcast %cst_98 : f32 to vector<8x128xf32>
    %434 = arith.addf %433, %432 : vector<8x128xf32>
    %435 = arith.divf %433, %434 : vector<8x128xf32>
    %436 = vector.extract_strided_slice %429 {offsets = [0, 128], sizes = [8, 128], strides = [1, 1]} : vector<8x512xf32> to vector<8x128xf32>
    %437 = arith.negf %436 : vector<8x128xf32>
    %438 = math.exp %437 : vector<8x128xf32>
    %cst_99 = arith.constant 1.000000e+00 : f32
    %439 = vector.broadcast %cst_99 : f32 to vector<8x128xf32>
    %440 = arith.addf %439, %438 : vector<8x128xf32>
    %441 = arith.divf %439, %440 : vector<8x128xf32>
    %442 = vector.extract_strided_slice %429 {offsets = [0, 256], sizes = [8, 128], strides = [1, 1]} : vector<8x512xf32> to vector<8x128xf32>
    %443 = math.tanh %442 : vector<8x128xf32>
    %444 = vector.extract_strided_slice %429 {offsets = [0, 384], sizes = [8, 128], strides = [1, 1]} : vector<8x512xf32> to vector<8x128xf32>
    %445 = arith.negf %444 : vector<8x128xf32>
    %446 = math.exp %445 : vector<8x128xf32>
    %cst_100 = arith.constant 1.000000e+00 : f32
    %447 = vector.broadcast %cst_100 : f32 to vector<8x128xf32>
    %448 = arith.addf %447, %446 : vector<8x128xf32>
    %449 = arith.divf %447, %448 : vector<8x128xf32>
    %450 = arith.mulf %441, %423 : vector<8x128xf32>
    %451 = arith.mulf %435, %443 : vector<8x128xf32>
    %452 = arith.addf %450, %451 : vector<8x128xf32>
    %453 = math.tanh %452 : vector<8x128xf32>
    %454 = arith.mulf %449, %453 : vector<8x128xf32>
    %455 = vector.extract_strided_slice %28 {offsets = [40, 0], sizes = [8, 512], strides = [1, 1]} : vector<64x512xf32> to vector<8x512xf32>
    %456 = arith.truncf %454 : vector<8x128xf32> to vector<8x128xbf16>
    %cst_101 = arith.constant dense<0.000000e+00> : vector<8x512xf32>
    %457 = tpu.matmul %456, %309, %cst_101 {dimension_numbers = #tpu.dot_dimension_numbers<[1], [0], [0], [1], [0, 0, 1, 1], [], []>} : vector<8x128xbf16>, vector<128x512xbf16>, vector<8x512xf32> -> vector<8x512xf32>
    %458 = arith.addf %455, %457 : vector<8x512xf32>
    %459 = vector.extract_strided_slice %458 {offsets = [0, 0], sizes = [8, 128], strides = [1, 1]} : vector<8x512xf32> to vector<8x128xf32>
    %460 = arith.negf %459 : vector<8x128xf32>
    %461 = math.exp %460 : vector<8x128xf32>
    %cst_102 = arith.constant 1.000000e+00 : f32
    %462 = vector.broadcast %cst_102 : f32 to vector<8x128xf32>
    %463 = arith.addf %462, %461 : vector<8x128xf32>
    %464 = arith.divf %462, %463 : vector<8x128xf32>
    %465 = vector.extract_strided_slice %458 {offsets = [0, 128], sizes = [8, 128], strides = [1, 1]} : vector<8x512xf32> to vector<8x128xf32>
    %466 = arith.negf %465 : vector<8x128xf32>
    %467 = math.exp %466 : vector<8x128xf32>
    %cst_103 = arith.constant 1.000000e+00 : f32
    %468 = vector.broadcast %cst_103 : f32 to vector<8x128xf32>
    %469 = arith.addf %468, %467 : vector<8x128xf32>
    %470 = arith.divf %468, %469 : vector<8x128xf32>
    %471 = vector.extract_strided_slice %458 {offsets = [0, 256], sizes = [8, 128], strides = [1, 1]} : vector<8x512xf32> to vector<8x128xf32>
    %472 = math.tanh %471 : vector<8x128xf32>
    %473 = vector.extract_strided_slice %458 {offsets = [0, 384], sizes = [8, 128], strides = [1, 1]} : vector<8x512xf32> to vector<8x128xf32>
    %474 = arith.negf %473 : vector<8x128xf32>
    %475 = math.exp %474 : vector<8x128xf32>
    %cst_104 = arith.constant 1.000000e+00 : f32
    %476 = vector.broadcast %cst_104 : f32 to vector<8x128xf32>
    %477 = arith.addf %476, %475 : vector<8x128xf32>
    %478 = arith.divf %476, %477 : vector<8x128xf32>
    %479 = arith.mulf %470, %452 : vector<8x128xf32>
    %480 = arith.mulf %464, %472 : vector<8x128xf32>
    %481 = arith.addf %479, %480 : vector<8x128xf32>
    %482 = math.tanh %481 : vector<8x128xf32>
    %483 = arith.mulf %478, %482 : vector<8x128xf32>
    %484 = vector.extract_strided_slice %28 {offsets = [48, 0], sizes = [8, 512], strides = [1, 1]} : vector<64x512xf32> to vector<8x512xf32>
    %485 = arith.truncf %483 : vector<8x128xf32> to vector<8x128xbf16>
    %cst_105 = arith.constant dense<0.000000e+00> : vector<8x512xf32>
    %486 = tpu.matmul %485, %309, %cst_105 {dimension_numbers = #tpu.dot_dimension_numbers<[1], [0], [0], [1], [0, 0, 1, 1], [], []>} : vector<8x128xbf16>, vector<128x512xbf16>, vector<8x512xf32> -> vector<8x512xf32>
    %487 = arith.addf %484, %486 : vector<8x512xf32>
    %488 = vector.extract_strided_slice %487 {offsets = [0, 0], sizes = [8, 128], strides = [1, 1]} : vector<8x512xf32> to vector<8x128xf32>
    %489 = arith.negf %488 : vector<8x128xf32>
    %490 = math.exp %489 : vector<8x128xf32>
    %cst_106 = arith.constant 1.000000e+00 : f32
    %491 = vector.broadcast %cst_106 : f32 to vector<8x128xf32>
    %492 = arith.addf %491, %490 : vector<8x128xf32>
    %493 = arith.divf %491, %492 : vector<8x128xf32>
    %494 = vector.extract_strided_slice %487 {offsets = [0, 128], sizes = [8, 128], strides = [1, 1]} : vector<8x512xf32> to vector<8x128xf32>
    %495 = arith.negf %494 : vector<8x128xf32>
    %496 = math.exp %495 : vector<8x128xf32>
    %cst_107 = arith.constant 1.000000e+00 : f32
    %497 = vector.broadcast %cst_107 : f32 to vector<8x128xf32>
    %498 = arith.addf %497, %496 : vector<8x128xf32>
    %499 = arith.divf %497, %498 : vector<8x128xf32>
    %500 = vector.extract_strided_slice %487 {offsets = [0, 256], sizes = [8, 128], strides = [1, 1]} : vector<8x512xf32> to vector<8x128xf32>
    %501 = math.tanh %500 : vector<8x128xf32>
    %502 = vector.extract_strided_slice %487 {offsets = [0, 384], sizes = [8, 128], strides = [1, 1]} : vector<8x512xf32> to vector<8x128xf32>
    %503 = arith.negf %502 : vector<8x128xf32>
    %504 = math.exp %503 : vector<8x128xf32>
    %cst_108 = arith.constant 1.000000e+00 : f32
    %505 = vector.broadcast %cst_108 : f32 to vector<8x128xf32>
    %506 = arith.addf %505, %504 : vector<8x128xf32>
    %507 = arith.divf %505, %506 : vector<8x128xf32>
    %508 = arith.mulf %499, %481 : vector<8x128xf32>
    %509 = arith.mulf %493, %501 : vector<8x128xf32>
    %510 = arith.addf %508, %509 : vector<8x128xf32>
    %511 = math.tanh %510 : vector<8x128xf32>
    %512 = arith.mulf %507, %511 : vector<8x128xf32>
    %513 = vector.extract_strided_slice %28 {offsets = [56, 0], sizes = [8, 512], strides = [1, 1]} : vector<64x512xf32> to vector<8x512xf32>
    %514 = arith.truncf %512 : vector<8x128xf32> to vector<8x128xbf16>
    %cst_109 = arith.constant dense<0.000000e+00> : vector<8x512xf32>
    %515 = tpu.matmul %514, %309, %cst_109 {dimension_numbers = #tpu.dot_dimension_numbers<[1], [0], [0], [1], [0, 0, 1, 1], [], []>} : vector<8x128xbf16>, vector<128x512xbf16>, vector<8x512xf32> -> vector<8x512xf32>
    %516 = arith.addf %513, %515 : vector<8x512xf32>
    %517 = vector.extract_strided_slice %516 {offsets = [0, 0], sizes = [8, 128], strides = [1, 1]} : vector<8x512xf32> to vector<8x128xf32>
    %518 = arith.negf %517 : vector<8x128xf32>
    %519 = math.exp %518 : vector<8x128xf32>
    %cst_110 = arith.constant 1.000000e+00 : f32
    %520 = vector.broadcast %cst_110 : f32 to vector<8x128xf32>
    %521 = arith.addf %520, %519 : vector<8x128xf32>
    %522 = arith.divf %520, %521 : vector<8x128xf32>
    %523 = vector.extract_strided_slice %516 {offsets = [0, 128], sizes = [8, 128], strides = [1, 1]} : vector<8x512xf32> to vector<8x128xf32>
    %524 = arith.negf %523 : vector<8x128xf32>
    %525 = math.exp %524 : vector<8x128xf32>
    %cst_111 = arith.constant 1.000000e+00 : f32
    %526 = vector.broadcast %cst_111 : f32 to vector<8x128xf32>
    %527 = arith.addf %526, %525 : vector<8x128xf32>
    %528 = arith.divf %526, %527 : vector<8x128xf32>
    %529 = vector.extract_strided_slice %516 {offsets = [0, 256], sizes = [8, 128], strides = [1, 1]} : vector<8x512xf32> to vector<8x128xf32>
    %530 = math.tanh %529 : vector<8x128xf32>
    %531 = vector.extract_strided_slice %516 {offsets = [0, 384], sizes = [8, 128], strides = [1, 1]} : vector<8x512xf32> to vector<8x128xf32>
    %532 = arith.negf %531 : vector<8x128xf32>
    %533 = math.exp %532 : vector<8x128xf32>
    %cst_112 = arith.constant 1.000000e+00 : f32
    %534 = vector.broadcast %cst_112 : f32 to vector<8x128xf32>
    %535 = arith.addf %534, %533 : vector<8x128xf32>
    %536 = arith.divf %534, %535 : vector<8x128xf32>
    %537 = arith.mulf %528, %510 : vector<8x128xf32>
    %538 = arith.mulf %522, %530 : vector<8x128xf32>
    %539 = arith.addf %537, %538 : vector<8x128xf32>
    %540 = math.tanh %539 : vector<8x128xf32>
    %541 = arith.mulf %536, %540 : vector<8x128xf32>
    %542 = tpu.concatenate %338, %367, %396, %425, %454, %483, %512, %541 in 0 : vector<8x128xf32>, vector<8x128xf32>, vector<8x128xf32>, vector<8x128xf32>, vector<8x128xf32>, vector<8x128xf32>, vector<8x128xf32>, vector<8x128xf32> -> vector<64x128xf32>
    %c0_113 = arith.constant 0 : index
    %c0_114 = arith.constant 0 : index
    %543 = vector.load %arg18[%c0_113, %c0_114] : memref<128x128xbf16, #tpu.memory_space<vmem>>, vector<128x128xbf16>
    %544 = arith.truncf %542 : vector<64x128xf32> to vector<64x128xbf16>
    %cst_115 = arith.constant dense<0.000000e+00> : vector<64x128xf32>
    %545 = tpu.matmul %544, %543, %cst_115 {dimension_numbers = #tpu.dot_dimension_numbers<[1], [0], [0], [1], [0, 0, 1, 1], [], []>} : vector<64x128xbf16>, vector<128x128xbf16>, vector<64x128xf32> -> vector<64x128xf32>
    %c0_116 = arith.constant 0 : index
    %c0_117 = arith.constant 0 : index
    %546 = vector.load %arg19[%c0_116, %c0_117] : memref<1x128xf32, #tpu.memory_space<vmem>>, vector<1x128xf32>
    %547 = vector.broadcast %546 : vector<1x128xf32> to vector<64x128xf32>
    %548 = arith.addf %545, %547 : vector<64x128xf32>
    %c0_118 = arith.constant 0 : index
    %c0_119 = arith.constant 0 : index
    %549 = vector.load %arg21[%c0_118, %c0_119] : memref<64x128xf32, #tpu.memory_space<vmem>>, vector<64x128xf32>
    tpu.vector_store %arg21[%c0_118, %c0_119], %548 {strides = array<i32>} : memref<64x128xf32, #tpu.memory_space<vmem>>, vector<64x128xf32>,
    return
  }
}

</mosaic_0001>

<bundles_post_ra>
// kernel: smiles_vae_forward.1
= control target key start
LH: loop header
LB: loop body
LE: loop exit
PB: predicated region body
PF: predicated region fallthrough
CT: control target
= control target key end

     0   :  { %s6969_s0 = inlined_call_operand.vmem [shape: s32[64,1], index: 0, kind: input, shape index: {}]   ;;  %s6970_s1 = inlined_call_operand.vmem [shape: s32[64,1], index: 1, kind: input, shape index: {}]   ;;  %s6971_s2 = inlined_call_operand.hbm [shape: bf16[32,128], index: 2, kind: input, shape index: {}]   ;;  %s6972_s3 = inlined_call_operand.hbm [shape: bf16[128,512], index: 3, kind: input, shape index: {}]   ;;  %s6973_s4 = inlined_call_operand.hbm [shape: bf16[128,512], index: 4, kind: input, shape index: {}]   ;;  %s6974_s5 = inlined_call_operand.hbm [shape: f32[1,512], index: 5, kind: input, shape index: {}]   ;;  %s6975_s6 = inlined_call_operand.vmem [shape: bf16[128,128], index: 6, kind: input, shape index: {}]   ;;  %s6976_s7 = inlined_call_operand.hbm [shape: f32[1,128], index: 7, kind: input, shape index: {}]   ;;  %s6977_s8 = inlined_call_operand.vmem [shape: bf16[128,128], index: 8, kind: input, shape index: {}]   ;;  %s6978_s9 = inlined_call_operand.hbm [shape: f32[1,128], index: 9, kind: input, shape index: {}]   ;;  %s6979_s10 = inlined_call_operand.vmem [shape: bf16[128,128], index: 10, kind: input, shape index: {}]   ;;  %s6980_s11 = inlined_call_operand.hbm [shape: f32[1,128], index: 11, kind: input, shape index: {}]   ;;  %s6981_s12 = inlined_call_operand.vmem [shape: f32[8,64], index: 12, kind: input, shape index: {}]   ;;  %s6982_s13 = inlined_call_operand.vmem [shape: bf16[64,256], index: 13, kind: input, shape index: {}]   ;;  %s6983_s14 = inlined_call_operand.hbm [shape: f32[1,256], index: 14, kind: input, shape index: {}]   ;;  %s6984_s15 = inlined_call_operand.hbm [shape: bf16[128,512], index: 15, kind: input, shape index: {}]   ;;  %s6985_s16 = inlined_call_operand.hbm [shape: bf16[128,512], index: 16, kind: input, shape index: {}]   ;;  %s6986_s17 = inlined_call_operand.hbm [shape: f32[1,512], index: 17, kind: input, shape index: {}]   ;;  %s6987_s18 = inlined_call_operand.hbm [shape: bf16[128,128], index: 18, kind: input, shape index: {}]   ;;  %s6988_s19 = inlined_call_operand.hbm [shape: f32[1,128], index: 19, kind: input, shape index: {}]   ;;  %s6989_s20 = inlined_call_operand.vmem [shape: f32[8,128], index: 20, kind: output, shape index: {0}]   ;;  %s6990_s21 = inlined_call_operand.vmem [shape: f32[64,128], index: 21, kind: output, shape index: {1}]  }
   0x1   :  { %7010 = sst [smem:[#allocation87_spill]] %s6969_s0 }
   0x2   :  { %7011 = sst [smem:[#allocation88_spill]] %s6970_s1 }
   0x3   :  { %7012 = sst [smem:[#allocation89_spill]] %s6971_s2 }
   0x4   :  { %7013 = sst [smem:[#allocation90_spill]] %s6972_s3 }
   0x5   :  { %7014 = sst [smem:[#allocation91_spill]] %s6973_s4 }
   0x6   :  { %7015 = sst [smem:[#allocation92_spill]] %s6974_s5 }
   0x7   :  { %7016 = sst [smem:[#allocation93_spill]] %s6982_s13 }
   0x8   :  { %7017 = sst [smem:[#allocation94_spill]] %s6989_s20 }
   0x9   :  { %7018 = sst [smem:[#allocation95_spill]] %s6990_s21 }
   0xa   :  { %27 = vsyncpa [#allocation3], 0 }
   0xb   :  { %28 = vsyncpa [#allocation5], 0 }
   0xc   :  { %29 = vsyncpa [#allocation8], 0 }
   0xd   :  { %30 = vsyncpa [#allocation11], 0 }
   0xe   :  { %31 = vsyncpa [#allocation14], 0 }
   0xf   :  { %32 = vsyncpa [#allocation17], 0 }
  0x10   :  { %33 = vsyncpa [#allocation20], 0  ;;  %s5321_s2 = smov [#allocation4]   ;;  %s7019_s3 = sld [smem:[#allocation90_spill]] }
  0x11   :  { %s55_s25 = sshll.u32 %s5321_s2, 4  ;;  %s56_s25 = int_to_ptr.vmem [resolvable:$true] %s55_s25 }
  0x16   :  { %s5021_s28 = scalar_lea.hbm %s7019_s3, 4096 }
  0x17   :  { %p5022_p0 = scmp.ne.s32.totalorder %s7019_s3, %s5021_s28  ;;  %p5025_p1 = scmp.lt.u32.totalorder %s5021_s28, %s7019_s3 }
  0x19   :  { %p5027_p2 = pnand %p5025_p1, %p5022_p0 }
  0x1b   :  { %5030 = shalt.err (!%p5027_p2)
}
  0x1c   :  { %s5031_s5 = scalar_lea.vmem %s56_s25, 4096  ;;  %p5036_p4 = scmp.lt.s32.totalorder %s56_s25, %s56_s25 }
  0x1d   :  { %p5032_p3 = scmp.ne.s32.totalorder %s56_s25, %s5031_s5  ;;  %p5037_p5 = scmp.lt.s32.totalorder %s5031_s5, %s5031_s5 }
  0x1f   :  { %p5038_p6 = por %p5037_p5, %p5036_p4 }
  0x21   :  { %p5039_p7 = pnand %p5038_p6, %p5032_p3 }
  0x23   :  { %5042 = shalt.err (!%p5039_p7)
}
  0x24   :  { %s5322_s22 = smov 256   ;;  %s5323_s23 = smov 16  }
  0x25   :  { %61 = dma.hbm_to_vmem [thread:$0]  %s7019_s3, 4096, %s56_s25, [#allocation5], %s5322_s22, %s5322_s22, %s5323_s23  }
  0x26   :  { %s5324_s2 = smov [#allocation7]   ;;  %s5325_s27 = smov [#allocation10]  }
  0x27   :  { %s80_s26 = sshll.u32 %s5324_s2, 4  ;;  %s104_s28 = sshll.u32 %s5325_s27, 4  ;;  %s81_s26 = int_to_ptr.vmem [resolvable:$true] %s80_s26  ;;  %s105_s28 = int_to_ptr.vmem [resolvable:$true] %s104_s28 }
  0x28   :  { %s7020_s4 = sld [smem:[#allocation92_spill]] }
  0x2e   :  { %s5043_s30 = scalar_lea.hbm %s7020_s4, 64 }
  0x2f   :  { %p5044_p8 = scmp.ne.s32.totalorder %s7020_s4, %s5043_s30  ;;  %p5047_p9 = scmp.lt.u32.totalorder %s5043_s30, %s7020_s4 }
  0x31   :  { %p5049_p10 = pnand %p5047_p9, %p5044_p8 }
  0x33   :  { %5052 = shalt.err (!%p5049_p10)
}
  0x34   :  { %s5053_s25 = scalar_lea.vmem %s81_s26, 64  ;;  %p5058_p12 = scmp.lt.s32.totalorder %s81_s26, %s81_s26 }
  0x35   :  { %p5054_p11 = scmp.ne.s32.totalorder %s81_s26, %s5053_s25  ;;  %p5059_p13 = scmp.lt.s32.totalorder %s5053_s25, %s5053_s25 }
  0x37   :  { %p5060_p0 = por %p5059_p13, %p5058_p12 }
  0x39   :  { %p5061_p1 = pnand %p5060_p0, %p5054_p11 }
  0x3b   :  { %5064 = shalt.err (!%p5061_p1)
}
  0x3c   :  { %83 = dma.hbm_to_vmem [thread:$0]  %s7020_s4, 64, %s81_s26, [#allocation8]  }
  0x3d   :  { %s5065_s2 = scalar_lea.hbm %s6978_s9, 16 }
  0x3e   :  { %p5066_p2 = scmp.ne.s32.totalorder %s6978_s9, %s5065_s2  ;;  %p5069_p3 = scmp.lt.u32.totalorder %s5065_s2, %s6978_s9 }
  0x40   :  { %p5071_p4 = pnand %p5069_p3, %p5066_p2 }
  0x42   :  { %5074 = shalt.err (!%p5071_p4)
}
  0x43   :  { %s5075_s0 = scalar_lea.vmem %s105_s28, 16  ;;  %s5079_s30 = scalar_lea.vmem %s105_s28, 32 }
  0x44   :  { %p5076_p5 = scmp.ne.s32.totalorder %s105_s28, %s5075_s0  ;;  %p5080_p6 = scmp.lt.s32.totalorder %s105_s28, %s105_s28 }
  0x45   :  { %p5081_p7 = scmp.lt.s32.totalorder %s5079_s30, %s5075_s0 }
  0x47   :  { %p5082_p8 = por %p5081_p7, %p5080_p6 }
  0x49   :  { %p5083_p9 = pnand %p5082_p8, %p5076_p5 }
  0x4b   :  { %5086 = shalt.err (!%p5083_p9)
}
  0x4c   :  { %107 = dma.hbm_to_vmem [thread:$0]  %s6978_s9, 16, %s105_s28, [#allocation11]  }
  0x4d   :  { %s5326_s5 = smov [#allocation13]   ;;  %s5327_s3 = smov [#allocation16]  }
  0x4e   :  { %s130_s25 = sshll.u32 %s5326_s5, 4  ;;  %s151_s1 = sshll.u32 %s5327_s3, 4  ;;  %s131_s25 = int_to_ptr.vmem [resolvable:$true] %s130_s25  ;;  %s152_s1 = int_to_ptr.vmem [resolvable:$true] %s151_s1 }
  0x4f   :  { %s5087_s2 = scalar_lea.hbm %s6983_s14, 32 }
  0x50   :  { %p5088_p10 = scmp.ne.s32.totalorder %s6983_s14, %s5087_s2  ;;  %p5091_p11 = scmp.lt.u32.totalorder %s5087_s2, %s6983_s14 }
  0x52   :  { %p5093_p12 = pnand %p5091_p11, %p5088_p10 }
  0x54   :  { %5096 = shalt.err (!%p5093_p12)
}
  0x55   :  { %s5097_s9 = scalar_lea.vmem %s131_s25, 32  ;;  %p5102_p0 = scmp.lt.s32.totalorder %s131_s25, %s131_s25 }
  0x56   :  { %p5098_p13 = scmp.ne.s32.totalorder %s131_s25, %s5097_s9  ;;  %p5103_p1 = scmp.lt.s32.totalorder %s5097_s9, %s5097_s9 }
  0x58   :  { %p5104_p2 = por %p5103_p1, %p5102_p0 }
  0x5a   :  { %p5105_p3 = pnand %p5104_p2, %p5098_p13 }
  0x5c   :  { %5108 = shalt.err (!%p5105_p3)
}
  0x5d   :  { %133 = dma.hbm_to_vmem [thread:$0]  %s6983_s14, 32, %s131_s25, [#allocation14]  }
  0x5e   :  { %s5109_s4 = scalar_lea.hbm %s6985_s16, 4096 }
  0x5f   :  { %p5110_p4 = scmp.ne.s32.totalorder %s6985_s16, %s5109_s4  ;;  %p5113_p5 = scmp.lt.u32.totalorder %s5109_s4, %s6985_s16 }
  0x61   :  { %p5115_p6 = pnand %p5113_p5, %p5110_p4 }
  0x63   :  { %5118 = shalt.err (!%p5115_p6)
}
  0x64   :  { %s5119_s2 = scalar_lea.vmem %s152_s1, 4096  ;;  %p5124_p8 = scmp.lt.s32.totalorder %s152_s1, %s152_s1 }
  0x65   :  { %p5120_p7 = scmp.ne.s32.totalorder %s152_s1, %s5119_s2  ;;  %p5125_p9 = scmp.lt.s32.totalorder %s5119_s2, %s5119_s2 }
  0x67   :  { %p5126_p10 = por %p5125_p9, %p5124_p8 }
  0x69   :  { %p5127_p11 = pnand %p5126_p10, %p5120_p7 }
  0x6b   :  { %5130 = shalt.err (!%p5127_p11)
}
  0x6c   :  { %157 = dma.hbm_to_vmem [thread:$0]  %s6985_s16, 4096, %s152_s1, [#allocation17], %s5322_s22, %s5322_s22, %s5323_s23  }
  0x6d   :  { %s5328_s13 = smov [#allocation19]   ;;  %s5329_s27 = smov [#allocation2]  }
  0x6e   :  { %s173_s20 = sshll.u32 %s5328_s13, 4  ;;  %s43_s29 = sshll.u32 %s5329_s27, 4  ;;  %s174_s20 = int_to_ptr.vmem [resolvable:$true] %s173_s20  ;;  %s44_s29 = int_to_ptr.vmem [resolvable:$true] %s43_s29 }
  0x6f   :  { %s5131_s0 = scalar_lea.hbm %s6987_s18, 1024 }
  0x70   :  { %p5132_p12 = scmp.ne.s32.totalorder %s6987_s18, %s5131_s0  ;;  %p5135_p13 = scmp.lt.u32.totalorder %s5131_s0, %s6987_s18 }
  0x72   :  { %p5137_p0 = pnand %p5135_p13, %p5132_p12 }
  0x74   :  { %5140 = shalt.err (!%p5137_p0)
}
  0x75   :  { %s5141_s16 = scalar_lea.vmem %s174_s20, 1024  ;;  %p5146_p2 = scmp.lt.s32.totalorder %s174_s20, %s174_s20 }
  0x76   :  { %p5142_p1 = scmp.ne.s32.totalorder %s174_s20, %s5141_s16  ;;  %p5147_p3 = scmp.lt.s32.totalorder %s5141_s16, %s5141_s16 }
  0x78   :  { %p5148_p4 = por %p5147_p3, %p5146_p2 }
  0x7a   :  { %p5149_p5 = pnand %p5148_p4, %p5142_p1 }
  0x7c   :  { %5152 = shalt.err (!%p5149_p5)
}
  0x7d   :  { %s5330_s1 = smov 64   ;;  %s5331_s3 = smov 4  }
  0x7e   :  { %179 = dma.hbm_to_vmem [thread:$0]  %s6987_s18, 1024, %s174_s20, [#allocation20], %s5330_s1, %s5330_s1, %s5331_s3  }
  0x7f   :  { %s7021_s25 = sld [smem:[#allocation89_spill]] }
  0x85   :  { %s5153_s13 = scalar_lea.hbm %s7021_s25, 256 }
  0x86   :  { %p5154_p6 = scmp.ne.s32.totalorder %s7021_s25, %s5153_s13  ;;  %p5157_p7 = scmp.lt.u32.totalorder %s5153_s13, %s7021_s25 }
  0x88   :  { %p5159_p8 = pnand %p5157_p7, %p5154_p6 }
  0x8a   :  { %5162 = shalt.err (!%p5159_p8)
}
  0x8b   :  { %s5163_s30 = scalar_lea.vmem %s44_s29, 256  ;;  %p5168_p10 = scmp.lt.s32.totalorder %s44_s29, %s44_s29 }
  0x8c   :  { %p5164_p9 = scmp.ne.s32.totalorder %s44_s29, %s5163_s30  ;;  %p5169_p11 = scmp.lt.s32.totalorder %s5163_s30, %s5163_s30 }
  0x8e   :  { %p5170_p12 = por %p5169_p11, %p5168_p10 }
  0x90   :  { %p5171_p13 = pnand %p5170_p12, %p5164_p9 }
  0x92   :  { %5174 = shalt.err (!%p5171_p13)
}
  0x93   :  { %49 = dma.hbm_to_vmem [thread:$0]  %s7021_s25, 256, %s44_s29, [#allocation3], %s5330_s1, %s5330_s1, %s5331_s3  }
  0x94   :  { %s5332_s26 = smov [#allocation6]   ;;  %s5333_s5 = smov [#allocation9]  }
  0x95   :  { %s67_s4 = sshll.u32 %s5332_s26, 4  ;;  %s92_s16 = sshll.u32 %s5333_s5, 4  ;;  %s68_s4 = int_to_ptr.vmem [resolvable:$true] %s67_s4  ;;  %s93_s16 = int_to_ptr.vmem [resolvable:$true] %s92_s16 }
  0x96   :  { %s7022_s2 = sld [smem:[#allocation91_spill]] }
  0x9c   :  { %s5175_s14 = scalar_lea.hbm %s7022_s2, 4096 }
  0x9d   :  { %p5176_p0 = scmp.ne.s32.totalorder %s7022_s2, %s5175_s14  ;;  %p5179_p1 = scmp.lt.u32.totalorder %s5175_s14, %s7022_s2 }
  0x9f   :  { %p5181_p2 = pnand %p5179_p1, %p5176_p0 }
  0xa1   :  { %5184 = shalt.err (!%p5181_p2)
}
  0xa2   :  { %s5185_s29 = scalar_lea.vmem %s68_s4, 4096  ;;  %p5190_p4 = scmp.lt.s32.totalorder %s68_s4, %s68_s4 }
  0xa3   :  { %p5186_p3 = scmp.ne.s32.totalorder %s68_s4, %s5185_s29  ;;  %p5191_p5 = scmp.lt.s32.totalorder %s5185_s29, %s5185_s29 }
  0xa5   :  { %p5192_p6 = por %p5191_p5, %p5190_p4 }
  0xa7   :  { %p5193_p7 = pnand %p5192_p6, %p5186_p3 }
  0xa9   :  { %5196 = shalt.err (!%p5193_p7)
}
  0xaa   :  { %73 = dma.hbm_to_vmem [thread:$0]  %s7022_s2, 4096, %s68_s4, [#allocation5], %s5322_s22, %s5322_s22, %s5323_s23  }
  0xab   :  { %s5197_s18 = scalar_lea.hbm %s6976_s7, 16 }
  0xac   :  { %p5198_p8 = scmp.ne.s32.totalorder %s6976_s7, %s5197_s18  ;;  %p5201_p9 = scmp.lt.u32.totalorder %s5197_s18, %s6976_s7 }
  0xae   :  { %p5203_p10 = pnand %p5201_p9, %p5198_p8 }
  0xb0   :  { %5206 = shalt.err (!%p5203_p10)
}
  0xb1   :  { %s5207_s24 = scalar_lea.vmem %s93_s16, 16  ;;  %s5211_s14 = scalar_lea.vmem %s93_s16, 32 }
  0xb2   :  { %p5208_p11 = scmp.ne.s32.totalorder %s93_s16, %s5207_s24  ;;  %p5212_p12 = scmp.lt.s32.totalorder %s93_s16, %s93_s16 }
  0xb3   :  { %p5213_p13 = scmp.lt.s32.totalorder %s5211_s14, %s5207_s24 }
  0xb5   :  { %p5214_p0 = por %p5213_p13, %p5212_p12 }
  0xb7   :  { %p5215_p1 = pnand %p5214_p0, %p5208_p11 }
  0xb9   :  { %5218 = shalt.err (!%p5215_p1)
}
  0xba   :  { %95 = dma.hbm_to_vmem [thread:$0]  %s6976_s7, 16, %s93_s16, [#allocation8]  }
  0xbb   :  { %s5334_s13 = smov [#allocation12]   ;;  %s5335_s9 = smov [#allocation15]  }
  0xbc   :  { %s116_s27 = sshll.u32 %s5334_s13, 4  ;;  %s139_s28 = sshll.u32 %s5335_s9, 4  ;;  %s117_s27 = int_to_ptr.vmem [resolvable:$true] %s116_s27  ;;  %s140_s28 = int_to_ptr.vmem [resolvable:$true] %s139_s28 }
  0xbd   :  { %s5219_s25 = scalar_lea.hbm %s6980_s11, 16 }
  0xbe   :  { %p5220_p2 = scmp.ne.s32.totalorder %s6980_s11, %s5219_s25  ;;  %p5223_p3 = scmp.lt.u32.totalorder %s5219_s25, %s6980_s11 }
  0xc0   :  { %p5225_p4 = pnand %p5223_p3, %p5220_p2 }
  0xc2   :  { %5228 = shalt.err (!%p5225_p4)
}
  0xc3   :  { %s5229_s7 = scalar_lea.vmem %s117_s27, 16  ;;  %s5233_s16 = scalar_lea.vmem %s117_s27, 32 }
  0xc4   :  { %p5230_p5 = scmp.ne.s32.totalorder %s117_s27, %s5229_s7  ;;  %p5234_p6 = scmp.lt.s32.totalorder %s117_s27, %s117_s27 }
  0xc5   :  { %p5235_p7 = scmp.lt.s32.totalorder %s5233_s16, %s5229_s7 }
  0xc7   :  { %p5236_p8 = por %p5235_p7, %p5234_p6 }
  0xc9   :  { %p5237_p9 = pnand %p5236_p8, %p5230_p5 }
  0xcb   :  { %5240 = shalt.err (!%p5237_p9)
}
  0xcc   :  { %119 = dma.hbm_to_vmem [thread:$0]  %s6980_s11, 16, %s117_s27, [#allocation11]  }
  0xcd   :  { %s5241_s14 = scalar_lea.hbm %s6984_s15, 4096 }
  0xce   :  { %p5242_p10 = scmp.ne.s32.totalorder %s6984_s15, %s5241_s14  ;;  %p5245_p11 = scmp.lt.u32.totalorder %s5241_s14, %s6984_s15 }
  0xd0   :  { %p5247_p12 = pnand %p5245_p11, %p5242_p10 }
  0xd2   :  { %5250 = shalt.err (!%p5247_p12)
}
  0xd3   :  { %s5251_s29 = scalar_lea.vmem %s140_s28, 4096  ;;  %p5256_p0 = scmp.lt.s32.totalorder %s140_s28, %s140_s28 }
  0xd4   :  { %p5252_p13 = scmp.ne.s32.totalorder %s140_s28, %s5251_s29  ;;  %p5257_p1 = scmp.lt.s32.totalorder %s5251_s29, %s5251_s29 }
  0xd6   :  { %p5258_p2 = por %p5257_p1, %p5256_p0 }
  0xd8   :  { %p5259_p3 = pnand %p5258_p2, %p5252_p13 }
  0xda   :  { %5262 = shalt.err (!%p5259_p3)
}
  0xdb   :  { %145 = dma.hbm_to_vmem [thread:$0]  %s6984_s15, 4096, %s140_s28, [#allocation14], %s5322_s22, %s5322_s22, %s5323_s23  }
  0xdc   :  { %s5336_s3 = smov [#allocation18]   ;;  %s5337_s0 = smov [#allocation21]  }
  0xdd   :  { %s164_s25 = sshll.u32 %s5336_s3, 4  ;;  %s186_s30 = sshll.u32 %s5337_s0, 4  ;;  %s165_s25 = int_to_ptr.vmem [resolvable:$true] %s164_s25  ;;  %s187_s30 = int_to_ptr.vmem [resolvable:$true] %s186_s30 }
  0xde   :  { %s5263_s7 = scalar_lea.hbm %s6986_s17, 64 }
  0xdf   :  { %p5264_p4 = scmp.ne.s32.totalorder %s6986_s17, %s5263_s7  ;;  %p5267_p5 = scmp.lt.u32.totalorder %s5263_s7, %s6986_s17 }
  0xe1   :  { %p5269_p6 = pnand %p5267_p5, %p5264_p4 }
  0xe3   :  { %5272 = shalt.err (!%p5269_p6)
}
  0xe4   :  { %s5273_s15 = scalar_lea.vmem %s165_s25, 64  ;;  %p5278_p8 = scmp.lt.s32.totalorder %s165_s25, %s165_s25 }
  0xe5   :  { %p5274_p7 = scmp.ne.s32.totalorder %s165_s25, %s5273_s15  ;;  %p5279_p9 = scmp.lt.s32.totalorder %s5273_s15, %s5273_s15 }
  0xe7   :  { %p5280_p10 = por %p5279_p9, %p5278_p8 }
  0xe9   :  { %p5281_p11 = pnand %p5280_p10, %p5274_p7 }
  0xeb   :  { %5284 = shalt.err (!%p5281_p11)
}
  0xec   :  { %167 = dma.hbm_to_vmem [thread:$0]  %s6986_s17, 64, %s165_s25, [#allocation17]  }
  0xed   :  { %s5285_s14 = scalar_lea.hbm %s6988_s19, 16 }
  0xee   :  { %p5286_p12 = scmp.ne.s32.totalorder %s6988_s19, %s5285_s14  ;;  %p5289_p13 = scmp.lt.u32.totalorder %s5285_s14, %s6988_s19 }
  0xf0   :  { %p5291_p0 = pnand %p5289_p13, %p5286_p12 }
  0xf2   :  { %5294 = shalt.err (!%p5291_p0)
}
  0xf3   :  { %s5295_s29 = scalar_lea.vmem %s187_s30, 16  ;;  %s5299_s11 = scalar_lea.vmem %s187_s30, 32 }
  0xf4   :  { %p5296_p1 = scmp.ne.s32.totalorder %s187_s30, %s5295_s29  ;;  %p5300_p2 = scmp.lt.s32.totalorder %s187_s30, %s187_s30 }
  0xf5   :  { %p5301_p3 = scmp.lt.s32.totalorder %s5299_s11, %s5295_s29 }
  0xf7   :  { %p5302_p4 = por %p5301_p3, %p5300_p2 }
  0xf9   :  { %p5303_p5 = pnand %p5302_p4, %p5296_p1 }
  0xfb   :  { %5306 = shalt.err (!%p5303_p5)
}
  0xfc   :  { %189 = dma.hbm_to_vmem [thread:$0]  %s6988_s19, 16, %s187_s30, [#allocation20]  }
  0xfd   :  { %5307 = dma.done.wait [#allocation3], 256  }
  0xfe   :  { %5308 = vsyncadd [#allocation3], 4294967040 }
  0xff   :  { %5309 = dma.done.wait [#allocation5], 8192  }
 0x100   :  { %5310 = vsyncadd [#allocation5], 4294959104 }
 0x101   :  { %5311 = dma.done.wait [#allocation8], 80  }
 0x102   :  { %5312 = vsyncadd [#allocation8], 4294967216 }
 0x103   :  { %5313 = dma.done.wait [#allocation11], 32  }
 0x104   :  { %5314 = vsyncadd [#allocation11], 4294967264 }
 0x105   :  { %5315 = dma.done.wait [#allocation14], 4128  }
 0x106   :  { %5316 = vsyncadd [#allocation14], 4294963168 }
 0x107   :  { %5317 = dma.done.wait [#allocation17], 4160  }
 0x108   :  { %5318 = vsyncadd [#allocation17], 4294963136 }
 0x109   :  { %5319 = dma.done.wait [#allocation20], 1040  }
 0x10a   :  { %5320 = vsyncadd [#allocation20], 4294966256  ;;  %v7003_v0 = vmov 0   ;;  %s7023_s25 = sld [smem:[#allocation87_spill]]  ;;  %v5644_v7 = vld [vmem:[#allocation2] sm:$0xff]   ;;  %v5646_v8 = vld [vmem:[#allocation2 + $0x8] sm:$0xff]   ;;  %v242_v34 = vlaneseq }
 0x10b   :  { %4471 = vset.pattern.permute.xlu1 %v7003_v0  ;;  %4470 = vset.pattern.permute.xlu0 %v7003_v0  ;;  %s7024_s2 = sld [smem:[#allocation88_spill]]  ;;  %v4476_v19 = vld [vmem:[#allocation4 + $0x4] ss:$16 sps:$4 sm:$0xff]   ;;  %v4477_v20 = vld [vmem:[#allocation4 + $0xc] ss:$16 sps:$4 sm:$0xff]   ;;  %vm308_vm4 = vcmask 261120  }
 0x10c   :  { %709 = vmatprep.mubr.bf16.mxu0 %v7003_v0  ;;  %4342 = vmatprep.subr.bf16.mxu1 %v5644_v7  ;;  %v4479_v21 = vld [vmem:[#allocation4 + $0x8] ss:$16 sps:$4 sm:$0xff]   ;;  %v4483_v22 = vld [vmem:[#allocation4 + $0x2c] ss:$16 sps:$4 sm:$0xff]   ;;  %v5683_v35 = vand.u32 127, %v242_v34  ;;  %v6999_v40 = vmov 0.0  }
 0x10d   :  { %4343 = vmatpush3.bf16.msra.mxu1 %v5644_v7  ;;  %677 = vmatprep.subr.bf16.mxu0 %v4477_v20  ;;  %v4485_v23 = vld [vmem:[#allocation4 + $0x28] ss:$16 sps:$4 sm:$0xff]   ;;  %v4489_v24 = vld [vmem:[#allocation4 + $0x4c] ss:$16 sps:$4 sm:$0xff]   ;;  %v4474_v47 = vld [vmem:[#allocation4] ss:$16 sps:$4 sm:$0xff]  }
 0x10e   :  { %4344 = vmatprep.subr.bf16.mxu1 %v5646_v8  ;;  %678 = vmatpush1.bf16.msra.mxu0 %v4479_v21  ;;  %v4491_v25 = vld [vmem:[#allocation4 + $0x48] ss:$16 sps:$4 sm:$0xff]   ;;  %v4495_v26 = vld [vmem:[#allocation4 + $0x6c] ss:$16 sps:$4 sm:$0xff]   ;;  %v4482_v50 = vld [vmem:[#allocation4 + $0x24] ss:$16 sps:$4 sm:$0xff]  }
 0x10f   :  { %679 = vmatprep.subr.bf16.mxu0 %v4483_v22  ;;  %v4497_v27 = vld [vmem:[#allocation4 + $0x68] ss:$16 sps:$4 sm:$0xff]   ;;  %v4501_v28 = vld [vmem:[#allocation4 + $0x8c] ss:$16 sps:$4 sm:$0xff]   ;;  %v4480_v54 = vld [vmem:[#allocation4 + $0x20] ss:$16 sps:$4 sm:$0xff]  }
 0x110   :  { %v236_v1 = vld [vmem:[%s7023_s25 + $0x10] sm:$0xff]  ;;  %v234_v2 = vld [vmem:[%s7023_s25] sm:$0xff]  ;;  %v237_v3 = vld [vmem:[%s7023_s25 + $0x18] sm:$0xff]  ;;  %s7108_s0 = sld [smem:[#allocation93_spill]]  ;;  %s7109_s28 = sld [smem:[#allocation94_spill]] }
 0x111   :  { %251 = vperm.xlu1 %4471, %v236_v1   ;;  %245 = vperm.xlu0 %4470, %v234_v2   ;;  %v235_v4 = vld [vmem:[%s7023_s25 + $0x8] sm:$0xff]  ;;  %v238_v6 = vld [vmem:[%s7023_s25 + $0x20] sm:$0xff]  ;;  %v241_v9 = vld [vmem:[%s7023_s25 + $0x38] sm:$0xff]  ;;  %s7147_s9 = sld [smem:[#allocation95_spill]] }
 0x112   :  { %v239_v5 = vld [vmem:[%s7023_s25 + $0x28] sm:$0xff]  ;;  %v240_v10 = vld [vmem:[%s7023_s25 + $0x30] sm:$0xff]  ;;  %v750_v12 = vld [vmem:[%s7024_s2] sm:$0xff]  ;;  %4345 = vmatpush3.bf16.msra.mxu1 %v5646_v8  ;;  %680 = vmatpush1.bf16.msra.mxu0 %v4485_v23 }
 0x113   :  { %v751_v11 = vld [vmem:[%s7024_s2 + $0x8] sm:$0xff]  ;;  %v753_v13 = vld [vmem:[%s7024_s2 + $0x18] sm:$0xff]  ;;  %v752_v14 = vld [vmem:[%s7024_s2 + $0x10] sm:$0xff]  ;;  %604 = vmatprep.subr.bf16.mxu1 %v4476_v19  ;;  %681 = vmatprep.subr.bf16.mxu0 %v4489_v24 }
 0x114   :  { %v755_v15 = vld [vmem:[%s7024_s2 + $0x28] sm:$0xff]  ;;  %v754_v16 = vld [vmem:[%s7024_s2 + $0x20] sm:$0xff]  ;;  %v757_v17 = vld [vmem:[%s7024_s2 + $0x38] sm:$0xff] }
 0x115   :  { %254 = vperm.xlu1 %4471, %v237_v3   ;;  %248 = vperm.xlu0 %4470, %v235_v4   ;;  %v756_v18 = vld [vmem:[%s7024_s2 + $0x30] sm:$0xff]  ;;  %v4503_v29 = vld [vmem:[#allocation4 + $0x88] ss:$16 sps:$4 sm:$0xff]   ;;  %v4507_v30 = vld [vmem:[#allocation4 + $0xac] ss:$16 sps:$4 sm:$0xff]  }
 0x116   :  { %682 = vmatpush1.bf16.msra.mxu0 %v4491_v25  ;;  %v4509_v31 = vld [vmem:[#allocation4 + $0xa8] ss:$16 sps:$4 sm:$0xff]   ;;  %v4513_v32 = vld [vmem:[#allocation4 + $0xcc] ss:$16 sps:$4 sm:$0xff]   ;;  %v4488_v57 = vld [vmem:[#allocation4 + $0x44] ss:$16 sps:$4 sm:$0xff]  }
 0x117   :  { %683 = vmatprep.subr.bf16.mxu0 %v4495_v26  ;;  %v4515_v33 = vld [vmem:[#allocation4 + $0xc8] ss:$16 sps:$4 sm:$0xff]   ;;  %v4486_v61 = vld [vmem:[#allocation4 + $0x40] ss:$16 sps:$4 sm:$0xff]   ;;  %v4494_v62 = vld [vmem:[#allocation4 + $0x64] ss:$16 sps:$4 sm:$0xff]  }
 0x118   :  { %v4492_v63 = vld [vmem:[#allocation4 + $0x60] ss:$16 sps:$4 sm:$0xff]   ;;  %v4500_v1 = vld [vmem:[#allocation4 + $0x84] ss:$16 sps:$4 sm:$0xff]  }
 0x119   :  { %260 = vperm.xlu1 %4471, %v239_v5   ;;  %257 = vperm.xlu0 %4470, %v238_v6   ;;  %v4498_v2 = vld [vmem:[#allocation4 + $0x80] ss:$16 sps:$4 sm:$0xff]   ;;  %v4506_v3 = vld [vmem:[#allocation4 + $0xa4] ss:$16 sps:$4 sm:$0xff]  }
 0x11a   :  { %684 = vmatpush1.bf16.msra.mxu0 %v4497_v27  ;;  %v4504_v4 = vld [vmem:[#allocation4 + $0xa0] ss:$16 sps:$4 sm:$0xff]   ;;  %v4512_v5 = vld [vmem:[#allocation4 + $0xc4] ss:$16 sps:$4 sm:$0xff]  }
 0x11b   :  { %685 = vmatprep.subr.bf16.mxu0 %v4501_v28  ;;  %v4510_v6 = vld [vmem:[#allocation4 + $0xc0] ss:$16 sps:$4 sm:$0xff]  }
 0x11d   :  { %266 = vperm.xlu1 %4471, %v241_v9   ;;  %263 = vperm.xlu0 %4470, %v240_v10   ;;  %v4518_v9 = vld [vmem:[#allocation4 + $0xe4] ss:$16 sps:$4 sm:$0xff]   ;;  %v4519_v10 = vld [vmem:[#allocation4 + $0xec] ss:$16 sps:$4 sm:$0xff]  }
 0x11e   :  { %686 = vmatpush1.bf16.msra.mxu0 %v4503_v29 }
 0x11f   :  { %687 = vmatprep.subr.bf16.mxu0 %v4507_v30 }
 0x121   :  { %762 = vperm.xlu1 %4471, %v751_v11   ;;  %759 = vperm.xlu0 %4470, %v750_v12   ;;  %v4516_v11 = vld [vmem:[#allocation4 + $0xe0] ss:$16 sps:$4 sm:$0xff]   ;;  %v4521_v12 = vld [vmem:[#allocation4 + $0xe8] ss:$16 sps:$4 sm:$0xff]  }
 0x122   :  { %688 = vmatpush1.bf16.msra.mxu0 %v4509_v31 }
 0x123   :  { %689 = vmatprep.subr.bf16.mxu0 %v4513_v32 }
 0x125   :  { %768 = vperm.xlu1 %4471, %v753_v13   ;;  %765 = vperm.xlu0 %4470, %v752_v14  }
 0x126   :  { %690 = vmatpush1.bf16.msra.mxu0 %v4515_v33 }
 0x127   :  { %691 = vmatprep.subr.bf16.mxu0 %v4519_v10  ;;  %v4561_v10 = vld [vmem:[#allocation15 + $0xc8] ss:$16 sps:$4 sm:$0xff]  }
 0x129   :  { %774 = vperm.xlu1 %4471, %v755_v15   ;;  %771 = vperm.xlu0 %4470, %v754_v16  }
 0x12a   :  { %692 = vmatpush1.bf16.msra.mxu0 %v4521_v12  ;;  %v4566_v12 = vld [vmem:[#allocation15 + $0xe4] ss:$16 sps:$4 sm:$0xff]  }
 0x12d   :  { %780 = vperm.xlu1 %4471, %v757_v17   ;;  %777 = vperm.xlu0 %4470, %v756_v18  }
 0x190   :  { %v252_v36 = vpop.permute.xlu1 %251  ;;  %v246_v37 = vpop.permute.xlu0 %245 }
 0x191   :  { %vm270_vm0 = vcmp.eq.s32.totalorder %v5683_v35, %v252_v36  ;;  %vm268_vm1 = vcmp.eq.s32.totalorder %v5683_v35, %v246_v37 }
 0x192   :  { %v4044_v41 = vsel %vm270_vm0, 1.0, %v6999_v40  ;;  %v4042_v42 = vsel %vm268_vm1, 1.0, %v6999_v40  ;;  %vm5340_vm1 = vmmov 0  }
 0x194   :  { %v255_v38 = vpop.permute.xlu1 %254  ;;  %v249_v39 = vpop.permute.xlu0 %248 }
 0x195   :  { %vm271_vm2 = vcmp.eq.s32.totalorder %v5683_v35, %v255_v38  ;;  %vm269_vm3 = vcmp.eq.s32.totalorder %v5683_v35, %v249_v39 }
 0x196   :  { %v4045_v43 = vsel %vm271_vm2, 1.0, %v6999_v40  ;;  %v4043_v44 = vsel %vm269_vm3, 1.0, %v6999_v40  ;;  %vm2754_vm2 = vcmask 523264  }
 0x197   :  { %v293_v45 = vpack.c.bf16 %v4045_v43, %v4044_v41  ;;  %v292_v46 = vpack.c.bf16 %v4043_v44, %v4042_v42 }
 0x198   :  { %v261_v48 = vpop.permute.xlu1 %260  ;;  %v258_v49 = vpop.permute.xlu0 %257 }
 0x199   :  { %vm273_vm5 = vcmp.eq.s32.totalorder %v5683_v35, %v261_v48  ;;  %vm272_vm6 = vcmp.eq.s32.totalorder %v5683_v35, %v258_v49  ;;  %4346 = vmatprep.mubr.msk.bf16.mxu1 %vm308_vm4, %v292_v46  ;;  %v4522_v46 = vld [vmem:[#allocation15] ss:$16 sps:$4 sm:$0xff]   ;;  %v4525_v48 = vld [vmem:[#allocation15 + $0x8] ss:$16 sps:$4 sm:$0xff]   ;;  %v4527_v49 = vld [vmem:[#allocation15 + $0xc] ss:$16 sps:$4 sm:$0xff]  }
 0x19a   :  { %v4047_v51 = vsel %vm273_vm5, 1.0, %v6999_v40  ;;  %v4046_v52 = vsel %vm272_vm6, 1.0, %v6999_v40  ;;  %4347 = vmatmul.mubr.msk.bf16.vlgmr.msra.gmra.mrb[0].mxu1 %vm308_vm4, %v293_v45 }
 0x19b   :  { %v294_v53 = vpack.c.bf16 %v4047_v51, %v4046_v52  ;;  %605 = vmatpush1.bf16.msra.mxu1 %v4474_v47  ;;  %v4524_v47 = vld [vmem:[#allocation15 + $0x4] ss:$16 sps:$4 sm:$0xff]   ;;  %v4528_v51 = vld [vmem:[#allocation15 + $0x20] ss:$16 sps:$4 sm:$0xff]   ;;  %v4531_v52 = vld [vmem:[#allocation15 + $0x28] ss:$16 sps:$4 sm:$0xff]  }
 0x19c   :  { %v267_v55 = vpop.permute.xlu1 %266  ;;  %v264_v56 = vpop.permute.xlu0 %263  ;;  %606 = vmatprep.subr.bf16.mxu1 %v4482_v50  ;;  %1105 = vmatprep.subr.bf16.mxu0 %v4524_v47  ;;  %v4533_v50 = vld [vmem:[#allocation15 + $0x2c] ss:$16 sps:$4 sm:$0xff]  }
 0x19d   :  { %vm275_vm7 = vcmp.eq.s32.totalorder %v5683_v35, %v267_v55  ;;  %vm274_vm8 = vcmp.eq.s32.totalorder %v5683_v35, %v264_v56  ;;  %4350 = vmatprep.mubr.msk.bf16.mxu1 %vm308_vm4, %v294_v53  ;;  %v4534_v53 = vld [vmem:[#allocation15 + $0x40] ss:$16 sps:$4 sm:$0xff]   ;;  %v4537_v55 = vld [vmem:[#allocation15 + $0x48] ss:$16 sps:$4 sm:$0xff]   ;;  %v4539_v56 = vld [vmem:[#allocation15 + $0x4c] ss:$16 sps:$4 sm:$0xff]  }
 0x19e   :  { %v4049_v58 = vsel %vm275_vm7, 1.0, %v6999_v40  ;;  %v4048_v59 = vsel %vm274_vm8, 1.0, %v6999_v40 }
 0x19f   :  { %v295_v60 = vpack.c.bf16 %v4049_v58, %v4048_v59  ;;  %607 = vmatpush1.bf16.msra.mxu1 %v4480_v54  ;;  %v4536_v54 = vld [vmem:[#allocation15 + $0x44] ss:$16 sps:$4 sm:$0xff]   ;;  %v4545_v58 = vld [vmem:[#allocation15 + $0x6c] ss:$16 sps:$4 sm:$0xff]   ;;  %v4540_v59 = vld [vmem:[#allocation15 + $0x60] ss:$16 sps:$4 sm:$0xff]  }
 0x1a0   :  { %608 = vmatprep.subr.bf16.mxu1 %v4488_v57  ;;  %v760_v25 = vpop.permute.xlu0 %759  ;;  %v4542_v57 = vld [vmem:[#allocation15 + $0x64] ss:$16 sps:$4 sm:$0xff]  }
 0x1a1   :  { %vm782_vm10 = vcmp.eq.s32.totalorder %v5683_v35, %v760_v25 }
 0x1a2   :  { %4351 = vmatmul.mubr.msk.bf16.gmra.mrb[4].mxu1 %vm308_vm4, %v295_v60  ;;  %v4088_v28 = vsel %vm782_vm10, 1.0, %v6999_v40  ;;  %v4543_v60 = vld [vmem:[#allocation15 + $0x68] ss:$16 sps:$4 sm:$0xff]  }
 0x1a3   :  { %609 = vmatpush1.bf16.msra.mxu1 %v4486_v61  ;;  %636 = vmatprep.mubr.bf16.mxu1 %v7003_v0  ;;  %v4546_v61 = vld [vmem:[#allocation15 + $0x80] ss:$16 sps:$4 sm:$0xff]  }
 0x1a4   :  { %610 = vmatprep.subr.bf16.mxu1 %v4494_v62  ;;  %v766_v27 = vpop.permute.xlu0 %765  ;;  %v4548_v62 = vld [vmem:[#allocation15 + $0x84] ss:$16 sps:$4 sm:$0xff]  }
 0x1a5   :  { %vm784_vm12 = vcmp.eq.s32.totalorder %v5683_v35, %v766_v27 }
 0x1a6   :  { %v4090_v33 = vsel %vm784_vm12, 1.0, %v6999_v40 }
 0x1a7   :  { %611 = vmatpush1.bf16.msra.mxu1 %v4492_v63  ;;  %v4549_v63 = vld [vmem:[#allocation15 + $0x88] ss:$16 sps:$4 sm:$0xff]  }
 0x1a8   :  { %612 = vmatprep.subr.bf16.mxu1 %v4500_v1  ;;  %v772_v30 = vpop.permute.xlu0 %771  ;;  %v4551_v1 = vld [vmem:[#allocation15 + $0x8c] ss:$16 sps:$4 sm:$0xff]  }
 0x1a9   :  { %vm786_vm14 = vcmp.eq.s32.totalorder %v5683_v35, %v772_v30 }
 0x1aa   :  { %v4092_v37 = vsel %vm786_vm14, 1.0, %v6999_v40 }
 0x1ab   :  { %613 = vmatpush1.bf16.msra.mxu1 %v4498_v2  ;;  %v4554_v2 = vld [vmem:[#allocation15 + $0xa4] ss:$16 sps:$4 sm:$0xff]  }
 0x1ac   :  { %614 = vmatprep.subr.bf16.mxu1 %v4506_v3  ;;  %v778_v39 = vpop.permute.xlu0 %777  ;;  %v4557_v3 = vld [vmem:[#allocation15 + $0xac] ss:$16 sps:$4 sm:$0xff]  }
 0x1ad   :  { %vm788_vm0 = vcmp.eq.s32.totalorder %v5683_v35, %v778_v39 }
 0x1ae   :  { %v4094_v44 = vsel %vm788_vm0, 1.0, %v6999_v40 }
 0x1af   :  { %615 = vmatpush1.bf16.msra.mxu1 %v4504_v4  ;;  %v4552_v4 = vld [vmem:[#allocation15 + $0xa0] ss:$16 sps:$4 sm:$0xff]  }
 0x1b0   :  { %616 = vmatprep.subr.bf16.mxu1 %v4512_v5  ;;  %v4555_v5 = vld [vmem:[#allocation15 + $0xa8] ss:$16 sps:$4 sm:$0xff]  }
 0x1b3   :  { %617 = vmatpush1.bf16.msra.mxu1 %v4510_v6  ;;  %v4558_v6 = vld [vmem:[#allocation15 + $0xc0] ss:$16 sps:$4 sm:$0xff]  }
 0x1b4   :  { %618 = vmatprep.subr.bf16.mxu1 %v4518_v9  ;;  %v4560_v9 = vld [vmem:[#allocation15 + $0xc4] ss:$16 sps:$4 sm:$0xff]  }
 0x1b7   :  { %619 = vmatpush1.bf16.msra.mxu1 %v4516_v11  ;;  %v4563_v11 = vld [vmem:[#allocation15 + $0xcc] ss:$16 sps:$4 sm:$0xff]  }
 0x1b8   :  { %4354 = vmatprep.subr.bf16.mxu1 %v5644_v7 }
 0x26d   :  { %v4348_v13 = vpop.f32.mrb[0].mxu1 }
 0x26e   :  { %v355_v14 = vpop.f32.mrb[1].mxu1 }
 0x26f   :  { %v4349_v15 = vpop.f32.mrb[2].mxu1 }
 0x270   :  { %v419_v16 = vpack.c.bf16 %v4349_v15, %v4348_v13  ;;  %v358_v17 = vpop.f32.mrb[3].mxu1  ;;  %v4569_v13 = vld [vmem:[#allocation15 + $0xec] ss:$16 sps:$4 sm:$0xff]   ;;  %v4567_v15 = vld [vmem:[#allocation15 + $0xe8] ss:$16 sps:$4 sm:$0xff]  }
 0x271   :  { %v418_v18 = vpack.c.bf16 %v358_v17, %v355_v14  ;;  %v4564_v14 = vld [vmem:[#allocation15 + $0xe0] ss:$16 sps:$4 sm:$0xff]  }
 0x272   :  { %v5740_v17 = vld [vmem:[#allocation6 + $0xc] ss:$16 sps:$4 sm:$0xff]  }
 0x273   :  { %637 = vmatmul.mubr.bf16.vlgmr.msra.gmra.mrb[8].mxu1 %v418_v18  ;;  %710 = vmatmul.mubr.bf16.vlgmr.msra.gmra.mrb[0].mxu0 %v418_v18  ;;  %v5745_v18 = vshrl.u32 %v242_v34, 7 }
 0x274   :  { %4355 = vmatpush3.bf16.msra.mxu1 %v5644_v7  ;;  %646 = vmatprep.mubr.bf16.mxu1 %v7003_v0  ;;  %v763_v7 = vpop.permute.xlu1 %762 }
 0x275   :  { %v4352_v19 = vpop.f32.mrb[4].mxu1  ;;  %719 = vmatprep.mubr.bf16.mxu0 %v7003_v0  ;;  %4356 = vmatprep.subr.bf16.mxu1 %v5646_v8  ;;  %vm783_vm9 = vcmp.eq.s32.totalorder %v5683_v35, %v763_v7 }
 0x276   :  { %v371_v20 = vpop.f32.mrb[5].mxu1  ;;  %1106 = vmatpush1.bf16.msra.mxu0 %v4522_v46 }
 0x277   :  { %v4353_v21 = vpop.f32.mrb[6].mxu1 }
 0x278   :  { %v421_v22 = vpack.c.bf16 %v4353_v21, %v4352_v19  ;;  %v374_v23 = vpop.f32.mrb[7].mxu1  ;;  %4357 = vmatpush3.bf16.msra.mxu1 %v5646_v8  ;;  %v769_v26 = vpop.permute.xlu1 %768  ;;  %v4089_v8 = vsel %vm783_vm9, 1.0, %v6999_v40  ;;  %v5748_v19 = vsub.s32 0, %v5745_v18  ;;  %v422_v21 = vld [vmem:[#allocation7] sm:$0xf] }
 0x279   :  { %v420_v24 = vpack.c.bf16 %v374_v23, %v371_v20  ;;  %v806_v31 = vpack.c.bf16 %v4089_v8, %v4088_v28  ;;  %vm785_vm11 = vcmp.eq.s32.totalorder %v5683_v35, %v769_v26  ;;  %1178 = vmatprep.subr.bf16.mxu1 %v4527_v49  ;;  %v7002_v20 = vsub.s32 2, %v5745_v18 }
 0x27a   :  { %v4091_v32 = vsel %vm785_vm11, 1.0, %v6999_v40  ;;  %7025 = vst [vmem:[#allocation29_spill] sm:$0xff] %v5748_v19  ;;  %v7001_v23 = vsub.s32 3, %v5745_v18  ;;  %v5760_v25 = vrot.slane %v422_v21, %v5748_v19 }
 0x27b   :  { %647 = vmatmul.mubr.bf16.gmra.mrb[12].mxu1 %v419_v16  ;;  %720 = vmatmul.mubr.bf16.gmra.mrb[4].mxu0 %v419_v16  ;;  %v807_v41 = vpack.c.bf16 %v4091_v32, %v4090_v33  ;;  %v5738_v16 = vld [vmem:[#allocation6 + $0x4] ss:$16 sps:$4 sm:$0xff]   ;;  %v5764_v34 = vrot.slane %v422_v21, %v7002_v20  ;;  %v5919_v20 = vld [vmem:[#allocation6 + $0xac] ss:$16 sps:$4 sm:$0xff]  }
 0x27c   :  { %656 = vmatprep.mubr.bf16.mxu1 %v7003_v0  ;;  %729 = vmatprep.mubr.bf16.mxu0 %v7003_v0  ;;  %v775_v29 = vpop.permute.xlu1 %774  ;;  %v5775_v28 = vrot.slane %v422_v21, %v7001_v23  ;;  %v5917_v23 = vld [vmem:[#allocation6 + $0xa4] ss:$16 sps:$4 sm:$0xff]  }
 0x27d   :  { %vm787_vm13 = vcmp.eq.s32.totalorder %v5683_v35, %v775_v29 }
 0x27e   :  { %v4093_v36 = vsel %vm787_vm13, 1.0, %v6999_v40 }
 0x27f   :  { %v808_v42 = vpack.c.bf16 %v4093_v36, %v4092_v37 }
 0x280   :  { %v781_v38 = vpop.permute.xlu1 %780 }
 0x281   :  { %vm789_vm15 = vcmp.eq.s32.totalorder %v5683_v35, %v781_v38  ;;  %v4530_v35 = vld [vmem:[#allocation15 + $0x24] ss:$16 sps:$4 sm:$0xff]  }
 0x282   :  { %v4095_v43 = vsel %vm789_vm15, 1.0, %v6999_v40  ;;  %1107 = vmatprep.subr.bf16.mxu0 %v4530_v35  ;;  %v5913_v40 = vld [vmem:[#allocation6 + $0x88] ss:$16 sps:$4 sm:$0xff]  }
 0x283   :  { %657 = vmatmul.mubr.bf16.gmra.mrb[16].mxu1 %v420_v24  ;;  %730 = vmatmul.mubr.bf16.gmra.mrb[8].mxu0 %v420_v24  ;;  %v809_v45 = vpack.c.bf16 %v4095_v43, %v4094_v44 }
 0x284   :  { %666 = vmatprep.mubr.bf16.mxu1 %v7003_v0  ;;  %739 = vmatprep.mubr.bf16.mxu0 %v7003_v0 }
 0x285   :  { %1108 = vmatpush1.bf16.msra.mxu0 %v4528_v51 }
 0x286   :  { %1109 = vmatprep.subr.bf16.mxu0 %v4536_v54 }
 0x289   :  { %1110 = vmatpush1.bf16.msra.mxu0 %v4534_v53 }
 0x28a   :  { %1111 = vmatprep.subr.bf16.mxu0 %v4542_v57 }
 0x28b   :  { %667 = vmatmul.mubr.bf16.gmra.mrb[20].mxu1 %v421_v22  ;;  %740 = vmatmul.mubr.bf16.gmra.mrb[12].mxu0 %v421_v22  ;;  %v5752_v22 = vsub.s32 1, %v5745_v18 }
 0x28c   :  { %4358 = vmatprep.mubr.msk.bf16.mxu1 %vm308_vm4, %v806_v31  ;;  %1137 = vmatprep.mubr.bf16.mxu0 %v7003_v0 }
 0x28d   :  { %1112 = vmatpush1.bf16.msra.mxu0 %v4540_v59  ;;  %7026 = vst [vmem:[#allocation30_spill] sm:$0xff] %v5752_v22  ;;  %v5771_v8 = vrot.slane %v422_v21, %v5752_v22 }
 0x28e   :  { %1113 = vmatprep.subr.bf16.mxu0 %v4548_v62 }
 0x291   :  { %1114 = vmatpush1.bf16.msra.mxu0 %v4546_v61 }
 0x292   :  { %1115 = vmatprep.subr.bf16.mxu0 %v4554_v2 }
 0x293   :  { %4359 = vmatmul.mubr.msk.bf16.vlgmr.msra.gmra.mrb[24].mxu1 %vm308_vm4, %v807_v41 }
 0x294   :  { %4362 = vmatprep.mubr.msk.bf16.mxu1 %vm308_vm4, %v808_v42  ;;  %1179 = vmatpush1.bf16.msra.mxu1 %v4525_v48 }
 0x295   :  { %1180 = vmatprep.subr.bf16.mxu1 %v4533_v50  ;;  %1116 = vmatpush1.bf16.msra.mxu0 %v4552_v4 }
 0x296   :  { %1117 = vmatprep.subr.bf16.mxu0 %v4560_v9 }
 0x298   :  { %1181 = vmatpush1.bf16.msra.mxu1 %v4531_v52 }
 0x299   :  { %1182 = vmatprep.subr.bf16.mxu1 %v4539_v56  ;;  %1118 = vmatpush1.bf16.msra.mxu0 %v4558_v6 }
 0x29a   :  { %1119 = vmatprep.subr.bf16.mxu0 %v4566_v12 }
 0x29b   :  { %4363 = vmatmul.mubr.msk.bf16.gmra.mrb[28].mxu1 %vm308_vm4, %v809_v45 }
 0x29c   :  { %1210 = vmatprep.mubr.bf16.mxu1 %v7003_v0  ;;  %1183 = vmatpush1.bf16.msra.mxu1 %v4537_v55 }
 0x29d   :  { %1184 = vmatprep.subr.bf16.mxu1 %v4545_v58  ;;  %1120 = vmatpush1.bf16.msra.mxu0 %v4564_v14 }
 0x29e   :  { %1443 = vmatprep.subr.bf16.mxu0 %v5738_v16 }
 0x2a0   :  { %1185 = vmatpush1.bf16.msra.mxu1 %v4543_v60 }
 0x2a1   :  { %1186 = vmatprep.subr.bf16.mxu1 %v4551_v1 }
 0x2a4   :  { %1187 = vmatpush1.bf16.msra.mxu1 %v4549_v63 }
 0x2a5   :  { %1188 = vmatprep.subr.bf16.mxu1 %v4557_v3 }
 0x2a8   :  { %1189 = vmatpush1.bf16.msra.mxu1 %v4555_v5 }
 0x2a9   :  { %1190 = vmatprep.subr.bf16.mxu1 %v4563_v11 }
 0x2ac   :  { %1191 = vmatpush1.bf16.msra.mxu1 %v4561_v10 }
 0x2ad   :  { %1192 = vmatprep.subr.bf16.mxu1 %v4569_v13 }
 0x2b0   :  { %1193 = vmatpush1.bf16.msra.mxu1 %v4567_v15 }
 0x2b1   :  { %1484 = vmatprep.subr.bf16.mxu1 %v5740_v17 }
 0x346   :  { %v5755_v24 = vpop.f32.mrb[8].mxu1  ;;  %v5757_v7 = vpop.f32.mrb[0].mxu0 }
 0x347   :  { %v5766_v26 = vpop.f32.mrb[9].mxu1  ;;  %v5768_v27 = vpop.f32.mrb[1].mxu0 }
 0x348   :  { %v642_v29 = vpop.f32.mrb[10].mxu1  ;;  %v715_v30 = vpop.f32.mrb[2].mxu0 }
 0x349   :  { %v5778_v31 = vadd.f32 %v642_v29, %v5760_v25  ;;  %v5781_v32 = vadd.f32 %v715_v30, %v5764_v34  ;;  %v644_v33 = vpop.f32.mrb[11].mxu1  ;;  %v717_v36 = vpop.f32.mrb[3].mxu0 }
 0x34a   :  { %v5784_v37 = vadd.f32 %v644_v33, %v5771_v8  ;;  %v5787_v38 = vadd.f32 %v717_v36, %v5775_v28 }
 0x34e   :  { %v648_v39 = vpop.f32.mrb[12].mxu1  ;;  %v721_v41 = vpop.f32.mrb[4].mxu0 }
 0x34f   :  { %v5790_v42 = vadd.f32 %v648_v39, %v5760_v25  ;;  %v5793_v43 = vadd.f32 %v721_v41, %v5764_v34  ;;  %v650_v44 = vpop.f32.mrb[13].mxu1  ;;  %v723_v45 = vpop.f32.mrb[5].mxu0 }
 0x350   :  { %v5796_v46 = vadd.f32 %v650_v44, %v5771_v8  ;;  %v5799_v47 = vadd.f32 %v723_v45, %v5775_v28  ;;  %v652_v48 = vpop.f32.mrb[14].mxu1  ;;  %v725_v49 = vpop.f32.mrb[6].mxu0 }
 0x351   :  { %v5802_v35 = vadd.f32 %v652_v48, %v5760_v25  ;;  %v5805_v50 = vadd.f32 %v725_v49, %v5764_v34  ;;  %v654_v51 = vpop.f32.mrb[15].mxu1  ;;  %v727_v52 = vpop.f32.mrb[7].mxu0 }
 0x352   :  { %7027 = vst [vmem:[#allocation31_spill] sm:$0xff] %v5799_v47  ;;  %v5808_v53 = vadd.f32 %v654_v51, %v5771_v8  ;;  %v5811_v54 = vadd.f32 %v727_v52, %v5775_v28 }
 0x353   :  { %7028 = vst [vmem:[#allocation32_spill] sm:$0xff] %v5802_v35  ;;  %7029 = vst [vmem:[#allocation33_spill] sm:$0xff] %v5805_v50 }
 0x354   :  { %7030 = vst [vmem:[#allocation34_spill] sm:$0xff] %v5808_v53  ;;  %7031 = vst [vmem:[#allocation35_spill] sm:$0xff] %v5811_v54  ;;  %v7056_v53 = vsub.s32 3, %v5745_v18 }
 0x356   :  { %v658_v55 = vpop.f32.mrb[16].mxu1  ;;  %v731_v56 = vpop.f32.mrb[8].mxu0 }
 0x357   :  { %v5814_v57 = vadd.f32 %v658_v55, %v5760_v25  ;;  %v5817_v58 = vadd.f32 %v731_v56, %v5764_v34  ;;  %v660_v59 = vpop.f32.mrb[17].mxu1  ;;  %v733_v60 = vpop.f32.mrb[9].mxu0 }
 0x358   :  { %v5820_v61 = vadd.f32 %v660_v59, %v5771_v8  ;;  %v5823_v62 = vadd.f32 %v733_v60, %v5775_v28  ;;  %v662_v63 = vpop.f32.mrb[18].mxu1  ;;  %v735_v1 = vpop.f32.mrb[10].mxu0  ;;  %v5861_v59 = vld [vmem:[#allocation6] ss:$16 sps:$4 sm:$0xff]   ;;  %v5863_v60 = vld [vmem:[#allocation6 + $0x8] ss:$16 sps:$4 sm:$0xff]  }
 0x359   :  { %7032 = vst [vmem:[#allocation36_spill] sm:$0xff] %v5814_v57  ;;  %7033 = vst [vmem:[#allocation37_spill] sm:$0xff] %v5817_v58  ;;  %v5826_v2 = vadd.f32 %v662_v63, %v5760_v25  ;;  %v5829_v3 = vadd.f32 %v735_v1, %v5764_v34  ;;  %v664_v4 = vpop.f32.mrb[19].mxu1  ;;  %v737_v5 = vpop.f32.mrb[11].mxu0  ;;  %v5865_v1 = vld [vmem:[#allocation6 + $0x24] ss:$16 sps:$4 sm:$0xff]  }
 0x35a   :  { %7034 = vst [vmem:[#allocation38_spill] sm:$0xff] %v5820_v61  ;;  %7035 = vst [vmem:[#allocation39_spill] sm:$0xff] %v5823_v62  ;;  %v5832_v6 = vadd.f32 %v664_v4, %v5771_v8  ;;  %v5835_v9 = vadd.f32 %v737_v5, %v5775_v28  ;;  %v5867_v4 = vld [vmem:[#allocation6 + $0x2c] ss:$16 sps:$4 sm:$0xff]   ;;  %v5871_v5 = vld [vmem:[#allocation6 + $0x20] ss:$16 sps:$4 sm:$0xff]  }
 0x35b   :  { %7036 = vst [vmem:[#allocation40_spill] sm:$0xff] %v5826_v2  ;;  %7037 = vst [vmem:[#allocation41_spill] sm:$0xff] %v5829_v3  ;;  %v7051_v62 = vsub.s32 2, %v5745_v18 }
 0x35c   :  { %7038 = vst [vmem:[#allocation42_spill] sm:$0xff] %v5832_v6  ;;  %7039 = vst [vmem:[#allocation43_spill] sm:$0xff] %v5835_v9  ;;  %v5951_v9 = vld [vmem:[#allocation6 + $0xe8] ss:$16 sps:$4 sm:$0xff]  }
 0x35e   :  { %v668_v10 = vpop.f32.mrb[20].mxu1  ;;  %v741_v11 = vpop.f32.mrb[12].mxu0 }
 0x35f   :  { %v5838_v12 = vadd.f32 %v668_v10, %v5760_v25  ;;  %v5841_v13 = vadd.f32 %v741_v11, %v5764_v34  ;;  %v670_v14 = vpop.f32.mrb[21].mxu1  ;;  %v743_v15 = vpop.f32.mrb[13].mxu0  ;;  %v5873_v10 = vld [vmem:[#allocation6 + $0x28] ss:$16 sps:$4 sm:$0xff]  }
 0x360   :  { %v5844_v21 = vadd.f32 %v670_v14, %v5771_v8  ;;  %v5847_v29 = vadd.f32 %v743_v15, %v5775_v28  ;;  %v672_v30 = vpop.f32.mrb[22].mxu1  ;;  %v745_v33 = vpop.f32.mrb[14].mxu0  ;;  %v5877_v14 = vld [vmem:[#allocation6 + $0x44] ss:$16 sps:$4 sm:$0xff]   ;;  %v5879_v15 = vld [vmem:[#allocation6 + $0x4c] ss:$16 sps:$4 sm:$0xff]  }
 0x361   :  { %7040 = vst [vmem:[#allocation44_spill] sm:$0xff] %v5838_v12  ;;  %7041 = vst [vmem:[#allocation45_spill] sm:$0xff] %v5841_v13  ;;  %v5850_v36 = vadd.f32 %v672_v30, %v5760_v25  ;;  %v5853_v39 = vadd.f32 %v745_v33, %v5764_v34  ;;  %v674_v41 = vpop.f32.mrb[23].mxu1  ;;  %v747_v44 = vpop.f32.mrb[15].mxu0  ;;  %v5945_v13 = vld [vmem:[#allocation6 + $0xec] ss:$16 sps:$4 sm:$0xff]  }
 0x362   :  { %7042 = vst [vmem:[#allocation46_spill] sm:$0xff] %v5844_v21  ;;  %7043 = vst [vmem:[#allocation47_spill] sm:$0xff] %v5847_v29  ;;  %v5856_v45 = vadd.f32 %v674_v41, %v5771_v8  ;;  %v5859_v48 = vadd.f32 %v747_v44, %v5775_v28  ;;  %v5939_v29 = vld [vmem:[#allocation6 + $0xc8] ss:$16 sps:$4 sm:$0xff]   ;;  %v5943_v21 = vld [vmem:[#allocation6 + $0xe4] ss:$16 sps:$4 sm:$0xff]  }
 0x363   :  { %7044 = vst [vmem:[#allocation48_spill] sm:$0xff] %v5850_v36  ;;  %7045 = vst [vmem:[#allocation49_spill] sm:$0xff] %v5853_v39  ;;  %v5931_v39 = vld [vmem:[#allocation6 + $0xcc] ss:$16 sps:$4 sm:$0xff]   ;;  %v7048_v36 = vmov 0  }
 0x364   :  { %7046 = vst [vmem:[#allocation50_spill] sm:$0xff] %v5856_v45  ;;  %7047 = vst [vmem:[#allocation51_spill] sm:$0xff] %v5859_v48  ;;  %v5925_v48 = vld [vmem:[#allocation6 + $0xa8] ss:$16 sps:$4 sm:$0xff]   ;;  %v5929_v45 = vld [vmem:[#allocation6 + $0xc4] ss:$16 sps:$4 sm:$0xff]  }
 0x365   :  { %v5949_v12 = vld [vmem:[#allocation6 + $0xe0] ss:$16 sps:$4 sm:$0xff]  }
 0x366   :  { %v4360_v49 = vpop.f32.mrb[24].mxu1 }
 0x367   :  { %v856_v51 = vpop.f32.mrb[25].mxu1 }
 0x368   :  { %v4361_v52 = vpop.f32.mrb[26].mxu1 }
 0x369   :  { %v920_v55 = vpack.c.bf16 %v4361_v52, %v4360_v49  ;;  %v859_v56 = vpop.f32.mrb[27].mxu1  ;;  %v5885_v49 = vld [vmem:[#allocation6 + $0x40] ss:$16 sps:$4 sm:$0xff]  }
 0x36a   :  { %v919_v63 = vpack.c.bf16 %v859_v56, %v856_v51  ;;  %v5887_v51 = vld [vmem:[#allocation6 + $0x48] ss:$16 sps:$4 sm:$0xff]   ;;  %v5891_v56 = vld [vmem:[#allocation6 + $0x64] ss:$16 sps:$4 sm:$0xff]  }
 0x36c   :  { %1138 = vmatmul.mubr.bf16.vlgmr.msra.gmra.mrb[16].mxu0 %v919_v63  ;;  %1211 = vmatmul.mubr.bf16.vlgmr.msra.gmra.mrb[32].mxu1 %v919_v63  ;;  %v5893_v63 = vld [vmem:[#allocation6 + $0x6c] ss:$16 sps:$4 sm:$0xff]  }
 0x36d   :  { %1444 = vmatpush1.bf16.msra.mxu0 %v5861_v59  ;;  %1485 = vmatpush1.bf16.msra.mxu1 %v5863_v60 }
 0x36e   :  { %v4364_v11 = vpop.f32.mrb[28].mxu1  ;;  %1445 = vmatprep.subr.bf16.mxu0 %v5865_v1  ;;  %1486 = vmatprep.subr.bf16.mxu1 %v5867_v4 }
 0x36f   :  { %v872_v30 = vpop.f32.mrb[29].mxu1  ;;  %1147 = vmatprep.mubr.bf16.mxu0 %v7003_v0  ;;  %1220 = vmatprep.mubr.bf16.mxu1 %v7003_v0 }
 0x370   :  { %v4365_v33 = vpop.f32.mrb[30].mxu1 }
 0x371   :  { %v922_v41 = vpack.c.bf16 %v4365_v33, %v4364_v11  ;;  %1446 = vmatpush1.bf16.msra.mxu0 %v5871_v5  ;;  %v875_v44 = vpop.f32.mrb[31].mxu1  ;;  %1487 = vmatpush1.bf16.msra.mxu1 %v5873_v10  ;;  %v5897_v11 = vld [vmem:[#allocation6 + $0x60] ss:$16 sps:$4 sm:$0xff]   ;;  %v5899_v33 = vld [vmem:[#allocation6 + $0x68] ss:$16 sps:$4 sm:$0xff]  }
 0x372   :  { %v921_v52 = vpack.c.bf16 %v875_v44, %v872_v30  ;;  %1447 = vmatprep.subr.bf16.mxu0 %v5877_v14  ;;  %1488 = vmatprep.subr.bf16.mxu1 %v5879_v15  ;;  %v5903_v30 = vld [vmem:[#allocation6 + $0x84] ss:$16 sps:$4 sm:$0xff]   ;;  %v5905_v44 = vld [vmem:[#allocation6 + $0x8c] ss:$16 sps:$4 sm:$0xff]  }
 0x374   :  { %1148 = vmatmul.mubr.bf16.gmra.mrb[20].mxu0 %v920_v55  ;;  %1221 = vmatmul.mubr.bf16.gmra.mrb[36].mxu1 %v920_v55  ;;  %v5911_v55 = vld [vmem:[#allocation6 + $0x80] ss:$16 sps:$4 sm:$0xff]  }
 0x375   :  { %1448 = vmatpush1.bf16.msra.mxu0 %v5885_v49  ;;  %1489 = vmatpush1.bf16.msra.mxu1 %v5887_v51 }
 0x376   :  { %1449 = vmatprep.subr.bf16.mxu0 %v5891_v56  ;;  %1490 = vmatprep.subr.bf16.mxu1 %v5893_v63 }
 0x377   :  { %1157 = vmatprep.mubr.bf16.mxu0 %v7003_v0  ;;  %1230 = vmatprep.mubr.bf16.mxu1 %v7003_v0  ;;  %v5923_v0 = vld [vmem:[#allocation6 + $0xa0] ss:$16 sps:$4 sm:$0xff]  }
 0x379   :  { %1450 = vmatpush1.bf16.msra.mxu0 %v5897_v11  ;;  %1491 = vmatpush1.bf16.msra.mxu1 %v5899_v33 }
 0x37a   :  { %1451 = vmatprep.subr.bf16.mxu0 %v5903_v30  ;;  %1492 = vmatprep.subr.bf16.mxu1 %v5905_v44 }
 0x37c   :  { %1158 = vmatmul.mubr.bf16.gmra.mrb[24].mxu0 %v921_v52  ;;  %1231 = vmatmul.mubr.bf16.gmra.mrb[40].mxu1 %v921_v52  ;;  %v5937_v52 = vld [vmem:[#allocation6 + $0xc0] ss:$16 sps:$4 sm:$0xff]  }
 0x37d   :  { %1452 = vmatpush1.bf16.msra.mxu0 %v5911_v55  ;;  %1493 = vmatpush1.bf16.msra.mxu1 %v5913_v40 }
 0x37e   :  { %1453 = vmatprep.subr.bf16.mxu0 %v5917_v23  ;;  %1494 = vmatprep.subr.bf16.mxu1 %v5919_v20 }
 0x37f   :  { %1167 = vmatprep.mubr.bf16.mxu0 %v7048_v36  ;;  %1240 = vmatprep.mubr.bf16.mxu1 %v7048_v36 }
 0x381   :  { %1454 = vmatpush1.bf16.msra.mxu0 %v5923_v0  ;;  %1495 = vmatpush1.bf16.msra.mxu1 %v5925_v48 }
 0x382   :  { %1455 = vmatprep.subr.bf16.mxu0 %v5929_v45  ;;  %1496 = vmatprep.subr.bf16.mxu1 %v5931_v39 }
 0x384   :  { %1168 = vmatmul.mubr.bf16.gmra.mrb[28].mxu0 %v922_v41  ;;  %1241 = vmatmul.mubr.bf16.gmra.mrb[44].mxu1 %v922_v41  ;;  %v923_v41 = vld [vmem:[#allocation18] sm:$0xf] }
 0x385   :  { %1456 = vmatpush1.bf16.msra.mxu0 %v5937_v52  ;;  %1497 = vmatpush1.bf16.msra.mxu1 %v5939_v29  ;;  %v6002_v2 = vrot.slane %v923_v41, %v5748_v19  ;;  %v6006_v61 = vrot.slane %v923_v41, %v7051_v62  ;;  %v6013_v54 = vrot.slane %v923_v41, %v5752_v22 }
 0x386   :  { %1457 = vmatprep.subr.bf16.mxu0 %v5943_v21  ;;  %1498 = vmatprep.subr.bf16.mxu1 %v5945_v13  ;;  %v6017_v50 = vrot.slane %v923_v41, %v7056_v53 }
 0x387   :  { %1475 = vmatprep.mubr.bf16.mxu0 %v7048_v36  ;;  %1516 = vmatprep.mubr.bf16.mxu1 %v7048_v36  ;;  %7052 = vst [vmem:[#allocation54_spill] sm:$0xff] %v6006_v61  ;;  %7055 = vst [vmem:[#allocation57_spill] sm:$0xff] %v6013_v54 }
 0x388   :  { %7057 = vst [vmem:[#allocation58_spill] sm:$0xff] %v6017_v50 }
 0x389   :  { %1458 = vmatpush1.bf16.msra.mxu0 %v5949_v12  ;;  %1499 = vmatpush1.bf16.msra.mxu1 %v5951_v9 }
 0x38a   :  { %1554 = vmatprep.subr.bf16.mxu0 %v5738_v16  ;;  %1595 = vmatprep.subr.bf16.mxu1 %v5740_v17 }
 0x38c   :  { %1476 = vmatmul.mubr.bf16.vlgmr.msra.gmra.mrb[32].mxu0 %v7048_v36  ;;  %1517 = vmatmul.mubr.bf16.vlgmr.msra.gmra.mrb[48].mxu1 %v7048_v36 }
 0x38d   :  { %1555 = vmatpush1.bf16.msra.mxu0 %v5861_v59  ;;  %1596 = vmatpush1.bf16.msra.mxu1 %v5863_v60 }
 0x38e   :  { %1556 = vmatprep.subr.bf16.mxu0 %v5865_v1  ;;  %1597 = vmatprep.subr.bf16.mxu1 %v5867_v4 }
 0x38f   :  { %1586 = vmatprep.mubr.bf16.mxu0 %v7048_v36  ;;  %1627 = vmatprep.mubr.bf16.mxu1 %v7048_v36 }
 0x391   :  { %1557 = vmatpush1.bf16.msra.mxu0 %v5871_v5  ;;  %1598 = vmatpush1.bf16.msra.mxu1 %v5873_v10 }
 0x392   :  { %1558 = vmatprep.subr.bf16.mxu0 %v5877_v14  ;;  %1599 = vmatprep.subr.bf16.mxu1 %v5879_v15 }
 0x395   :  { %1559 = vmatpush1.bf16.msra.mxu0 %v5885_v49  ;;  %1600 = vmatpush1.bf16.msra.mxu1 %v5887_v51 }
 0x396   :  { %1560 = vmatprep.subr.bf16.mxu0 %v5891_v56  ;;  %1601 = vmatprep.subr.bf16.mxu1 %v5893_v63 }
 0x399   :  { %1561 = vmatpush1.bf16.msra.mxu0 %v5897_v11  ;;  %1602 = vmatpush1.bf16.msra.mxu1 %v5899_v33 }
 0x39a   :  { %1562 = vmatprep.subr.bf16.mxu0 %v5903_v30  ;;  %1603 = vmatprep.subr.bf16.mxu1 %v5905_v44 }
 0x39d   :  { %1563 = vmatpush1.bf16.msra.mxu0 %v5911_v55  ;;  %1604 = vmatpush1.bf16.msra.mxu1 %v5913_v40 }
 0x39e   :  { %1564 = vmatprep.subr.bf16.mxu0 %v5917_v23  ;;  %1605 = vmatprep.subr.bf16.mxu1 %v5919_v20 }
 0x3a1   :  { %1565 = vmatpush1.bf16.msra.mxu0 %v5923_v0  ;;  %1606 = vmatpush1.bf16.msra.mxu1 %v5925_v48 }
 0x3a2   :  { %1566 = vmatprep.subr.bf16.mxu0 %v5929_v45  ;;  %1607 = vmatprep.subr.bf16.mxu1 %v5931_v39 }
 0x3a5   :  { %1567 = vmatpush1.bf16.msra.mxu0 %v5937_v52  ;;  %1608 = vmatpush1.bf16.msra.mxu1 %v5939_v29 }
 0x3a6   :  { %1568 = vmatprep.subr.bf16.mxu0 %v5943_v21  ;;  %1609 = vmatprep.subr.bf16.mxu1 %v5945_v13 }
 0x3a9   :  { %1569 = vmatpush1.bf16.msra.mxu0 %v5949_v12  ;;  %1610 = vmatpush1.bf16.msra.mxu1 %v5951_v9 }
 0x3aa   :  { %1665 = vmatprep.subr.bf16.mxu0 %v5738_v16  ;;  %1706 = vmatprep.subr.bf16.mxu1 %v5740_v17 }
 0x43f   :  { %v5997_v6 = vpop.f32.mrb[16].mxu0  ;;  %v5999_v3 = vpop.f32.mrb[32].mxu1 }
 0x440   :  { %7049 = vst [vmem:[#allocation52_spill] sm:$0xff] %v5997_v6  ;;  %7050 = vst [vmem:[#allocation53_spill] sm:$0xff] %v5999_v3  ;;  %v6008_v58 = vpop.f32.mrb[17].mxu0  ;;  %v6010_v57 = vpop.f32.mrb[33].mxu1 }
 0x441   :  { %7053 = vst [vmem:[#allocation55_spill] sm:$0xff] %v6008_v58  ;;  %7054 = vst [vmem:[#allocation56_spill] sm:$0xff] %v6010_v57  ;;  %v1143_v6 = vpop.f32.mrb[18].mxu0  ;;  %v1216_v3 = vpop.f32.mrb[34].mxu1 }
 0x442   :  { %v6020_v19 = vadd.f32 %v1143_v6, %v6002_v2  ;;  %v6023_v35 = vadd.f32 %v1216_v3, %v6006_v61  ;;  %v1145_v62 = vpop.f32.mrb[19].mxu0  ;;  %v1218_v47 = vpop.f32.mrb[35].mxu1 }
 0x443   :  { %v6026_v58 = vadd.f32 %v1145_v62, %v6013_v54  ;;  %v6029_v22 = vadd.f32 %v1218_v47, %v6017_v50 }
 0x444   :  { %7058 = vst [vmem:[#allocation59_spill] sm:$0xff] %v6020_v19  ;;  %7059 = vst [vmem:[#allocation60_spill] sm:$0xff] %v6023_v35 }
 0x445   :  { %7060 = vst [vmem:[#allocation61_spill] sm:$0xff] %v6026_v58  ;;  %7061 = vst [vmem:[#allocation62_spill] sm:$0xff] %v6029_v22 }
 0x447   :  { %v1149_v57 = vpop.f32.mrb[20].mxu0  ;;  %v1222_v18 = vpop.f32.mrb[36].mxu1 }
 0x448   :  { %v6032_v53 = vadd.f32 %v1149_v57, %v6002_v2  ;;  %v6035_v41 = vadd.f32 %v1222_v18, %v6006_v61  ;;  %v1151_v6 = vpop.f32.mrb[21].mxu0  ;;  %v1224_v19 = vpop.f32.mrb[37].mxu1 }
 0x449   :  { %v6038_v3 = vadd.f32 %v1151_v6, %v6013_v54  ;;  %v6041_v35 = vadd.f32 %v1224_v19, %v6017_v50  ;;  %v1153_v62 = vpop.f32.mrb[22].mxu0  ;;  %v1226_v58 = vpop.f32.mrb[38].mxu1 }
 0x44a   :  { %7062 = vst [vmem:[#allocation63_spill] sm:$0xff] %v6032_v53  ;;  %7063 = vst [vmem:[#allocation64_spill] sm:$0xff] %v6035_v41  ;;  %v6044_v47 = vadd.f32 %v1153_v62, %v6002_v2  ;;  %v6047_v22 = vadd.f32 %v1226_v58, %v6006_v61  ;;  %v1155_v57 = vpop.f32.mrb[23].mxu0  ;;  %v1228_v53 = vpop.f32.mrb[39].mxu1 }
 0x44b   :  { %7064 = vst [vmem:[#allocation65_spill] sm:$0xff] %v6038_v3  ;;  %7065 = vst [vmem:[#allocation66_spill] sm:$0xff] %v6041_v35  ;;  %v6050_v18 = vadd.f32 %v1155_v57, %v6013_v54  ;;  %v6053_v41 = vadd.f32 %v1228_v53, %v6017_v50 }
 0x44c   :  { %7066 = vst [vmem:[#allocation67_spill] sm:$0xff] %v6044_v47  ;;  %7067 = vst [vmem:[#allocation68_spill] sm:$0xff] %v6047_v22 }
 0x44d   :  { %7068 = vst [vmem:[#allocation69_spill] sm:$0xff] %v6050_v18  ;;  %7069 = vst [vmem:[#allocation70_spill] sm:$0xff] %v6053_v41 }
 0x44f   :  { %v1159_v6 = vpop.f32.mrb[24].mxu0  ;;  %v1232_v3 = vpop.f32.mrb[40].mxu1 }
 0x450   :  { %v6056_v19 = vadd.f32 %v1159_v6, %v6002_v2  ;;  %v6059_v35 = vadd.f32 %v1232_v3, %v6006_v61  ;;  %v1161_v62 = vpop.f32.mrb[25].mxu0  ;;  %v1234_v47 = vpop.f32.mrb[41].mxu1 }
 0x451   :  { %v6062_v58 = vadd.f32 %v1161_v62, %v6013_v54  ;;  %v6065_v22 = vadd.f32 %v1234_v47, %v6017_v50  ;;  %v1163_v57 = vpop.f32.mrb[26].mxu0  ;;  %v1236_v18 = vpop.f32.mrb[42].mxu1 }
 0x452   :  { %7070 = vst [vmem:[#allocation71_spill] sm:$0xff] %v6056_v19  ;;  %7071 = vst [vmem:[#allocation72_spill] sm:$0xff] %v6059_v35  ;;  %v6068_v53 = vadd.f32 %v1163_v57, %v6002_v2  ;;  %v6071_v41 = vadd.f32 %v1236_v18, %v6006_v61  ;;  %v1165_v6 = vpop.f32.mrb[27].mxu0  ;;  %v1238_v19 = vpop.f32.mrb[43].mxu1 }
 0x453   :  { %7072 = vst [vmem:[#allocation73_spill] sm:$0xff] %v6062_v58  ;;  %7073 = vst [vmem:[#allocation74_spill] sm:$0xff] %v6065_v22  ;;  %v6074_v3 = vadd.f32 %v1165_v6, %v6013_v54  ;;  %v6077_v35 = vadd.f32 %v1238_v19, %v6017_v50 }
 0x454   :  { %7074 = vst [vmem:[#allocation75_spill] sm:$0xff] %v6068_v53  ;;  %7075 = vst [vmem:[#allocation76_spill] sm:$0xff] %v6071_v41 }
 0x455   :  { %7076 = vst [vmem:[#allocation77_spill] sm:$0xff] %v6074_v3  ;;  %7077 = vst [vmem:[#allocation78_spill] sm:$0xff] %v6077_v35 }
 0x457   :  { %v1169_v62 = vpop.f32.mrb[28].mxu0  ;;  %v1242_v58 = vpop.f32.mrb[44].mxu1 }
 0x458   :  { %v6080_v47 = vadd.f32 %v1169_v62, %v6002_v2  ;;  %v6083_v22 = vadd.f32 %v1242_v58, %v6006_v61  ;;  %v1171_v57 = vpop.f32.mrb[29].mxu0  ;;  %v1244_v53 = vpop.f32.mrb[45].mxu1 }
 0x459   :  { %v6086_v18 = vadd.f32 %v1171_v57, %v6013_v54  ;;  %v6089_v41 = vadd.f32 %v1244_v53, %v6017_v50  ;;  %v1173_v6 = vpop.f32.mrb[30].mxu0  ;;  %v1246_v3 = vpop.f32.mrb[46].mxu1  ;;  %v639_v53 = vadd.f32 %v5755_v24, %v5760_v25  ;;  %v712_v57 = vadd.f32 %v5757_v7, %v5764_v34 }
 0x45a   :  { %7078 = vst [vmem:[#allocation79_spill] sm:$0xff] %v6080_v47  ;;  %7079 = vst [vmem:[#allocation80_spill] sm:$0xff] %v6083_v22  ;;  %v6092_v19 = vadd.f32 %v1173_v6, %v6002_v2  ;;  %v6095_v35 = vadd.f32 %v1246_v3, %v6006_v61  ;;  %v1175_v62 = vpop.f32.mrb[31].mxu0  ;;  %v1248_v47 = vpop.f32.mrb[47].mxu1  ;;  %v641_v6 = vadd.f32 %v5766_v26, %v5771_v8 }
 0x45b   :  { %7080 = vst [vmem:[#allocation81_spill] sm:$0xff] %v6086_v18  ;;  %7081 = vst [vmem:[#allocation82_spill] sm:$0xff] %v6089_v41  ;;  %v6098_v58 = vadd.f32 %v1175_v62, %v6013_v54  ;;  %v6101_v22 = vadd.f32 %v1248_v47, %v6017_v50  ;;  %v714_v3 = vadd.f32 %v5768_v27, %v5775_v28 }
 0x45c   :  { %7082 = vst [vmem:[#allocation83_spill] sm:$0xff] %v6092_v19  ;;  %7083 = vst [vmem:[#allocation84_spill] sm:$0xff] %v6095_v35 }
 0x45d   :  { %7084 = vst [vmem:[#allocation85_spill] sm:$0xff] %v6098_v58  ;;  %7085 = vst [vmem:[#allocation86_spill] sm:$0xff] %v6101_v22 }
 0x45f   :  { %v1477_v35 = vpop.f32.mrb[32].mxu0  ;;  %v1518_v19 = vpop.f32.mrb[48].mxu1 }
 0x460   :  { %v1525_v41 = vadd.f32 %v1477_v35, %v639_v53  ;;  %v1527_v62 = vadd.f32 %v1518_v19, %v712_v57  ;;  %v1479_v58 = vpop.f32.mrb[33].mxu0  ;;  %v1520_v18 = vpop.f32.mrb[49].mxu1 }
 0x461   :  { %v1526_v47 = vadd.f32 %v1479_v58, %v641_v6  ;;  %v1528_v22 = vadd.f32 %v1520_v18, %v714_v3  ;;  %v1481_v50 = vpop.f32.mrb[34].mxu0  ;;  %v1522_v54 = vpop.f32.mrb[50].mxu1 }
 0x462   :  { %v4164_v24 = vmul.f32 -1.442695, %v1525_v41  ;;  %v1482_v25 = vpop.f32.mrb[35].mxu0  ;;  %v1523_v61 = vpop.f32.mrb[51].mxu1 }
 0x463   :  { %v4165_v7 = vmul.f32 -1.442695, %v1526_v47  ;;  %v4166_v34 = vmul.f32 -1.442695, %v1528_v22 }
 0x464   :  { %4710 = vpow2.f32 %v4164_v24 }
 0x465   :  { %4712 = vpow2.f32 %v4165_v7 }
 0x466   :  { %4714 = vpow2.f32 %v4166_v34 }
 0x467   :  { %4716 = vtanh.f32 %v1527_v62 }
 0x46e   :  { %v4711_v26 = vpop.eup %4710 }
 0x46f   :  { %v4713_v8 = vpop.eup %4712  ;;  %v1532_v27 = vadd.f32 1.0, %v4711_v26 }
 0x470   :  { %v1538_v28 = vadd.f32 1.0, %v4713_v8  ;;  %v4715_v35 = vpop.eup %4714 }
 0x471   :  { %4718 = vrcp.f32 %v1532_v27  ;;  %v4717_v19 = vpop.eup %4716  ;;  %v1545_v41 = vadd.f32 1.0, %v4715_v35 }
 0x472   :  { %4720 = vrcp.f32 %v1538_v28 }
 0x473   :  { %4722 = vrcp.f32 %v1545_v41 }
 0x47b   :  { %v4719_v18 = vpop.eup %4718 }
 0x47c   :  { %v4721_v50 = vpop.eup %4720  ;;  %v1549_v54 = vmul.f32 %v4719_v18, %v4717_v19 }
 0x47d   :  { %v1548_v58 = vmul.f32 0.0, %v4721_v50  ;;  %v4723_v22 = vpop.eup %4722 }
 0x47f   :  { %v6111_v61 = vadd.f32 %v1549_v54, %v1548_v58 }
 0x481   :  { %4724 = vtanh.f32 %v6111_v61 }
 0x48b   :  { %v4725_v53 = vpop.eup %4724 }
 0x48c   :  { %v1552_v57 = vmul.f32 %v4725_v53, %v4723_v22 }
 0x48e   :  { %v1553_v6 = vpack.c.bf16 %v1552_v57, %v1552_v57 }
 0x490   :  { %1587 = vmatmul.mubr.bf16.vlgmr.msra.gmra.mrb[36].mxu0 %v1553_v6  ;;  %1628 = vmatmul.mubr.bf16.vlgmr.msra.gmra.mrb[52].mxu1 %v1553_v6 }
 0x491   :  { %1666 = vmatpush1.bf16.msra.mxu0 %v5861_v59  ;;  %1707 = vmatpush1.bf16.msra.mxu1 %v5863_v60 }
 0x492   :  { %1667 = vmatprep.subr.bf16.mxu0 %v5865_v1  ;;  %1708 = vmatprep.subr.bf16.mxu1 %v5867_v4 }
 0x493   :  { %1697 = vmatprep.mubr.bf16.mxu0 %v7048_v36  ;;  %1738 = vmatprep.mubr.bf16.mxu1 %v7048_v36 }
 0x495   :  { %1668 = vmatpush1.bf16.msra.mxu0 %v5871_v5  ;;  %1709 = vmatpush1.bf16.msra.mxu1 %v5873_v10 }
 0x496   :  { %1669 = vmatprep.subr.bf16.mxu0 %v5877_v14  ;;  %1710 = vmatprep.subr.bf16.mxu1 %v5879_v15 }
 0x499   :  { %1670 = vmatpush1.bf16.msra.mxu0 %v5885_v49  ;;  %1711 = vmatpush1.bf16.msra.mxu1 %v5887_v51 }
 0x49a   :  { %1671 = vmatprep.subr.bf16.mxu0 %v5891_v56  ;;  %1712 = vmatprep.subr.bf16.mxu1 %v5893_v63 }
 0x49d   :  { %1672 = vmatpush1.bf16.msra.mxu0 %v5897_v11  ;;  %1713 = vmatpush1.bf16.msra.mxu1 %v5899_v33 }
 0x49e   :  { %1673 = vmatprep.subr.bf16.mxu0 %v5903_v30  ;;  %1714 = vmatprep.subr.bf16.mxu1 %v5905_v44 }
 0x4a1   :  { %1674 = vmatpush1.bf16.msra.mxu0 %v5911_v55  ;;  %1715 = vmatpush1.bf16.msra.mxu1 %v5913_v40 }
 0x4a2   :  { %1675 = vmatprep.subr.bf16.mxu0 %v5917_v23  ;;  %1716 = vmatprep.subr.bf16.mxu1 %v5919_v20 }
 0x4a5   :  { %1676 = vmatpush1.bf16.msra.mxu0 %v5923_v0  ;;  %1717 = vmatpush1.bf16.msra.mxu1 %v5925_v48 }
 0x4a6   :  { %1677 = vmatprep.subr.bf16.mxu0 %v5929_v45  ;;  %1718 = vmatprep.subr.bf16.mxu1 %v5931_v39 }
 0x4a9   :  { %1678 = vmatpush1.bf16.msra.mxu0 %v5937_v52  ;;  %1719 = vmatpush1.bf16.msra.mxu1 %v5939_v29 }
 0x4aa   :  { %1679 = vmatprep.subr.bf16.mxu0 %v5943_v21  ;;  %1720 = vmatprep.subr.bf16.mxu1 %v5945_v13 }
 0x4ad   :  { %1680 = vmatpush1.bf16.msra.mxu0 %v5949_v12  ;;  %1721 = vmatpush1.bf16.msra.mxu1 %v5951_v9 }
 0x4ae   :  { %1776 = vmatprep.subr.bf16.mxu0 %v5738_v16  ;;  %1817 = vmatprep.subr.bf16.mxu1 %v5740_v17 }
 0x563   :  { %v1588_v3 = vpop.f32.mrb[36].mxu0  ;;  %v1629_v62 = vpop.f32.mrb[52].mxu1 }
 0x564   :  { %v1636_v47 = vadd.f32 %v1588_v3, %v5778_v31  ;;  %v1638_v24 = vadd.f32 %v1629_v62, %v5781_v32  ;;  %v1590_v25 = vpop.f32.mrb[37].mxu0  ;;  %v1631_v7 = vpop.f32.mrb[53].mxu1 }
 0x565   :  { %v1637_v34 = vadd.f32 %v1590_v25, %v5784_v37  ;;  %v1639_v26 = vadd.f32 %v1631_v7, %v5787_v38  ;;  %v1592_v8 = vpop.f32.mrb[38].mxu0  ;;  %v1633_v27 = vpop.f32.mrb[54].mxu1 }
 0x566   :  { %v4167_v28 = vmul.f32 -1.442695, %v1636_v47  ;;  %v1593_v35 = vpop.f32.mrb[39].mxu0  ;;  %v1634_v19 = vpop.f32.mrb[55].mxu1 }
 0x567   :  { %v4168_v18 = vmul.f32 -1.442695, %v1637_v34  ;;  %v4169_v50 = vmul.f32 -1.442695, %v1639_v26  ;;  %v7086_v35 = vld [vmem:[#allocation31_spill] sm:$0xff] }
 0x568   :  { %4726 = vpow2.f32 %v4167_v28 }
 0x569   :  { %4728 = vpow2.f32 %v4168_v18 }
 0x56a   :  { %4730 = vpow2.f32 %v4169_v50 }
 0x56b   :  { %4732 = vtanh.f32 %v1638_v24 }
 0x572   :  { %v4727_v54 = vpop.eup %4726 }
 0x573   :  { %v4729_v41 = vpop.eup %4728  ;;  %v1643_v31 = vadd.f32 1.0, %v4727_v54 }
 0x574   :  { %v1649_v32 = vadd.f32 1.0, %v4729_v41  ;;  %v4731_v37 = vpop.eup %4730 }
 0x575   :  { %4734 = vrcp.f32 %v1643_v31  ;;  %v4733_v58 = vpop.eup %4732  ;;  %v1656_v57 = vadd.f32 1.0, %v4731_v37 }
 0x576   :  { %4736 = vrcp.f32 %v1649_v32 }
 0x577   :  { %4738 = vrcp.f32 %v1656_v57 }
 0x57f   :  { %v4735_v38 = vpop.eup %4734 }
 0x580   :  { %v4737_v22 = vpop.eup %4736  ;;  %v1660_v53 = vmul.f32 %v4735_v38, %v4733_v58 }
 0x581   :  { %v1659_v6 = vmul.f32 %v4737_v22, %v6111_v61  ;;  %v4739_v62 = vpop.eup %4738 }
 0x583   :  { %v6153_v3 = vadd.f32 %v1660_v53, %v1659_v6 }
 0x585   :  { %4740 = vtanh.f32 %v6153_v3 }
 0x58f   :  { %v4741_v47 = vpop.eup %4740 }
 0x590   :  { %v1663_v25 = vmul.f32 %v4741_v47, %v4739_v62 }
 0x592   :  { %v1664_v24 = vpack.c.bf16 %v1663_v25, %v1663_v25 }
 0x594   :  { %1698 = vmatmul.mubr.bf16.vlgmr.msra.gmra.mrb[40].mxu0 %v1664_v24  ;;  %1739 = vmatmul.mubr.bf16.vlgmr.msra.gmra.mrb[56].mxu1 %v1664_v24 }
 0x595   :  { %1777 = vmatpush1.bf16.msra.mxu0 %v5861_v59  ;;  %1818 = vmatpush1.bf16.msra.mxu1 %v5863_v60 }
 0x596   :  { %1778 = vmatprep.subr.bf16.mxu0 %v5865_v1  ;;  %1819 = vmatprep.subr.bf16.mxu1 %v5867_v4 }
 0x597   :  { %1808 = vmatprep.mubr.bf16.mxu0 %v7048_v36  ;;  %1849 = vmatprep.mubr.bf16.mxu1 %v7048_v36 }
 0x599   :  { %1779 = vmatpush1.bf16.msra.mxu0 %v5871_v5  ;;  %1820 = vmatpush1.bf16.msra.mxu1 %v5873_v10 }
 0x59a   :  { %1780 = vmatprep.subr.bf16.mxu0 %v5877_v14  ;;  %1821 = vmatprep.subr.bf16.mxu1 %v5879_v15 }
 0x59d   :  { %1781 = vmatpush1.bf16.msra.mxu0 %v5885_v49  ;;  %1822 = vmatpush1.bf16.msra.mxu1 %v5887_v51 }
 0x59e   :  { %1782 = vmatprep.subr.bf16.mxu0 %v5891_v56  ;;  %1823 = vmatprep.subr.bf16.mxu1 %v5893_v63 }
 0x5a1   :  { %1783 = vmatpush1.bf16.msra.mxu0 %v5897_v11  ;;  %1824 = vmatpush1.bf16.msra.mxu1 %v5899_v33 }
 0x5a2   :  { %1784 = vmatprep.subr.bf16.mxu0 %v5903_v30  ;;  %1825 = vmatprep.subr.bf16.mxu1 %v5905_v44 }
 0x5a5   :  { %1785 = vmatpush1.bf16.msra.mxu0 %v5911_v55  ;;  %1826 = vmatpush1.bf16.msra.mxu1 %v5913_v40 }
 0x5a6   :  { %1786 = vmatprep.subr.bf16.mxu0 %v5917_v23  ;;  %1827 = vmatprep.subr.bf16.mxu1 %v5919_v20 }
 0x5a9   :  { %1787 = vmatpush1.bf16.msra.mxu0 %v5923_v0  ;;  %1828 = vmatpush1.bf16.msra.mxu1 %v5925_v48 }
 0x5aa   :  { %1788 = vmatprep.subr.bf16.mxu0 %v5929_v45  ;;  %1829 = vmatprep.subr.bf16.mxu1 %v5931_v39 }
 0x5ad   :  { %1789 = vmatpush1.bf16.msra.mxu0 %v5937_v52  ;;  %1830 = vmatpush1.bf16.msra.mxu1 %v5939_v29 }
 0x5ae   :  { %1790 = vmatprep.subr.bf16.mxu0 %v5943_v21  ;;  %1831 = vmatprep.subr.bf16.mxu1 %v5945_v13 }
 0x5b1   :  { %1791 = vmatpush1.bf16.msra.mxu0 %v5949_v12  ;;  %1832 = vmatpush1.bf16.msra.mxu1 %v5951_v9 }
 0x5b2   :  { %1887 = vmatprep.subr.bf16.mxu0 %v5738_v16  ;;  %1928 = vmatprep.subr.bf16.mxu1 %v5740_v17 }
 0x667   :  { %v1699_v61 = vpop.f32.mrb[40].mxu0  ;;  %v1740_v7 = vpop.f32.mrb[56].mxu1 }
 0x668   :  { %v1747_v34 = vadd.f32 %v1699_v61, %v5790_v42  ;;  %v1749_v26 = vadd.f32 %v1740_v7, %v5793_v43  ;;  %v1701_v8 = vpop.f32.mrb[41].mxu0  ;;  %v1742_v27 = vpop.f32.mrb[57].mxu1 }
 0x669   :  { %v1748_v28 = vadd.f32 %v1701_v8, %v5796_v46  ;;  %v1750_v19 = vadd.f32 %v1742_v27, %v7086_v35  ;;  %v1703_v18 = vpop.f32.mrb[42].mxu0  ;;  %v1744_v50 = vpop.f32.mrb[58].mxu1  ;;  %v7087_v8 = vld [vmem:[#allocation32_spill] sm:$0xff] }
 0x66a   :  { %v4170_v54 = vmul.f32 -1.442695, %v1747_v34  ;;  %v1704_v41 = vpop.f32.mrb[43].mxu0  ;;  %v1745_v31 = vpop.f32.mrb[59].mxu1  ;;  %v7089_v50 = vld [vmem:[#allocation34_spill] sm:$0xff] }
 0x66b   :  { %v4171_v32 = vmul.f32 -1.442695, %v1748_v28  ;;  %v4172_v37 = vmul.f32 -1.442695, %v1750_v19  ;;  %v7088_v28 = vld [vmem:[#allocation33_spill] sm:$0xff]  ;;  %v7090_v41 = vld [vmem:[#allocation35_spill] sm:$0xff] }
 0x66c   :  { %4742 = vpow2.f32 %v4170_v54 }
 0x66d   :  { %4744 = vpow2.f32 %v4171_v32 }
 0x66e   :  { %4746 = vpow2.f32 %v4172_v37 }
 0x66f   :  { %4748 = vtanh.f32 %v1749_v26 }
 0x676   :  { %v4743_v58 = vpop.eup %4742 }
 0x677   :  { %v4745_v38 = vpop.eup %4744  ;;  %v1754_v42 = vadd.f32 1.0, %v4743_v58 }
 0x678   :  { %v1760_v43 = vadd.f32 1.0, %v4745_v38  ;;  %v4747_v46 = vpop.eup %4746 }
 0x679   :  { %4750 = vrcp.f32 %v1754_v42  ;;  %v4749_v22 = vpop.eup %4748  ;;  %v1767_v62 = vadd.f32 1.0, %v4747_v46 }
 0x67a   :  { %4752 = vrcp.f32 %v1760_v43 }
 0x67b   :  { %4754 = vrcp.f32 %v1767_v62 }
 0x683   :  { %v4751_v53 = vpop.eup %4750 }
 0x684   :  { %v4753_v57 = vpop.eup %4752  ;;  %v1771_v6 = vmul.f32 %v4751_v53, %v4749_v22 }
 0x685   :  { %v1770_v47 = vmul.f32 %v4753_v57, %v6153_v3  ;;  %v4755_v24 = vpop.eup %4754 }
 0x687   :  { %v6195_v25 = vadd.f32 %v1771_v6, %v1770_v47 }
 0x689   :  { %4756 = vtanh.f32 %v6195_v25 }
 0x693   :  { %v4757_v61 = vpop.eup %4756 }
 0x694   :  { %v1774_v7 = vmul.f32 %v4757_v61, %v4755_v24 }
 0x696   :  { %v1775_v34 = vpack.c.bf16 %v1774_v7, %v1774_v7 }
 0x698   :  { %1809 = vmatmul.mubr.bf16.vlgmr.msra.gmra.mrb[44].mxu0 %v1775_v34  ;;  %1850 = vmatmul.mubr.bf16.vlgmr.msra.gmra.mrb[60].mxu1 %v1775_v34 }
 0x699   :  { %1888 = vmatpush1.bf16.msra.mxu0 %v5861_v59  ;;  %1929 = vmatpush1.bf16.msra.mxu1 %v5863_v60 }
 0x69a   :  { %1889 = vmatprep.subr.bf16.mxu0 %v5865_v1  ;;  %1930 = vmatprep.subr.bf16.mxu1 %v5867_v4 }
 0x69b   :  { %1919 = vmatprep.mubr.bf16.mxu0 %v7048_v36  ;;  %1960 = vmatprep.mubr.bf16.mxu1 %v7048_v36 }
 0x69d   :  { %1890 = vmatpush1.bf16.msra.mxu0 %v5871_v5  ;;  %1931 = vmatpush1.bf16.msra.mxu1 %v5873_v10 }
 0x69e   :  { %1891 = vmatprep.subr.bf16.mxu0 %v5877_v14  ;;  %1932 = vmatprep.subr.bf16.mxu1 %v5879_v15 }
 0x6a1   :  { %1892 = vmatpush1.bf16.msra.mxu0 %v5885_v49  ;;  %1933 = vmatpush1.bf16.msra.mxu1 %v5887_v51 }
 0x6a2   :  { %1893 = vmatprep.subr.bf16.mxu0 %v5891_v56  ;;  %1934 = vmatprep.subr.bf16.mxu1 %v5893_v63 }
 0x6a5   :  { %1894 = vmatpush1.bf16.msra.mxu0 %v5897_v11  ;;  %1935 = vmatpush1.bf16.msra.mxu1 %v5899_v33 }
 0x6a6   :  { %1895 = vmatprep.subr.bf16.mxu0 %v5903_v30  ;;  %1936 = vmatprep.subr.bf16.mxu1 %v5905_v44 }
 0x6a9   :  { %1896 = vmatpush1.bf16.msra.mxu0 %v5911_v55  ;;  %1937 = vmatpush1.bf16.msra.mxu1 %v5913_v40 }
 0x6aa   :  { %1897 = vmatprep.subr.bf16.mxu0 %v5917_v23  ;;  %1938 = vmatprep.subr.bf16.mxu1 %v5919_v20 }
 0x6ad   :  { %1898 = vmatpush1.bf16.msra.mxu0 %v5923_v0  ;;  %1939 = vmatpush1.bf16.msra.mxu1 %v5925_v48 }
 0x6ae   :  { %1899 = vmatprep.subr.bf16.mxu0 %v5929_v45  ;;  %1940 = vmatprep.subr.bf16.mxu1 %v5931_v39 }
 0x6b1   :  { %1900 = vmatpush1.bf16.msra.mxu0 %v5937_v52  ;;  %1941 = vmatpush1.bf16.msra.mxu1 %v5939_v29 }
 0x6b2   :  { %1901 = vmatprep.subr.bf16.mxu0 %v5943_v21  ;;  %1942 = vmatprep.subr.bf16.mxu1 %v5945_v13 }
 0x6b5   :  { %1902 = vmatpush1.bf16.msra.mxu0 %v5949_v12  ;;  %1943 = vmatpush1.bf16.msra.mxu1 %v5951_v9 }
 0x6b6   :  { %1998 = vmatprep.subr.bf16.mxu0 %v5738_v16  ;;  %2039 = vmatprep.subr.bf16.mxu1 %v5740_v17 }
 0x76b   :  { %v1810_v3 = vpop.f32.mrb[44].mxu0  ;;  %v1851_v26 = vpop.f32.mrb[60].mxu1 }
 0x76c   :  { %v1858_v27 = vadd.f32 %v1810_v3, %v7087_v8  ;;  %v1860_v35 = vadd.f32 %v1851_v26, %v7088_v28  ;;  %v1812_v19 = vpop.f32.mrb[45].mxu0  ;;  %v1853_v18 = vpop.f32.mrb[61].mxu1 }
 0x76d   :  { %v1859_v54 = vadd.f32 %v1812_v19, %v7089_v50  ;;  %v1861_v31 = vadd.f32 %v1853_v18, %v7090_v41  ;;  %v1814_v32 = vpop.f32.mrb[46].mxu0  ;;  %v1855_v37 = vpop.f32.mrb[62].mxu1 }
 0x76e   :  { %v4173_v58 = vmul.f32 -1.442695, %v1858_v27  ;;  %v1815_v38 = vpop.f32.mrb[47].mxu0  ;;  %v1856_v42 = vpop.f32.mrb[63].mxu1 }
 0x76f   :  { %v4174_v16 = vmul.f32 -1.442695, %v1859_v54  ;;  %v4175_v17 = vmul.f32 -1.442695, %v1861_v31 }
 0x770   :  { %4758 = vpow2.f32 %v4173_v58 }
 0x771   :  { %4760 = vpow2.f32 %v4174_v16 }
 0x772   :  { %4762 = vpow2.f32 %v4175_v17 }
 0x773   :  { %4764 = vtanh.f32 %v1860_v35 }
 0x77a   :  { %v4759_v43 = vpop.eup %4758 }
 0x77b   :  { %v4761_v46 = vpop.eup %4760  ;;  %v1865_v22 = vadd.f32 1.0, %v4759_v43 }
 0x77c   :  { %v1871_v53 = vadd.f32 1.0, %v4761_v46  ;;  %v4763_v57 = vpop.eup %4762 }
 0x77d   :  { %4766 = vrcp.f32 %v1865_v22  ;;  %v4765_v6 = vpop.eup %4764  ;;  %v1878_v61 = vadd.f32 1.0, %v4763_v57 }
 0x77e   :  { %4768 = vrcp.f32 %v1871_v53 }
 0x77f   :  { %4770 = vrcp.f32 %v1878_v61  ;;  %v6286_v61 = vld [vmem:[#allocation6] ss:$16 sps:$4 sm:$0xff]  }
 0x787   :  { %v4767_v62 = vpop.eup %4766 }
 0x788   :  { %v4769_v47 = vpop.eup %4768  ;;  %v1882_v24 = vmul.f32 %v4767_v62, %v4765_v6 }
 0x789   :  { %v1881_v7 = vmul.f32 %v4769_v47, %v6195_v25  ;;  %v4771_v3 = vpop.eup %4770  ;;  %v7094_v25 = vld [vmem:[#allocation39_spill] sm:$0xff] }
 0x78b   :  { %v6237_v34 = vadd.f32 %v1882_v24, %v1881_v7  ;;  %v6289_v7 = vld [vmem:[#allocation6 + $0x8] ss:$16 sps:$4 sm:$0xff]  }
 0x78d   :  { %4772 = vtanh.f32 %v6237_v34 }
 0x797   :  { %v4773_v26 = vpop.eup %4772 }
 0x798   :  { %v1885_v8 = vmul.f32 %v4773_v26, %v4771_v3  ;;  %v6295_v3 = vld [vmem:[#allocation6 + $0x2c] ss:$16 sps:$4 sm:$0xff]   ;;  %v6300_v26 = vld [vmem:[#allocation6 + $0x20] ss:$16 sps:$4 sm:$0xff]  }
 0x79a   :  { %v1886_v27 = vpack.c.bf16 %v1885_v8, %v1885_v8  ;;  %v6303_v8 = vld [vmem:[#allocation6 + $0x28] ss:$16 sps:$4 sm:$0xff]  }
 0x79c   :  { %1920 = vmatmul.mubr.bf16.vlgmr.msra.gmra.mrb[48].mxu0 %v1886_v27  ;;  %1961 = vmatmul.mubr.bf16.vlgmr.msra.gmra.mrb[64].mxu1 %v1886_v27  ;;  %v6306_v27 = vld [vmem:[#allocation6 + $0x44] ss:$16 sps:$4 sm:$0xff]  }
 0x79d   :  { %1999 = vmatpush1.bf16.msra.mxu0 %v5861_v59  ;;  %2040 = vmatpush1.bf16.msra.mxu1 %v5863_v60  ;;  %v6272_v59 = vld [vmem:[#allocation6 + $0x4] ss:$16 sps:$4 sm:$0xff]   ;;  %v6275_v60 = vld [vmem:[#allocation6 + $0xc] ss:$16 sps:$4 sm:$0xff]  }
 0x79e   :  { %2000 = vmatprep.subr.bf16.mxu0 %v5865_v1  ;;  %2041 = vmatprep.subr.bf16.mxu1 %v5867_v4 }
 0x79f   :  { %2030 = vmatprep.mubr.bf16.mxu0 %v7048_v36  ;;  %2071 = vmatprep.mubr.bf16.mxu1 %v7048_v36 }
 0x7a1   :  { %2001 = vmatpush1.bf16.msra.mxu0 %v5871_v5  ;;  %2042 = vmatpush1.bf16.msra.mxu1 %v5873_v10  ;;  %v7091_v5 = vld [vmem:[#allocation36_spill] sm:$0xff] }
 0x7a2   :  { %2002 = vmatprep.subr.bf16.mxu0 %v5877_v14  ;;  %2043 = vmatprep.subr.bf16.mxu1 %v5879_v15  ;;  %v7092_v14 = vld [vmem:[#allocation37_spill] sm:$0xff] }
 0x7a5   :  { %2003 = vmatpush1.bf16.msra.mxu0 %v5885_v49  ;;  %2044 = vmatpush1.bf16.msra.mxu1 %v5887_v51 }
 0x7a6   :  { %2004 = vmatprep.subr.bf16.mxu0 %v5891_v56  ;;  %2045 = vmatprep.subr.bf16.mxu1 %v5893_v63  ;;  %v7093_v56 = vld [vmem:[#allocation38_spill] sm:$0xff] }
 0x7a9   :  { %2005 = vmatpush1.bf16.msra.mxu0 %v5897_v11  ;;  %2046 = vmatpush1.bf16.msra.mxu1 %v5899_v33 }
 0x7aa   :  { %2006 = vmatprep.subr.bf16.mxu0 %v5903_v30  ;;  %2047 = vmatprep.subr.bf16.mxu1 %v5905_v44 }
 0x7ad   :  { %2007 = vmatpush1.bf16.msra.mxu0 %v5911_v55  ;;  %2048 = vmatpush1.bf16.msra.mxu1 %v5913_v40 }
 0x7ae   :  { %2008 = vmatprep.subr.bf16.mxu0 %v5917_v23  ;;  %2049 = vmatprep.subr.bf16.mxu1 %v5919_v20 }
 0x7b1   :  { %2009 = vmatpush1.bf16.msra.mxu0 %v5923_v0  ;;  %2050 = vmatpush1.bf16.msra.mxu1 %v5925_v48 }
 0x7b2   :  { %2010 = vmatprep.subr.bf16.mxu0 %v5929_v45  ;;  %2051 = vmatprep.subr.bf16.mxu1 %v5931_v39 }
 0x7b5   :  { %2011 = vmatpush1.bf16.msra.mxu0 %v5937_v52  ;;  %2052 = vmatpush1.bf16.msra.mxu1 %v5939_v29 }
 0x7b6   :  { %2012 = vmatprep.subr.bf16.mxu0 %v5943_v21  ;;  %2053 = vmatprep.subr.bf16.mxu1 %v5945_v13 }
 0x7b9   :  { %2013 = vmatpush1.bf16.msra.mxu0 %v5949_v12  ;;  %2054 = vmatpush1.bf16.msra.mxu1 %v5951_v9 }
 0x7ba   :  { %2109 = vmatprep.subr.bf16.mxu0 %v6272_v59  ;;  %2150 = vmatprep.subr.bf16.mxu1 %v6275_v60 }
 0x86f   :  { %v1921_v1 = vpop.f32.mrb[48].mxu0  ;;  %v1962_v4 = vpop.f32.mrb[64].mxu1 }
 0x870   :  { %v1969_v10 = vadd.f32 %v1921_v1, %v7091_v5  ;;  %v1971_v15 = vadd.f32 %v1962_v4, %v7092_v14  ;;  %v1923_v49 = vpop.f32.mrb[49].mxu0  ;;  %v1964_v51 = vpop.f32.mrb[65].mxu1  ;;  %v6309_v1 = vld [vmem:[#allocation6 + $0x4c] ss:$16 sps:$4 sm:$0xff]   ;;  %v6312_v4 = vld [vmem:[#allocation6 + $0x40] ss:$16 sps:$4 sm:$0xff]  }
 0x871   :  { %v1970_v63 = vadd.f32 %v1923_v49, %v7093_v56  ;;  %v1972_v28 = vadd.f32 %v1964_v51, %v7094_v25  ;;  %v1925_v35 = vpop.f32.mrb[50].mxu0  ;;  %v1966_v19 = vpop.f32.mrb[66].mxu1  ;;  %v6315_v5 = vld [vmem:[#allocation6 + $0x48] ss:$16 sps:$4 sm:$0xff]   ;;  %v6321_v14 = vld [vmem:[#allocation6 + $0x6c] ss:$16 sps:$4 sm:$0xff]  }
 0x872   :  { %v4176_v18 = vmul.f32 -1.442695, %v1969_v10  ;;  %v1926_v50 = vpop.f32.mrb[51].mxu0  ;;  %v1967_v54 = vpop.f32.mrb[67].mxu1  ;;  %v6318_v10 = vld [vmem:[#allocation6 + $0x64] ss:$16 sps:$4 sm:$0xff]  }
 0x873   :  { %v4177_v41 = vmul.f32 -1.442695, %v1970_v63  ;;  %v4178_v31 = vmul.f32 -1.442695, %v1972_v28 }
 0x874   :  { %4774 = vpow2.f32 %v4176_v18 }
 0x875   :  { %4776 = vpow2.f32 %v4177_v41 }
 0x876   :  { %4778 = vpow2.f32 %v4178_v31 }
 0x877   :  { %4780 = vtanh.f32 %v1971_v15 }
 0x87e   :  { %v4775_v32 = vpop.eup %4774 }
 0x87f   :  { %v4777_v37 = vpop.eup %4776  ;;  %v1976_v58 = vadd.f32 1.0, %v4775_v32 }
 0x880   :  { %v1982_v38 = vadd.f32 1.0, %v4777_v37  ;;  %v4779_v42 = vpop.eup %4778  ;;  %v4990_v37 = vld [vmem:[#allocation6 + $0x60] ss:$16 sps:$4 sm:$0xff]  }
 0x881   :  { %4782 = vrcp.f32 %v1976_v58  ;;  %v4781_v16 = vpop.eup %4780  ;;  %v1989_v22 = vadd.f32 1.0, %v4779_v42  ;;  %v4991_v58 = vld [vmem:[#allocation6 + $0x68] ss:$16 sps:$4 sm:$0xff]   ;;  %v4993_v42 = vld [vmem:[#allocation6 + $0x8c] ss:$16 sps:$4 sm:$0xff]  }
 0x882   :  { %4784 = vrcp.f32 %v1982_v38  ;;  %v4992_v38 = vld [vmem:[#allocation6 + $0x84] ss:$16 sps:$4 sm:$0xff]  }
 0x883   :  { %4786 = vrcp.f32 %v1989_v22  ;;  %v4998_v22 = vld [vmem:[#allocation6 + $0xa0] ss:$16 sps:$4 sm:$0xff]  }
 0x88b   :  { %v4783_v17 = vpop.eup %4782 }
 0x88c   :  { %v4785_v43 = vpop.eup %4784  ;;  %v1993_v46 = vmul.f32 %v4783_v17, %v4781_v16  ;;  %v4994_v16 = vld [vmem:[#allocation6 + $0x80] ss:$16 sps:$4 sm:$0xff]   ;;  %v4995_v17 = vld [vmem:[#allocation6 + $0x88] ss:$16 sps:$4 sm:$0xff]  }
 0x88d   :  { %v1992_v53 = vmul.f32 %v4785_v43, %v6237_v34  ;;  %v4787_v6 = vpop.eup %4786  ;;  %v6292_v34 = vld [vmem:[#allocation6 + $0x24] ss:$16 sps:$4 sm:$0xff]  }
 0x88e   :  { %v4996_v43 = vld [vmem:[#allocation6 + $0xa4] ss:$16 sps:$4 sm:$0xff]  }
 0x88f   :  { %v6283_v57 = vadd.f32 %v1993_v46, %v1992_v53  ;;  %v4997_v46 = vld [vmem:[#allocation6 + $0xac] ss:$16 sps:$4 sm:$0xff]   ;;  %v4999_v53 = vld [vmem:[#allocation6 + $0xa8] ss:$16 sps:$4 sm:$0xff]  }
 0x891   :  { %4788 = vtanh.f32 %v6283_v57 }
 0x89b   :  { %v4789_v62 = vpop.eup %4788 }
 0x89c   :  { %v1996_v47 = vmul.f32 %v4789_v62, %v4787_v6  ;;  %v5001_v6 = vld [vmem:[#allocation6 + $0xcc] ss:$16 sps:$4 sm:$0xff]   ;;  %v5002_v62 = vld [vmem:[#allocation6 + $0xc0] ss:$16 sps:$4 sm:$0xff]  }
 0x89e   :  { %v1997_v24 = vpack.c.bf16 %v1996_v47, %v1996_v47  ;;  %v5003_v47 = vld [vmem:[#allocation6 + $0xc8] ss:$16 sps:$4 sm:$0xff]  }
 0x8a0   :  { %2031 = vmatmul.mubr.bf16.vlgmr.msra.gmra.mrb[52].mxu0 %v1997_v24  ;;  %2072 = vmatmul.mubr.bf16.vlgmr.msra.gmra.mrb[68].mxu1 %v1997_v24  ;;  %v5004_v24 = vld [vmem:[#allocation6 + $0xe4] ss:$16 sps:$4 sm:$0xff]  }
 0x8a1   :  { %2110 = vmatpush1.bf16.msra.mxu0 %v6286_v61  ;;  %2151 = vmatpush1.bf16.msra.mxu1 %v6289_v7 }
 0x8a2   :  { %2111 = vmatprep.subr.bf16.mxu0 %v6292_v34  ;;  %2152 = vmatprep.subr.bf16.mxu1 %v6295_v3 }
 0x8a3   :  { %2141 = vmatprep.mubr.bf16.mxu0 %v7048_v36  ;;  %2182 = vmatprep.mubr.bf16.mxu1 %v7048_v36 }
 0x8a5   :  { %2112 = vmatpush1.bf16.msra.mxu0 %v6300_v26  ;;  %2153 = vmatpush1.bf16.msra.mxu1 %v6303_v8 }
 0x8a6   :  { %2113 = vmatprep.subr.bf16.mxu0 %v6306_v27  ;;  %2154 = vmatprep.subr.bf16.mxu1 %v6309_v1 }
 0x8a9   :  { %2114 = vmatpush1.bf16.msra.mxu0 %v6312_v4  ;;  %2155 = vmatpush1.bf16.msra.mxu1 %v6315_v5 }
 0x8aa   :  { %2115 = vmatprep.subr.bf16.mxu0 %v6318_v10  ;;  %2156 = vmatprep.subr.bf16.mxu1 %v6321_v14 }
 0x8ad   :  { %2116 = vmatpush1.bf16.msra.mxu0 %v5897_v11  ;;  %2157 = vmatpush1.bf16.msra.mxu1 %v5899_v33  ;;  %v7097_v11 = vld [vmem:[#allocation42_spill] sm:$0xff]  ;;  %v7098_v33 = vld [vmem:[#allocation43_spill] sm:$0xff] }
 0x8ae   :  { %2117 = vmatprep.subr.bf16.mxu0 %v5903_v30  ;;  %2158 = vmatprep.subr.bf16.mxu1 %v5905_v44 }
 0x8b1   :  { %2118 = vmatpush1.bf16.msra.mxu0 %v5911_v55  ;;  %2159 = vmatpush1.bf16.msra.mxu1 %v5913_v40 }
 0x8b2   :  { %2119 = vmatprep.subr.bf16.mxu0 %v5917_v23  ;;  %2160 = vmatprep.subr.bf16.mxu1 %v5919_v20  ;;  %v7095_v20 = vld [vmem:[#allocation40_spill] sm:$0xff] }
 0x8b5   :  { %2120 = vmatpush1.bf16.msra.mxu0 %v5923_v0  ;;  %2161 = vmatpush1.bf16.msra.mxu1 %v5925_v48 }
 0x8b6   :  { %2121 = vmatprep.subr.bf16.mxu0 %v5929_v45  ;;  %2162 = vmatprep.subr.bf16.mxu1 %v5931_v39  ;;  %v7096_v39 = vld [vmem:[#allocation41_spill] sm:$0xff] }
 0x8b9   :  { %2122 = vmatpush1.bf16.msra.mxu0 %v5937_v52  ;;  %2163 = vmatpush1.bf16.msra.mxu1 %v5939_v29 }
 0x8ba   :  { %2123 = vmatprep.subr.bf16.mxu0 %v5943_v21  ;;  %2164 = vmatprep.subr.bf16.mxu1 %v5945_v13 }
 0x8bd   :  { %2124 = vmatpush1.bf16.msra.mxu0 %v5949_v12  ;;  %2165 = vmatpush1.bf16.msra.mxu1 %v5951_v9 }
 0x8be   :  { %2220 = vmatprep.subr.bf16.mxu0 %v6272_v59  ;;  %2261 = vmatprep.subr.bf16.mxu1 %v6275_v60 }
 0x973   :  { %v2032_v0 = vpop.f32.mrb[52].mxu0  ;;  %v2073_v40 = vpop.f32.mrb[68].mxu1 }
 0x974   :  { %v2080_v23 = vadd.f32 %v2032_v0, %v7095_v20  ;;  %v2082_v45 = vadd.f32 %v2073_v40, %v7096_v39  ;;  %v2034_v48 = vpop.f32.mrb[53].mxu0  ;;  %v2075_v29 = vpop.f32.mrb[69].mxu1  ;;  %v7102_v0 = vld [vmem:[#allocation46_spill] sm:$0xff]  ;;  %v7103_v20 = vld [vmem:[#allocation47_spill] sm:$0xff] }
 0x975   :  { %v2081_v21 = vadd.f32 %v2034_v48, %v7097_v11  ;;  %v2083_v13 = vadd.f32 %v2075_v29, %v7098_v33  ;;  %v2036_v30 = vpop.f32.mrb[54].mxu0  ;;  %v2077_v12 = vpop.f32.mrb[70].mxu1 }
 0x976   :  { %v4179_v44 = vmul.f32 -1.442695, %v2080_v23  ;;  %v2037_v9 = vpop.f32.mrb[55].mxu0  ;;  %v2078_v55 = vpop.f32.mrb[71].mxu1 }
 0x977   :  { %v4180_v52 = vmul.f32 -1.442695, %v2081_v21  ;;  %v4181_v59 = vmul.f32 -1.442695, %v2083_v13 }
 0x978   :  { %4790 = vpow2.f32 %v4179_v44 }
 0x979   :  { %4792 = vpow2.f32 %v4180_v52 }
 0x97a   :  { %4794 = vpow2.f32 %v4181_v59 }
 0x97b   :  { %4796 = vtanh.f32 %v2082_v45 }
 0x982   :  { %v4791_v60 = vpop.eup %4790 }
 0x983   :  { %v4793_v15 = vpop.eup %4792  ;;  %v2087_v49 = vadd.f32 1.0, %v4791_v60 }
 0x984   :  { %v2093_v51 = vadd.f32 1.0, %v4793_v15  ;;  %v4795_v56 = vpop.eup %4794 }
 0x985   :  { %4798 = vrcp.f32 %v2087_v49  ;;  %v4797_v63 = vpop.eup %4796  ;;  %v2100_v19 = vadd.f32 1.0, %v4795_v56 }
 0x986   :  { %4800 = vrcp.f32 %v2093_v51 }
 0x987   :  { %4802 = vrcp.f32 %v2100_v19  ;;  %v4619_v19 = vld [vmem:[%s6975_s6 + $0x8] sm:$0xff]  }
 0x98f   :  { %v4799_v25 = vpop.eup %4798 }
 0x990   :  { %v4801_v28 = vpop.eup %4800  ;;  %v2104_v35 = vmul.f32 %v4799_v25, %v4797_v63 }
 0x991   :  { %v2103_v18 = vmul.f32 %v4801_v28, %v6283_v57  ;;  %v4803_v54 = vpop.eup %4802  ;;  %v5000_v57 = vld [vmem:[#allocation6 + $0xc4] ss:$16 sps:$4 sm:$0xff]  }
 0x993   :  { %v6349_v50 = vadd.f32 %v2104_v35, %v2103_v18  ;;  %v4618_v35 = vld [vmem:[%s6975_s6] sm:$0xff]   ;;  %v4620_v18 = vld [vmem:[%s6975_s6 + $0x10] sm:$0xff]  }
 0x995   :  { %4804 = vtanh.f32 %v6349_v50 }
 0x99f   :  { %v4805_v41 = vpop.eup %4804 }
 0x9a0   :  { %v2107_v31 = vmul.f32 %v4805_v41, %v4803_v54  ;;  %v4622_v54 = vld [vmem:[%s6975_s6 + $0x20] sm:$0xff]   ;;  %v4623_v41 = vld [vmem:[%s6975_s6 + $0x28] sm:$0xff]  }
 0x9a2   :  { %v2108_v32 = vpack.c.bf16 %v2107_v31, %v2107_v31  ;;  %v4624_v31 = vld [vmem:[%s6975_s6 + $0x30] sm:$0xff]  }
 0x9a4   :  { %2142 = vmatmul.mubr.bf16.vlgmr.msra.gmra.mrb[56].mxu0 %v2108_v32  ;;  %2183 = vmatmul.mubr.bf16.vlgmr.msra.gmra.mrb[72].mxu1 %v2108_v32  ;;  %v4625_v32 = vld [vmem:[%s6975_s6 + $0x38] sm:$0xff]  }
 0x9a5   :  { %2221 = vmatpush1.bf16.msra.mxu0 %v6286_v61  ;;  %2262 = vmatpush1.bf16.msra.mxu1 %v6289_v7  ;;  %v5005_v61 = vld [vmem:[#allocation6 + $0xec] ss:$16 sps:$4 sm:$0xff]   ;;  %v5006_v7 = vld [vmem:[#allocation6 + $0xe0] ss:$16 sps:$4 sm:$0xff]  }
 0x9a6   :  { %2222 = vmatprep.subr.bf16.mxu0 %v6292_v34  ;;  %2263 = vmatprep.subr.bf16.mxu1 %v6295_v3  ;;  %v5007_v34 = vld [vmem:[#allocation6 + $0xe8] ss:$16 sps:$4 sm:$0xff]   ;;  %v7099_v3 = vmov 0.0  }
 0x9a7   :  { %2252 = vmatprep.mubr.bf16.mxu0 %v7048_v36  ;;  %2293 = vmatprep.mubr.bf16.mxu1 %v7048_v36 }
 0x9a9   :  { %2223 = vmatpush1.bf16.msra.mxu0 %v6300_v26  ;;  %2264 = vmatpush1.bf16.msra.mxu1 %v6303_v8 }
 0x9aa   :  { %2224 = vmatprep.subr.bf16.mxu0 %v6306_v27  ;;  %2265 = vmatprep.subr.bf16.mxu1 %v6309_v1  ;;  %v7100_v27 = vld [vmem:[#allocation44_spill] sm:$0xff] }
 0x9ad   :  { %2225 = vmatpush1.bf16.msra.mxu0 %v6312_v4  ;;  %2266 = vmatpush1.bf16.msra.mxu1 %v6315_v5  ;;  %v7101_v4 = vld [vmem:[#allocation45_spill] sm:$0xff] }
 0x9ae   :  { %2226 = vmatprep.subr.bf16.mxu0 %v6318_v10  ;;  %2267 = vmatprep.subr.bf16.mxu1 %v6321_v14 }
 0x9b1   :  { %2227 = vmatpush1.bf16.msra.mxu0 %v4990_v37  ;;  %2268 = vmatpush1.bf16.msra.mxu1 %v4991_v58 }
 0x9b2   :  { %2228 = vmatprep.subr.bf16.mxu0 %v4992_v38  ;;  %2269 = vmatprep.subr.bf16.mxu1 %v4993_v42  ;;  %v7104_v38 = vld [vmem:[#allocation48_spill] sm:$0xff] }
 0x9b5   :  { %2229 = vmatpush1.bf16.msra.mxu0 %v4994_v16  ;;  %2270 = vmatpush1.bf16.msra.mxu1 %v4995_v17  ;;  %v7105_v16 = vld [vmem:[#allocation49_spill] sm:$0xff] }
 0x9b6   :  { %2230 = vmatprep.subr.bf16.mxu0 %v4996_v43  ;;  %2271 = vmatprep.subr.bf16.mxu1 %v4997_v46 }
 0x9b9   :  { %2231 = vmatpush1.bf16.msra.mxu0 %v4998_v22  ;;  %2272 = vmatpush1.bf16.msra.mxu1 %v4999_v53  ;;  %v7106_v22 = vld [vmem:[#allocation50_spill] sm:$0xff] }
 0x9ba   :  { %2232 = vmatprep.subr.bf16.mxu0 %v5000_v57  ;;  %2273 = vmatprep.subr.bf16.mxu1 %v5001_v6  ;;  %v7107_v57 = vld [vmem:[#allocation51_spill] sm:$0xff] }
 0x9bd   :  { %2233 = vmatpush1.bf16.msra.mxu0 %v5002_v62  ;;  %2274 = vmatpush1.bf16.msra.mxu1 %v5003_v47 }
 0x9be   :  { %2234 = vmatprep.subr.bf16.mxu0 %v5004_v24  ;;  %2275 = vmatprep.subr.bf16.mxu1 %v5005_v61 }
 0x9c1   :  { %2235 = vmatpush1.bf16.msra.mxu0 %v5006_v7  ;;  %2276 = vmatpush1.bf16.msra.mxu1 %v5007_v34 }
 0x9c2   :  { %4366 = vmatprep.subr.bf16.mxu0 %v7099_v3  ;;  %4386 = vmatprep.subr.bf16.mxu1 %v7099_v3 }
 0xa77   :  { %v2143_v26 = vpop.f32.mrb[56].mxu0  ;;  %v2184_v8 = vpop.f32.mrb[72].mxu1 }
 0xa78   :  { %v2191_v1 = vadd.f32 %v2143_v26, %v7100_v27  ;;  %v2193_v5 = vadd.f32 %v2184_v8, %v7101_v4  ;;  %v2145_v10 = vpop.f32.mrb[57].mxu0  ;;  %v2186_v14 = vpop.f32.mrb[73].mxu1 }
 0xa79   :  { %v2192_v40 = vadd.f32 %v2145_v10, %v7102_v0  ;;  %v2194_v23 = vadd.f32 %v2186_v14, %v7103_v20  ;;  %v2147_v39 = vpop.f32.mrb[58].mxu0  ;;  %v2188_v45 = vpop.f32.mrb[74].mxu1 }
 0xa7a   :  { %v4182_v48 = vmul.f32 -1.442695, %v2191_v1  ;;  %v2148_v29 = vpop.f32.mrb[59].mxu0  ;;  %v2189_v11 = vpop.f32.mrb[75].mxu1 }
 0xa7b   :  { %v4183_v21 = vmul.f32 -1.442695, %v2192_v40  ;;  %v4184_v33 = vmul.f32 -1.442695, %v2194_v23 }
 0xa7c   :  { %4806 = vpow2.f32 %v4182_v48 }
 0xa7d   :  { %4808 = vpow2.f32 %v4183_v21  ;;  %v4626_v21 = vld [vmem:[%s6977_s8] sm:$0xff]  }
 0xa7e   :  { %4810 = vpow2.f32 %v4184_v33  ;;  %v4627_v33 = vld [vmem:[%s6977_s8 + $0x8] sm:$0xff]  }
 0xa7f   :  { %4812 = vtanh.f32 %v2193_v5 }
 0xa86   :  { %v4807_v13 = vpop.eup %4806 }
 0xa87   :  { %v4809_v30 = vpop.eup %4808  ;;  %v2198_v12 = vadd.f32 1.0, %v4807_v13  ;;  %v4628_v13 = vld [vmem:[%s6977_s8 + $0x10] sm:$0xff]  }
 0xa88   :  { %v2204_v44 = vadd.f32 1.0, %v4809_v30  ;;  %v4811_v9 = vpop.eup %4810  ;;  %v4629_v30 = vld [vmem:[%s6977_s8 + $0x18] sm:$0xff]  }
 0xa89   :  { %4814 = vrcp.f32 %v2198_v12  ;;  %v4813_v55 = vpop.eup %4812  ;;  %v2211_v15 = vadd.f32 1.0, %v4811_v9  ;;  %v4630_v12 = vld [vmem:[%s6977_s8 + $0x20] sm:$0xff]   ;;  %v4632_v9 = vld [vmem:[%s6977_s8 + $0x30] sm:$0xff]  }
 0xa8a   :  { %4816 = vrcp.f32 %v2204_v44  ;;  %v4631_v44 = vld [vmem:[%s6977_s8 + $0x28] sm:$0xff]  }
 0xa8b   :  { %4818 = vrcp.f32 %v2211_v15 }
 0xa93   :  { %v4815_v52 = vpop.eup %4814 }
 0xa94   :  { %v4817_v59 = vpop.eup %4816  ;;  %v2215_v60 = vmul.f32 %v4815_v52, %v4813_v55  ;;  %v4633_v55 = vld [vmem:[%s6977_s8 + $0x38] sm:$0xff]   ;;  %v4188_v52 = vld [vmem:[#allocation9] ss:$0 sm:$0xff] }
 0xa95   :  { %v2214_v49 = vmul.f32 %v4817_v59, %v6349_v50  ;;  %v4819_v56 = vpop.eup %4818  ;;  %v4621_v50 = vld [vmem:[%s6975_s6 + $0x18] sm:$0xff]  }
 0xa97   :  { %v6373_v51 = vadd.f32 %v2215_v60, %v2214_v49 }
 0xa99   :  { %4820 = vtanh.f32 %v6373_v51 }
 0xaa3   :  { %v4821_v63 = vpop.eup %4820 }
 0xaa4   :  { %v2218_v25 = vmul.f32 %v4821_v63, %v4819_v56 }
 0xaa6   :  { %v2219_v28 = vpack.c.bf16 %v2218_v25, %v2218_v25 }
 0xaa8   :  { %2253 = vmatmul.mubr.bf16.vlgmr.msra.gmra.mrb[60].mxu0 %v2219_v28  ;;  %2294 = vmatmul.mubr.bf16.vlgmr.msra.gmra.mrb[76].mxu1 %v2219_v28 }
 0xaa9   :  { %4367 = vmatpush3.bf16.msra.mxu0 %v4618_v35  ;;  %4382 = vmatprep.mubr.msk.bf16.mxu0 %vm5340_vm1, %v7099_v3 }
 0xaaa   :  { %4368 = vmatprep.subr.bf16.mxu0 %v7099_v3  ;;  %4402 = vmatprep.mubr.msk.bf16.mxu1 %vm5340_vm1, %v7099_v3 }
 0xaab   :  { %4387 = vmatpush3.bf16.msra.mxu1 %v4626_v21 }
 0xaac   :  { %4388 = vmatprep.subr.bf16.mxu1 %v7099_v3 }
 0xaad   :  { %4369 = vmatpush3.bf16.msra.mxu0 %v4619_v19  ;;  %v4634_v19 = vld [vmem:[%s6979_s10] sm:$0xff]  }
 0xaae   :  { %4370 = vmatprep.subr.bf16.mxu0 %v7099_v3 }
 0xaaf   :  { %4389 = vmatpush3.bf16.msra.mxu1 %v4627_v33 }
 0xab0   :  { %4390 = vmatprep.subr.bf16.mxu1 %v7099_v3 }
 0xab1   :  { %4371 = vmatpush3.bf16.msra.mxu0 %v4620_v18  ;;  %v4635_v18 = vld [vmem:[%s6979_s10 + $0x8] sm:$0xff]  }
 0xab2   :  { %4372 = vmatprep.subr.bf16.mxu0 %v7099_v3 }
 0xab3   :  { %4391 = vmatpush3.bf16.msra.mxu1 %v4628_v13  ;;  %v6531_v13 = vld [vmem:[#allocation16 + $0x40] ss:$16 sps:$4 sm:$0xff]  }
 0xab4   :  { %4392 = vmatprep.subr.bf16.mxu1 %v7099_v3 }
 0xab5   :  { %4373 = vmatpush3.bf16.msra.mxu0 %v4621_v50  ;;  %v4636_v50 = vld [vmem:[%s6979_s10 + $0x10] sm:$0xff]  }
 0xab6   :  { %4374 = vmatprep.subr.bf16.mxu0 %v7099_v3 }
 0xab7   :  { %4393 = vmatpush3.bf16.msra.mxu1 %v4629_v30  ;;  %v6535_v30 = vld [vmem:[#allocation16 + $0x64] ss:$16 sps:$4 sm:$0xff]  }
 0xab8   :  { %4394 = vmatprep.subr.bf16.mxu1 %v7099_v3 }
 0xab9   :  { %4375 = vmatpush3.bf16.msra.mxu0 %v4622_v54  ;;  %v4637_v54 = vld [vmem:[%s6979_s10 + $0x18] sm:$0xff]  }
 0xaba   :  { %4376 = vmatprep.subr.bf16.mxu0 %v7099_v3 }
 0xabb   :  { %4395 = vmatpush3.bf16.msra.mxu1 %v4630_v12  ;;  %v6538_v12 = vld [vmem:[#allocation16 + $0x60] ss:$16 sps:$4 sm:$0xff]  }
 0xabc   :  { %4396 = vmatprep.subr.bf16.mxu1 %v7099_v3 }
 0xabd   :  { %4377 = vmatpush3.bf16.msra.mxu0 %v4623_v41  ;;  %v4638_v41 = vld [vmem:[%s6979_s10 + $0x20] sm:$0xff]  }
 0xabe   :  { %4378 = vmatprep.subr.bf16.mxu0 %v7099_v3 }
 0xabf   :  { %4397 = vmatpush3.bf16.msra.mxu1 %v4631_v44  ;;  %v6541_v44 = vld [vmem:[#allocation16 + $0x84] ss:$16 sps:$4 sm:$0xff]  }
 0xac0   :  { %4398 = vmatprep.subr.bf16.mxu1 %v7099_v3 }
 0xac1   :  { %4379 = vmatpush3.bf16.msra.mxu0 %v4624_v31  ;;  %v4639_v31 = vld [vmem:[%s6979_s10 + $0x28] sm:$0xff]  }
 0xac2   :  { %4380 = vmatprep.subr.bf16.mxu0 %v7099_v3 }
 0xac3   :  { %4399 = vmatpush3.bf16.msra.mxu1 %v4632_v9  ;;  %v6544_v9 = vld [vmem:[#allocation16 + $0x80] ss:$16 sps:$4 sm:$0xff]  }
 0xac4   :  { %4400 = vmatprep.subr.bf16.mxu1 %v7099_v3 }
 0xac5   :  { %4381 = vmatpush3.bf16.msra.mxu0 %v4625_v32  ;;  %v4640_v32 = vld [vmem:[%s6979_s10 + $0x30] sm:$0xff]  }
 0xac6   :  { %4406 = vmatprep.subr.bf16.mxu0 %v7099_v3 }
 0xac7   :  { %4401 = vmatpush3.bf16.msra.mxu1 %v4633_v55  ;;  %v6547_v55 = vld [vmem:[#allocation16 + $0xa4] ss:$16 sps:$4 sm:$0xff]  }
 0xb7b   :  { %v2254_v37 = vpop.f32.mrb[60].mxu0  ;;  %v2295_v58 = vpop.f32.mrb[76].mxu1 }
 0xb7c   :  { %v2302_v42 = vadd.f32 %v2254_v37, %v7104_v38  ;;  %v2304_v17 = vadd.f32 %v2295_v58, %v7105_v16  ;;  %v2256_v43 = vpop.f32.mrb[61].mxu0  ;;  %v2297_v46 = vpop.f32.mrb[77].mxu1  ;;  %v4641_v37 = vld [vmem:[%s6979_s10 + $0x38] sm:$0xff]   ;;  %v2682_v58 = vld [vmem:[%s6981_s12] sm:$0xff]  ;;  %v4198_v38 = vld [vmem:[#allocation10] ss:$0 sm:$0xff] }
 0xb7d   :  { %v2303_v53 = vadd.f32 %v2256_v43, %v7106_v22  ;;  %v2305_v6 = vadd.f32 %v2297_v46, %v7107_v57  ;;  %v2258_v62 = vpop.f32.mrb[62].mxu0  ;;  %v2299_v47 = vpop.f32.mrb[78].mxu1  ;;  %2684 = vrot.lane.b32.xlu0 %v2682_v58, %s5330_s1  ;;  %v6600_v58 = vld [vmem:[#allocation16 + $0xe4] ss:$16 sps:$4 sm:$0xff]  }
 0xb7e   :  { %v4185_v24 = vmul.f32 -1.442695, %v2302_v42  ;;  %v2259_v61 = vpop.f32.mrb[63].mxu0  ;;  %v2300_v7 = vpop.f32.mrb[79].mxu1  ;;  %v4642_v62 = vld [vmem:[%s7108_s0] ss:$8 sps:$4 sm:$0xff]  }
 0xb7f   :  { %v4186_v34 = vmul.f32 -1.442695, %v2303_v53  ;;  %v4187_v26 = vmul.f32 -1.442695, %v2305_v6  ;;  %v4644_v47 = vld [vmem:[%s7108_s0 + $0x4] ss:$8 sps:$4 sm:$0xff]  }
 0xb80   :  { %4822 = vpow2.f32 %v4185_v24  ;;  %v4647_v24 = vld [vmem:[%s7108_s0 + $0x14] ss:$8 sps:$4 sm:$0xff]   ;;  %2758 = vmatprep.subr.bf16.mxu1 %v4644_v47  ;;  %v4645_v61 = vld [vmem:[%s7108_s0 + $0x10] ss:$8 sps:$4 sm:$0xff]   ;;  %v4650_v7 = vld [vmem:[%s7108_s0 + $0x24] ss:$8 sps:$4 sm:$0xff]  }
 0xb81   :  { %4824 = vpow2.f32 %v4186_v34  ;;  %v4648_v34 = vld [vmem:[%s7108_s0 + $0x20] ss:$8 sps:$4 sm:$0xff]  }
 0xb82   :  { %4826 = vpow2.f32 %v4187_v26  ;;  %v4208_v26 = vld [vmem:[#allocation12] ss:$0 sm:$0xff]  ;;  %v7111_v47 = vld [vmem:[#allocation52_spill] sm:$0xff] }
 0xb83   :  { %4828 = vtanh.f32 %v2304_v17 }
 0xb8a   :  { %v4823_v8 = vpop.eup %4822 }
 0xb8b   :  { %v4825_v27 = vpop.eup %4824  ;;  %v2309_v1 = vadd.f32 1.0, %v4823_v8 }
 0xb8c   :  { %v2315_v4 = vadd.f32 1.0, %v4825_v27  ;;  %v4827_v5 = vpop.eup %4826 }
 0xb8d   :  { %4830 = vrcp.f32 %v2309_v1  ;;  %v4829_v10 = vpop.eup %4828  ;;  %v2322_v20 = vadd.f32 1.0, %v4827_v5 }
 0xb8e   :  { %4832 = vrcp.f32 %v2315_v4 }
 0xb8f   :  { %4834 = vrcp.f32 %v2322_v20  ;;  %v6514_v20 = vld [vmem:[#allocation16 + $0x4] ss:$16 sps:$4 sm:$0xff]  }
 0xb97   :  { %v4831_v14 = vpop.eup %4830 }
 0xb98   :  { %v4833_v0 = vpop.eup %4832  ;;  %v2326_v40 = vmul.f32 %v4831_v14, %v4829_v10 }
 0xb99   :  { %v2325_v23 = vmul.f32 %v4833_v0, %v6373_v51  ;;  %v4835_v45 = vpop.eup %4834  ;;  %v4653_v0 = vld [vmem:[%s7108_s0 + $0x34] ss:$8 sps:$4 sm:$0xff]  }
 0xb9b   :  { %v2327_v39 = vadd.f32 %v2326_v40, %v2325_v23  ;;  %v4651_v40 = vld [vmem:[%s7108_s0 + $0x30] ss:$8 sps:$4 sm:$0xff]  }
 0xb9c   :  { %v6516_v23 = vld [vmem:[#allocation16 + $0xc] ss:$16 sps:$4 sm:$0xff]  }
 0xb9d   :  { %4836 = vtanh.f32 %v2327_v39  ;;  %v6518_v39 = vld [vmem:[#allocation16] ss:$16 sps:$4 sm:$0xff]  }
 0xba7   :  { %v4837_v48 = vpop.eup %4836 }
 0xba8   :  { %v2329_v29 = vmul.f32 %v4837_v48, %v4835_v45  ;;  %v6520_v45 = vld [vmem:[#allocation16 + $0x24] ss:$16 sps:$4 sm:$0xff]   ;;  %v6525_v48 = vld [vmem:[#allocation16 + $0x20] ss:$16 sps:$4 sm:$0xff]  }
 0xbaa   :  { %v2346_v11 = vpack.c.bf16 %v2329_v29, %v2329_v29 }
 0xbac   :  { %4383 = vmatmul.mubr.bf16.vlgmr.msra.gmra.mrb[64].mxu0 %v2346_v11  ;;  %v6528_v11 = vld [vmem:[#allocation16 + $0x44] ss:$16 sps:$4 sm:$0xff]  }
 0xbad   :  { %4422 = vmatprep.mubr.msk.bf16.mxu0 %vm5340_vm1, %v7099_v3  ;;  %4407 = vmatpush3.bf16.msra.mxu0 %v4634_v19  ;;  %v6575_v19 = vld [vmem:[#allocation16 + $0x6c] ss:$16 sps:$4 sm:$0xff]  }
 0xbae   :  { %4408 = vmatprep.subr.bf16.mxu0 %v7099_v3 }
 0xbb1   :  { %4409 = vmatpush3.bf16.msra.mxu0 %v4635_v18  ;;  %v6578_v18 = vld [vmem:[#allocation16 + $0x68] ss:$16 sps:$4 sm:$0xff]  }
 0xbb2   :  { %4410 = vmatprep.subr.bf16.mxu0 %v7099_v3 }
 0xbb5   :  { %4411 = vmatpush3.bf16.msra.mxu0 %v4636_v50  ;;  %v6581_v50 = vld [vmem:[#allocation16 + $0x8c] ss:$16 sps:$4 sm:$0xff]  }
 0xbb6   :  { %4412 = vmatprep.subr.bf16.mxu0 %v7099_v3 }
 0xbb9   :  { %4413 = vmatpush3.bf16.msra.mxu0 %v4637_v54  ;;  %v6584_v54 = vld [vmem:[#allocation16 + $0x88] ss:$16 sps:$4 sm:$0xff]  }
 0xbba   :  { %4414 = vmatprep.subr.bf16.mxu0 %v7099_v3 }
 0xbbd   :  { %4415 = vmatpush3.bf16.msra.mxu0 %v4638_v41  ;;  %v6587_v41 = vld [vmem:[#allocation16 + $0xac] ss:$16 sps:$4 sm:$0xff]  }
 0xbbe   :  { %4416 = vmatprep.subr.bf16.mxu0 %v7099_v3 }
 0xbc1   :  { %4417 = vmatpush3.bf16.msra.mxu0 %v4639_v31  ;;  %v6590_v31 = vld [vmem:[#allocation16 + $0xa8] ss:$16 sps:$4 sm:$0xff]  }
 0xbc2   :  { %4418 = vmatprep.subr.bf16.mxu0 %v7099_v3 }
 0xbc5   :  { %4419 = vmatpush3.bf16.msra.mxu0 %v4640_v32  ;;  %v6593_v32 = vld [vmem:[#allocation16 + $0xcc] ss:$16 sps:$4 sm:$0xff]  }
 0xbc6   :  { %4420 = vmatprep.subr.bf16.mxu0 %v7099_v3 }
 0xbc9   :  { %4421 = vmatpush3.bf16.msra.mxu0 %v4641_v37  ;;  %v6596_v37 = vld [vmem:[#allocation16 + $0xc8] ss:$16 sps:$4 sm:$0xff]  }
 0xbca   :  { %2992 = vmatprep.subr.bf16.mxu0 %v6514_v20 }
 0xbef   :  { %v2685_v29 = vpop.permute.xlu0 %2684 }
 0xc7f   :  { %v2436_v59 = vpop.f32.mrb[64].mxu0 }
 0xc80   :  { %v2437_v60 = vadd.f32 %v4188_v52, %v2436_v59  ;;  %v4384_v15 = vpop.f32.mrb[65].mxu0  ;;  %v6550_v52 = vld [vmem:[#allocation16 + $0xa0] ss:$16 sps:$4 sm:$0xff]   ;;  %v6553_v59 = vld [vmem:[#allocation16 + $0xc4] ss:$16 sps:$4 sm:$0xff]  }
 0xc81   :  { %v2439_v49 = vpop.f32.mrb[66].mxu0 }
 0xc82   :  { %v4197_v51 = vmul.f32 -1.442695, %v2437_v60  ;;  %v4385_v56 = vpop.f32.mrb[67].mxu0  ;;  %v6556_v60 = vld [vmem:[#allocation16 + $0xc0] ss:$16 sps:$4 sm:$0xff]  }
 0xc84   :  { %4838 = vpow2.f32 %v4197_v51  ;;  %v6560_v51 = vld [vmem:[#allocation16 + $0x8] ss:$16 sps:$4 sm:$0xff]  }
 0xc8e   :  { %v4839_v63 = vpop.eup %4838 }
 0xc8f   :  { %v2445_v25 = vadd.f32 1.0, %v4839_v63  ;;  %v6562_v63 = vld [vmem:[#allocation16 + $0x2c] ss:$16 sps:$4 sm:$0xff]  }
 0xc91   :  { %4840 = vrcp.f32 %v2445_v25  ;;  %v6565_v25 = vld [vmem:[#allocation16 + $0x28] ss:$16 sps:$4 sm:$0xff]  }
 0xc9b   :  { %v4841_v28 = vpop.eup %4840 }
 0xc9c   :  { %v2464_v35 = vpack.c.bf16 %v4841_v28, %v4841_v28  ;;  %v6569_v28 = vld [vmem:[#allocation16 + $0x4c] ss:$16 sps:$4 sm:$0xff]  }
 0xc9e   :  { %4403 = vmatmul.mubr.bf16.vlgmr.msra.gmra.mrb[80].mxu1 %v2464_v35  ;;  %v6572_v35 = vld [vmem:[#allocation16 + $0x48] ss:$16 sps:$4 sm:$0xff]  }
 0xc9f   :  { %2790 = vmatprep.mubr.bf16.mxu1 %v7048_v36  ;;  %2759 = vmatpush1.bf16.msra.mxu1 %v4642_v62 }
 0xca0   :  { %2760 = vmatprep.subr.bf16.mxu1 %v4647_v24  ;;  %v1140_v24 = vadd.f32 %v7111_v47, %v6002_v2 }
 0xca3   :  { %2761 = vmatpush1.bf16.msra.mxu1 %v4645_v61  ;;  %v7112_v61 = vld [vmem:[#allocation54_spill] sm:$0xff] }
 0xca4   :  { %2762 = vmatprep.subr.bf16.mxu1 %v4650_v7  ;;  %v7113_v7 = vld [vmem:[#allocation53_spill] sm:$0xff] }
 0xca7   :  { %2763 = vmatpush1.bf16.msra.mxu1 %v4648_v34  ;;  %v1213_v34 = vadd.f32 %v7113_v7, %v7112_v61 }
 0xca8   :  { %2764 = vmatprep.subr.bf16.mxu1 %v4653_v0 }
 0xcab   :  { %2765 = vmatpush1.bf16.msra.mxu1 %v4651_v40 }
 0xcac   :  { %3033 = vmatprep.subr.bf16.mxu1 %v6516_v23 }
 0xd71   :  { %v2554_v42 = vpop.f32.mrb[80].mxu1 }
 0xd72   :  { %v2555_v16 = vadd.f32 %v4198_v38, %v2554_v42  ;;  %v4404_v17 = vpop.f32.mrb[81].mxu1  ;;  %v6602_v38 = vld [vmem:[#allocation16 + $0xec] ss:$16 sps:$4 sm:$0xff]   ;;  %v6604_v42 = vld [vmem:[#allocation16 + $0xe0] ss:$16 sps:$4 sm:$0xff]  }
 0xd73   :  { %v2557_v43 = vpop.f32.mrb[82].mxu1  ;;  %v6614_v17 = vld [vmem:[#allocation13] sm:$0x3] }
 0xd74   :  { %v4207_v46 = vmul.f32 -1.442695, %v2555_v16  ;;  %v4405_v22 = vpop.f32.mrb[83].mxu1  ;;  %v6606_v16 = vld [vmem:[#allocation16 + $0xe8] ss:$16 sps:$4 sm:$0xff]  }
 0xd75   :  { %v7110_v43 = vld [vmem:[#allocation29_spill] sm:$0xff] }
 0xd76   :  { %4842 = vpow2.f32 %v4207_v46  ;;  %v2707_v46 = vrot.slane %v6614_v17, %v7110_v43 }
 0xd80   :  { %v4843_v53 = vpop.eup %4842 }
 0xd81   :  { %v2563_v57 = vadd.f32 1.0, %v4843_v53 }
 0xd83   :  { %4844 = vrcp.f32 %v2563_v57 }
 0xd8d   :  { %v4845_v6 = vpop.eup %4844 }
 0xd8e   :  { %v2582_v3 = vpack.c.bf16 %v4845_v6, %v4845_v6 }
 0xd90   :  { %4423 = vmatmul.mubr.bf16.vlgmr.msra.gmra.mrb[68].mxu0 %v2582_v3 }
 0xd91   :  { %3024 = vmatprep.mubr.bf16.mxu0 %v7048_v36  ;;  %2993 = vmatpush1.bf16.msra.mxu0 %v6518_v39 }
 0xd92   :  { %2994 = vmatprep.subr.bf16.mxu0 %v6520_v45 }
 0xd95   :  { %2995 = vmatpush1.bf16.msra.mxu0 %v6525_v48 }
 0xd96   :  { %2996 = vmatprep.subr.bf16.mxu0 %v6528_v11 }
 0xd99   :  { %2997 = vmatpush1.bf16.msra.mxu0 %v6531_v13 }
 0xd9a   :  { %2998 = vmatprep.subr.bf16.mxu0 %v6535_v30 }
 0xd9d   :  { %2999 = vmatpush1.bf16.msra.mxu0 %v6538_v12 }
 0xd9e   :  { %3000 = vmatprep.subr.bf16.mxu0 %v6541_v44 }
 0xda1   :  { %3001 = vmatpush1.bf16.msra.mxu0 %v6544_v9 }
 0xda2   :  { %3002 = vmatprep.subr.bf16.mxu0 %v6547_v55 }
 0xda5   :  { %3003 = vmatpush1.bf16.msra.mxu0 %v6550_v52 }
 0xda6   :  { %3004 = vmatprep.subr.bf16.mxu0 %v6553_v59 }
 0xda9   :  { %3005 = vmatpush1.bf16.msra.mxu0 %v6556_v60 }
 0xdaa   :  { %3006 = vmatprep.subr.bf16.mxu0 %v6600_v58 }
 0xdad   :  { %3007 = vmatpush1.bf16.msra.mxu0 %v6604_v42 }
 0xdae   :  { %3103 = vmatprep.subr.bf16.mxu0 %v6514_v20 }
 0xe63   :  { %v2672_v8 = vpop.f32.mrb[68].mxu0 }
 0xe64   :  { %v2673_v27 = vadd.f32 %v4208_v26, %v2672_v8  ;;  %v4424_v1 = vpop.f32.mrb[69].mxu0  ;;  %v7114_v26 = vld [vmem:[#allocation57_spill] sm:$0xff]  ;;  %v7115_v8 = vld [vmem:[#allocation55_spill] sm:$0xff] }
 0xe65   :  { %v2675_v4 = vpop.f32.mrb[70].mxu0  ;;  %v7116_v1 = vld [vmem:[#allocation58_spill] sm:$0xff] }
 0xe66   :  { %2678 = vst [vmem:[%s7109_s28] sm:$0xff] %v2673_v27  ;;  %v2679_v5 = vmul.f32 0.5, %v2673_v27  ;;  %v4425_v10 = vpop.f32.mrb[71].mxu0  ;;  %v7117_v4 = vld [vmem:[#allocation56_spill] sm:$0xff] }
 0xe68   :  { %v2680_v14 = vmul.f32 1.442695, %v2679_v5  ;;  %v1215_v5 = vadd.f32 %v7117_v4, %v7116_v1 }
 0xe6a   :  { %4846 = vpow2.f32 %v2680_v14 }
 0xe74   :  { %v4847_v21 = vpop.eup %4846 }
 0xe75   :  { %v2687_v33 = vmul.f32 %v4847_v21, %v2685_v29 }
 0xe77   :  { %2689 = vrot.lane.b32.xlu1 %v2687_v33, %s5330_s1 }
 0xee9   :  { %v2690_v15 = vpop.permute.xlu1 %2689 }
 0xeea   :  { %v2692_v49 = vadd.f32 %v2690_v15, %v2673_v27  ;;  %v1142_v27 = vadd.f32 %v7115_v8, %v7114_v26 }
 0xeec   :  { %v2701_v56 = vpack.c.bf16 %v2692_v49, %v2692_v49 }
 0xeee   :  { %4225 = vmatmul.mubr.msk.bf16.vlgmr.msra.gmra.mrb[84].mxu1 %vm2754_vm2, %v2701_v56 }
 0xeef   :  { %3034 = vmatpush1.bf16.msra.mxu1 %v6560_v51  ;;  %3065 = vmatprep.mubr.bf16.mxu1 %v7048_v36 }
 0xef0   :  { %3035 = vmatprep.subr.bf16.mxu1 %v6562_v63 }
 0xef3   :  { %3036 = vmatpush1.bf16.msra.mxu1 %v6565_v25 }
 0xef4   :  { %3037 = vmatprep.subr.bf16.mxu1 %v6569_v28 }
 0xef7   :  { %3038 = vmatpush1.bf16.msra.mxu1 %v6572_v35 }
 0xef8   :  { %3039 = vmatprep.subr.bf16.mxu1 %v6575_v19 }
 0xefb   :  { %3040 = vmatpush1.bf16.msra.mxu1 %v6578_v18 }
 0xefc   :  { %3041 = vmatprep.subr.bf16.mxu1 %v6581_v50 }
 0xeff   :  { %3042 = vmatpush1.bf16.msra.mxu1 %v6584_v54 }
 0xf00   :  { %3043 = vmatprep.subr.bf16.mxu1 %v6587_v41 }
 0xf03   :  { %3044 = vmatpush1.bf16.msra.mxu1 %v6590_v31 }
 0xf04   :  { %3045 = vmatprep.subr.bf16.mxu1 %v6593_v32 }
 0xf07   :  { %3046 = vmatpush1.bf16.msra.mxu1 %v6596_v37 }
 0xf08   :  { %3047 = vmatprep.subr.bf16.mxu1 %v6602_v38 }
 0xf0b   :  { %3048 = vmatpush1.bf16.msra.mxu1 %v6606_v16 }
 0xf0c   :  { %3144 = vmatprep.subr.bf16.mxu1 %v6516_v23 }
 0xfc1   :  { %v2792_v22 = vpop.f32.mrb[84].mxu1 }
 0xfc2   :  { %v2793_v53 = vadd.f32 %v2792_v22, %v2707_v46  ;;  %v6618_v57 = vpop.f32.mrb[85].mxu1 }
 0xfc3   :  { %v2796_v6 = vpop.f32.mrb[86].mxu1 }
 0xfc4   :  { %v2831_v3 = vpack.c.bf16 %v2793_v53, %v2793_v53  ;;  %v2797_v62 = vpop.f32.mrb[87].mxu1 }
 0xfc6   :  { %3025 = vmatmul.mubr.bf16.vlgmr.msra.gmra.mrb[72].mxu0 %v2831_v3  ;;  %3066 = vmatmul.mubr.bf16.vlgmr.msra.gmra.mrb[88].mxu1 %v2831_v3 }
 0xfc7   :  { %3104 = vmatpush1.bf16.msra.mxu0 %v6518_v39  ;;  %3145 = vmatpush1.bf16.msra.mxu1 %v6560_v51 }
 0xfc8   :  { %3105 = vmatprep.subr.bf16.mxu0 %v6520_v45  ;;  %3146 = vmatprep.subr.bf16.mxu1 %v6562_v63 }
 0xfc9   :  { %3135 = vmatprep.mubr.bf16.mxu0 %v7048_v36  ;;  %3176 = vmatprep.mubr.bf16.mxu1 %v7048_v36 }
 0xfcb   :  { %3106 = vmatpush1.bf16.msra.mxu0 %v6525_v48  ;;  %3147 = vmatpush1.bf16.msra.mxu1 %v6565_v25 }
 0xfcc   :  { %3107 = vmatprep.subr.bf16.mxu0 %v6528_v11  ;;  %3148 = vmatprep.subr.bf16.mxu1 %v6569_v28 }
 0xfcf   :  { %3108 = vmatpush1.bf16.msra.mxu0 %v6531_v13  ;;  %3149 = vmatpush1.bf16.msra.mxu1 %v6572_v35 }
 0xfd0   :  { %3109 = vmatprep.subr.bf16.mxu0 %v6535_v30  ;;  %3150 = vmatprep.subr.bf16.mxu1 %v6575_v19 }
 0xfd3   :  { %3110 = vmatpush1.bf16.msra.mxu0 %v6538_v12  ;;  %3151 = vmatpush1.bf16.msra.mxu1 %v6578_v18 }
 0xfd4   :  { %3111 = vmatprep.subr.bf16.mxu0 %v6541_v44  ;;  %3152 = vmatprep.subr.bf16.mxu1 %v6581_v50 }
 0xfd7   :  { %3112 = vmatpush1.bf16.msra.mxu0 %v6544_v9  ;;  %3153 = vmatpush1.bf16.msra.mxu1 %v6584_v54 }
 0xfd8   :  { %3113 = vmatprep.subr.bf16.mxu0 %v6547_v55  ;;  %3154 = vmatprep.subr.bf16.mxu1 %v6587_v41 }
 0xfdb   :  { %3114 = vmatpush1.bf16.msra.mxu0 %v6550_v52  ;;  %3155 = vmatpush1.bf16.msra.mxu1 %v6590_v31 }
 0xfdc   :  { %3115 = vmatprep.subr.bf16.mxu0 %v6553_v59  ;;  %3156 = vmatprep.subr.bf16.mxu1 %v6593_v32 }
 0xfdf   :  { %3116 = vmatpush1.bf16.msra.mxu0 %v6556_v60  ;;  %3157 = vmatpush1.bf16.msra.mxu1 %v6596_v37 }
 0xfe0   :  { %3117 = vmatprep.subr.bf16.mxu0 %v6600_v58  ;;  %3158 = vmatprep.subr.bf16.mxu1 %v6602_v38 }
 0xfe3   :  { %3118 = vmatpush1.bf16.msra.mxu0 %v6604_v42  ;;  %3159 = vmatpush1.bf16.msra.mxu1 %v6606_v16 }
 0xfe4   :  { %3214 = vmatprep.subr.bf16.mxu0 %v6514_v20  ;;  %3255 = vmatprep.subr.bf16.mxu1 %v6516_v23 }
0x1099   :  { %v3026_v10 = vpop.f32.mrb[72].mxu0  ;;  %v3067_v14 = vpop.f32.mrb[88].mxu1 }
0x109a   :  { %v3074_v0 = vadd.f32 %v3026_v10, %v1140_v24  ;;  %v3076_v40 = vadd.f32 %v3067_v14, %v1213_v34  ;;  %v3028_v29 = vpop.f32.mrb[73].mxu0  ;;  %v3069_v21 = vpop.f32.mrb[89].mxu1  ;;  %v7118_v24 = vld [vmem:[#allocation30_spill] sm:$0xff] }
0x109b   :  { %v3075_v33 = vadd.f32 %v3028_v29, %v1142_v27  ;;  %v3077_v15 = vadd.f32 %v3069_v21, %v1215_v5  ;;  %v3030_v49 = vpop.f32.mrb[74].mxu0  ;;  %v3071_v56 = vpop.f32.mrb[90].mxu1  ;;  %v2711_v61 = vrot.slane %v6614_v17, %v7118_v24  ;;  %v7119_v21 = vld [vmem:[#allocation59_spill] sm:$0xff] }
0x109c   :  { %v4258_v2 = vmul.f32 -1.442695, %v3074_v0  ;;  %v3031_v43 = vpop.f32.mrb[75].mxu0  ;;  %v3072_v46 = vpop.f32.mrb[91].mxu1 }
0x109d   :  { %v4259_v22 = vmul.f32 -1.442695, %v3075_v33  ;;  %v4260_v53 = vmul.f32 -1.442695, %v3077_v15  ;;  %v2795_v8 = vadd.f32 %v6618_v57, %v2711_v61  ;;  %v7120_v15 = vld [vmem:[#allocation60_spill] sm:$0xff]  ;;  %v7121_v43 = vld [vmem:[#allocation61_spill] sm:$0xff] }
0x109e   :  { %4848 = vpow2.f32 %v4258_v2 }
0x109f   :  { %4850 = vpow2.f32 %v4259_v22  ;;  %v7122_v22 = vld [vmem:[#allocation62_spill] sm:$0xff] }
0x10a0   :  { %4852 = vpow2.f32 %v4260_v53 }
0x10a1   :  { %4854 = vtanh.f32 %v3076_v40 }
0x10a8   :  { %v4849_v6 = vpop.eup %4848 }
0x10a9   :  { %v4851_v3 = vpop.eup %4850  ;;  %v3081_v62 = vadd.f32 1.0, %v4849_v6 }
0x10aa   :  { %v3087_v47 = vadd.f32 1.0, %v4851_v3  ;;  %v4853_v7 = vpop.eup %4852 }
0x10ab   :  { %4856 = vrcp.f32 %v3081_v62  ;;  %v4855_v34 = vpop.eup %4854  ;;  %v3094_v4 = vadd.f32 1.0, %v4853_v7 }
0x10ac   :  { %4858 = vrcp.f32 %v3087_v47 }
0x10ad   :  { %4860 = vrcp.f32 %v3094_v4 }
0x10b5   :  { %v4857_v26 = vpop.eup %4856 }
0x10b6   :  { %v4859_v27 = vpop.eup %4858  ;;  %v3098_v1 = vmul.f32 %v4857_v26, %v4855_v34 }
0x10b7   :  { %v3097_v5 = vmul.f32 %v4859_v27, %v2795_v8  ;;  %v4861_v14 = vpop.eup %4860 }
0x10b9   :  { %v6665_v10 = vadd.f32 %v3098_v1, %v3097_v5 }
0x10bb   :  { %4862 = vtanh.f32 %v6665_v10 }
0x10c5   :  { %v4863_v0 = vpop.eup %4862 }
0x10c6   :  { %v6668_v40 = vmul.f32 %v4863_v0, %v4861_v14 }
0x10c8   :  { %v3102_v17 = vpack.c.bf16 %v6668_v40, %v6668_v40 }
0x10ca   :  { %3136 = vmatmul.mubr.bf16.vlgmr.msra.gmra.mrb[76].mxu0 %v3102_v17  ;;  %3177 = vmatmul.mubr.bf16.vlgmr.msra.gmra.mrb[92].mxu1 %v3102_v17 }
0x10cb   :  { %3215 = vmatpush1.bf16.msra.mxu0 %v6518_v39  ;;  %3256 = vmatpush1.bf16.msra.mxu1 %v6560_v51 }
0x10cc   :  { %3216 = vmatprep.subr.bf16.mxu0 %v6520_v45  ;;  %3257 = vmatprep.subr.bf16.mxu1 %v6562_v63 }
0x10cd   :  { %3246 = vmatprep.mubr.bf16.mxu0 %v7048_v36  ;;  %3287 = vmatprep.mubr.bf16.mxu1 %v7048_v36 }
0x10cf   :  { %3217 = vmatpush1.bf16.msra.mxu0 %v6525_v48  ;;  %3258 = vmatpush1.bf16.msra.mxu1 %v6565_v25 }
0x10d0   :  { %3218 = vmatprep.subr.bf16.mxu0 %v6528_v11  ;;  %3259 = vmatprep.subr.bf16.mxu1 %v6569_v28 }
0x10d3   :  { %3219 = vmatpush1.bf16.msra.mxu0 %v6531_v13  ;;  %3260 = vmatpush1.bf16.msra.mxu1 %v6572_v35 }
0x10d4   :  { %3220 = vmatprep.subr.bf16.mxu0 %v6535_v30  ;;  %3261 = vmatprep.subr.bf16.mxu1 %v6575_v19 }
0x10d7   :  { %3221 = vmatpush1.bf16.msra.mxu0 %v6538_v12  ;;  %3262 = vmatpush1.bf16.msra.mxu1 %v6578_v18 }
0x10d8   :  { %3222 = vmatprep.subr.bf16.mxu0 %v6541_v44  ;;  %3263 = vmatprep.subr.bf16.mxu1 %v6581_v50 }
0x10db   :  { %3223 = vmatpush1.bf16.msra.mxu0 %v6544_v9  ;;  %3264 = vmatpush1.bf16.msra.mxu1 %v6584_v54 }
0x10dc   :  { %3224 = vmatprep.subr.bf16.mxu0 %v6547_v55  ;;  %3265 = vmatprep.subr.bf16.mxu1 %v6587_v41 }
0x10df   :  { %3225 = vmatpush1.bf16.msra.mxu0 %v6550_v52  ;;  %3266 = vmatpush1.bf16.msra.mxu1 %v6590_v31 }
0x10e0   :  { %3226 = vmatprep.subr.bf16.mxu0 %v6553_v59  ;;  %3267 = vmatprep.subr.bf16.mxu1 %v6593_v32 }
0x10e3   :  { %3227 = vmatpush1.bf16.msra.mxu0 %v6556_v60  ;;  %3268 = vmatpush1.bf16.msra.mxu1 %v6596_v37 }
0x10e4   :  { %3228 = vmatprep.subr.bf16.mxu0 %v6600_v58  ;;  %3269 = vmatprep.subr.bf16.mxu1 %v6602_v38 }
0x10e7   :  { %3229 = vmatpush1.bf16.msra.mxu0 %v6604_v42  ;;  %3270 = vmatpush1.bf16.msra.mxu1 %v6606_v16 }
0x10e8   :  { %3325 = vmatprep.subr.bf16.mxu0 %v6514_v20  ;;  %3366 = vmatprep.subr.bf16.mxu1 %v6516_v23 }
0x119d   :  { %v3137_v57 = vpop.f32.mrb[76].mxu0  ;;  %v3178_v29 = vpop.f32.mrb[92].mxu1 }
0x119e   :  { %v3185_v33 = vadd.f32 %v3137_v57, %v7119_v21  ;;  %v3187_v49 = vadd.f32 %v3178_v29, %v7120_v15  ;;  %v3139_v56 = vpop.f32.mrb[77].mxu0  ;;  %v3180_v2 = vpop.f32.mrb[93].mxu1 }
0x119f   :  { %v3186_v46 = vadd.f32 %v3139_v56, %v7121_v43  ;;  %v3188_v53 = vadd.f32 %v3180_v2, %v7122_v22  ;;  %v3141_v6 = vpop.f32.mrb[78].mxu0  ;;  %v3182_v3 = vpop.f32.mrb[94].mxu1  ;;  %v7123_v2 = vld [vmem:[#allocation63_spill] sm:$0xff] }
0x11a0   :  { %v4261_v62 = vmul.f32 -1.442695, %v3185_v33  ;;  %v3142_v47 = vpop.f32.mrb[79].mxu0  ;;  %v3183_v24 = vpop.f32.mrb[95].mxu1  ;;  %v7125_v3 = vld [vmem:[#allocation65_spill] sm:$0xff] }
0x11a1   :  { %v4262_v61 = vmul.f32 -1.442695, %v3186_v46  ;;  %v4263_v7 = vmul.f32 -1.442695, %v3188_v53  ;;  %v7124_v46 = vld [vmem:[#allocation64_spill] sm:$0xff]  ;;  %v7126_v47 = vld [vmem:[#allocation66_spill] sm:$0xff] }
0x11a2   :  { %4864 = vpow2.f32 %v4261_v62 }
0x11a3   :  { %4866 = vpow2.f32 %v4262_v61 }
0x11a4   :  { %4868 = vpow2.f32 %v4263_v7 }
0x11a5   :  { %4870 = vtanh.f32 %v3187_v49 }
0x11ac   :  { %v4865_v34 = vpop.eup %4864 }
0x11ad   :  { %v4867_v26 = vpop.eup %4866  ;;  %v3192_v8 = vadd.f32 1.0, %v4865_v34 }
0x11ae   :  { %v3198_v27 = vadd.f32 1.0, %v4867_v26  ;;  %v4869_v1 = vpop.eup %4868 }
0x11af   :  { %4872 = vrcp.f32 %v3192_v8  ;;  %v4871_v4 = vpop.eup %4870  ;;  %v3205_v17 = vadd.f32 1.0, %v4869_v1 }
0x11b0   :  { %4874 = vrcp.f32 %v3198_v27 }
0x11b1   :  { %4876 = vrcp.f32 %v3205_v17 }
0x11b9   :  { %v4873_v5 = vpop.eup %4872 }
0x11ba   :  { %v4875_v14 = vpop.eup %4874  ;;  %v3209_v0 = vmul.f32 %v4873_v5, %v4871_v4 }
0x11bb   :  { %v3208_v57 = vmul.f32 %v4875_v14, %v6665_v10  ;;  %v4877_v21 = vpop.eup %4876 }
0x11bd   :  { %v6711_v29 = vadd.f32 %v3209_v0, %v3208_v57 }
0x11bf   :  { %4878 = vtanh.f32 %v6711_v29 }
0x11c9   :  { %v4879_v33 = vpop.eup %4878 }
0x11ca   :  { %v6714_v15 = vmul.f32 %v4879_v33, %v4877_v21 }
0x11cc   :  { %v3213_v49 = vpack.c.bf16 %v6714_v15, %v6714_v15 }
0x11ce   :  { %3247 = vmatmul.mubr.bf16.vlgmr.msra.gmra.mrb[80].mxu0 %v3213_v49  ;;  %3288 = vmatmul.mubr.bf16.vlgmr.msra.gmra.mrb[96].mxu1 %v3213_v49 }
0x11cf   :  { %3326 = vmatpush1.bf16.msra.mxu0 %v6518_v39  ;;  %3367 = vmatpush1.bf16.msra.mxu1 %v6560_v51 }
0x11d0   :  { %3327 = vmatprep.subr.bf16.mxu0 %v6520_v45  ;;  %3368 = vmatprep.subr.bf16.mxu1 %v6562_v63 }
0x11d1   :  { %3357 = vmatprep.mubr.bf16.mxu0 %v7048_v36  ;;  %3398 = vmatprep.mubr.bf16.mxu1 %v7048_v36 }
0x11d3   :  { %3328 = vmatpush1.bf16.msra.mxu0 %v6525_v48  ;;  %3369 = vmatpush1.bf16.msra.mxu1 %v6565_v25 }
0x11d4   :  { %3329 = vmatprep.subr.bf16.mxu0 %v6528_v11  ;;  %3370 = vmatprep.subr.bf16.mxu1 %v6569_v28 }
0x11d7   :  { %3330 = vmatpush1.bf16.msra.mxu0 %v6531_v13  ;;  %3371 = vmatpush1.bf16.msra.mxu1 %v6572_v35 }
0x11d8   :  { %3331 = vmatprep.subr.bf16.mxu0 %v6535_v30  ;;  %3372 = vmatprep.subr.bf16.mxu1 %v6575_v19 }
0x11db   :  { %3332 = vmatpush1.bf16.msra.mxu0 %v6538_v12  ;;  %3373 = vmatpush1.bf16.msra.mxu1 %v6578_v18 }
0x11dc   :  { %3333 = vmatprep.subr.bf16.mxu0 %v6541_v44  ;;  %3374 = vmatprep.subr.bf16.mxu1 %v6581_v50 }
0x11df   :  { %3334 = vmatpush1.bf16.msra.mxu0 %v6544_v9  ;;  %3375 = vmatpush1.bf16.msra.mxu1 %v6584_v54 }
0x11e0   :  { %3335 = vmatprep.subr.bf16.mxu0 %v6547_v55  ;;  %3376 = vmatprep.subr.bf16.mxu1 %v6587_v41 }
0x11e3   :  { %3336 = vmatpush1.bf16.msra.mxu0 %v6550_v52  ;;  %3377 = vmatpush1.bf16.msra.mxu1 %v6590_v31 }
0x11e4   :  { %3337 = vmatprep.subr.bf16.mxu0 %v6553_v59  ;;  %3378 = vmatprep.subr.bf16.mxu1 %v6593_v32 }
0x11e7   :  { %3338 = vmatpush1.bf16.msra.mxu0 %v6556_v60  ;;  %3379 = vmatpush1.bf16.msra.mxu1 %v6596_v37 }
0x11e8   :  { %3339 = vmatprep.subr.bf16.mxu0 %v6600_v58  ;;  %3380 = vmatprep.subr.bf16.mxu1 %v6602_v38 }
0x11eb   :  { %3340 = vmatpush1.bf16.msra.mxu0 %v6604_v42  ;;  %3381 = vmatpush1.bf16.msra.mxu1 %v6606_v16 }
0x11ec   :  { %3436 = vmatprep.subr.bf16.mxu0 %v6514_v20  ;;  %3477 = vmatprep.subr.bf16.mxu1 %v6516_v23 }
0x12a1   :  { %v3248_v10 = vpop.f32.mrb[80].mxu0  ;;  %v3289_v56 = vpop.f32.mrb[96].mxu1 }
0x12a2   :  { %v3296_v43 = vadd.f32 %v3248_v10, %v7123_v2  ;;  %v3298_v22 = vadd.f32 %v3289_v56, %v7124_v46  ;;  %v3250_v53 = vpop.f32.mrb[81].mxu0  ;;  %v3291_v6 = vpop.f32.mrb[97].mxu1 }
0x12a3   :  { %v3297_v62 = vadd.f32 %v3250_v53, %v7125_v3  ;;  %v3299_v24 = vadd.f32 %v3291_v6, %v7126_v47  ;;  %v3252_v61 = vpop.f32.mrb[82].mxu0  ;;  %v3293_v7 = vpop.f32.mrb[98].mxu1  ;;  %v7127_v3 = vld [vmem:[#allocation67_spill] sm:$0xff]  ;;  %v7128_v47 = vld [vmem:[#allocation68_spill] sm:$0xff] }
0x12a4   :  { %v4264_v34 = vmul.f32 -1.442695, %v3296_v43  ;;  %v3253_v26 = vpop.f32.mrb[83].mxu0  ;;  %v3294_v8 = vpop.f32.mrb[99].mxu1 }
0x12a5   :  { %v4265_v27 = vmul.f32 -1.442695, %v3297_v62  ;;  %v4266_v1 = vmul.f32 -1.442695, %v3299_v24  ;;  %v7130_v8 = vld [vmem:[#allocation70_spill] sm:$0xff] }
0x12a6   :  { %4880 = vpow2.f32 %v4264_v34  ;;  %v7129_v34 = vld [vmem:[#allocation69_spill] sm:$0xff] }
0x12a7   :  { %4882 = vpow2.f32 %v4265_v27 }
0x12a8   :  { %4884 = vpow2.f32 %v4266_v1 }
0x12a9   :  { %4886 = vtanh.f32 %v3298_v22 }
0x12b0   :  { %v4881_v4 = vpop.eup %4880 }
0x12b1   :  { %v4883_v5 = vpop.eup %4882  ;;  %v3303_v14 = vadd.f32 1.0, %v4881_v4 }
0x12b2   :  { %v3309_v0 = vadd.f32 1.0, %v4883_v5  ;;  %v4885_v17 = vpop.eup %4884 }
0x12b3   :  { %4888 = vrcp.f32 %v3303_v14  ;;  %v4887_v57 = vpop.eup %4886  ;;  %v3316_v10 = vadd.f32 1.0, %v4885_v17 }
0x12b4   :  { %4890 = vrcp.f32 %v3309_v0 }
0x12b5   :  { %4892 = vrcp.f32 %v3316_v10 }
0x12bd   :  { %v4889_v21 = vpop.eup %4888 }
0x12be   :  { %v4891_v33 = vpop.eup %4890  ;;  %v3320_v49 = vmul.f32 %v4889_v21, %v4887_v57 }
0x12bf   :  { %v3319_v56 = vmul.f32 %v4891_v33, %v6711_v29  ;;  %v4893_v43 = vpop.eup %4892 }
0x12c1   :  { %v6757_v2 = vadd.f32 %v3320_v49, %v3319_v56 }
0x12c3   :  { %4894 = vtanh.f32 %v6757_v2 }
0x12cd   :  { %v4895_v46 = vpop.eup %4894 }
0x12ce   :  { %v6760_v53 = vmul.f32 %v4895_v46, %v4893_v43 }
0x12d0   :  { %v3324_v22 = vpack.c.bf16 %v6760_v53, %v6760_v53 }
0x12d2   :  { %3358 = vmatmul.mubr.bf16.vlgmr.msra.gmra.mrb[84].mxu0 %v3324_v22  ;;  %3399 = vmatmul.mubr.bf16.vlgmr.msra.gmra.mrb[100].mxu1 %v3324_v22 }
0x12d3   :  { %3437 = vmatpush1.bf16.msra.mxu0 %v6518_v39  ;;  %3478 = vmatpush1.bf16.msra.mxu1 %v6560_v51 }
0x12d4   :  { %3438 = vmatprep.subr.bf16.mxu0 %v6520_v45  ;;  %3479 = vmatprep.subr.bf16.mxu1 %v6562_v63 }
0x12d5   :  { %3468 = vmatprep.mubr.bf16.mxu0 %v7048_v36  ;;  %3509 = vmatprep.mubr.bf16.mxu1 %v7048_v36 }
0x12d7   :  { %3439 = vmatpush1.bf16.msra.mxu0 %v6525_v48  ;;  %3480 = vmatpush1.bf16.msra.mxu1 %v6565_v25 }
0x12d8   :  { %3440 = vmatprep.subr.bf16.mxu0 %v6528_v11  ;;  %3481 = vmatprep.subr.bf16.mxu1 %v6569_v28 }
0x12db   :  { %3441 = vmatpush1.bf16.msra.mxu0 %v6531_v13  ;;  %3482 = vmatpush1.bf16.msra.mxu1 %v6572_v35 }
0x12dc   :  { %3442 = vmatprep.subr.bf16.mxu0 %v6535_v30  ;;  %3483 = vmatprep.subr.bf16.mxu1 %v6575_v19 }
0x12df   :  { %3443 = vmatpush1.bf16.msra.mxu0 %v6538_v12  ;;  %3484 = vmatpush1.bf16.msra.mxu1 %v6578_v18 }
0x12e0   :  { %3444 = vmatprep.subr.bf16.mxu0 %v6541_v44  ;;  %3485 = vmatprep.subr.bf16.mxu1 %v6581_v50 }
0x12e3   :  { %3445 = vmatpush1.bf16.msra.mxu0 %v6544_v9  ;;  %3486 = vmatpush1.bf16.msra.mxu1 %v6584_v54 }
0x12e4   :  { %3446 = vmatprep.subr.bf16.mxu0 %v6547_v55  ;;  %3487 = vmatprep.subr.bf16.mxu1 %v6587_v41 }
0x12e7   :  { %3447 = vmatpush1.bf16.msra.mxu0 %v6550_v52  ;;  %3488 = vmatpush1.bf16.msra.mxu1 %v6590_v31 }
0x12e8   :  { %3448 = vmatprep.subr.bf16.mxu0 %v6553_v59  ;;  %3489 = vmatprep.subr.bf16.mxu1 %v6593_v32 }
0x12eb   :  { %3449 = vmatpush1.bf16.msra.mxu0 %v6556_v60  ;;  %3490 = vmatpush1.bf16.msra.mxu1 %v6596_v37 }
0x12ec   :  { %3450 = vmatprep.subr.bf16.mxu0 %v6600_v58  ;;  %3491 = vmatprep.subr.bf16.mxu1 %v6602_v38 }
0x12ef   :  { %3451 = vmatpush1.bf16.msra.mxu0 %v6604_v42  ;;  %3492 = vmatpush1.bf16.msra.mxu1 %v6606_v16 }
0x12f0   :  { %3547 = vmatprep.subr.bf16.mxu0 %v6514_v20  ;;  %3588 = vmatprep.subr.bf16.mxu1 %v6516_v23 }
0x13a5   :  { %v3359_v29 = vpop.f32.mrb[84].mxu0  ;;  %v3400_v6 = vpop.f32.mrb[100].mxu1 }
0x13a6   :  { %v3407_v62 = vadd.f32 %v3359_v29, %v7127_v3  ;;  %v3409_v24 = vadd.f32 %v3400_v6, %v7128_v47  ;;  %v3361_v61 = vpop.f32.mrb[85].mxu0  ;;  %v3402_v7 = vpop.f32.mrb[101].mxu1 }
0x13a7   :  { %v3408_v26 = vadd.f32 %v3361_v61, %v7129_v34  ;;  %v3410_v27 = vadd.f32 %v3402_v7, %v7130_v8  ;;  %v3363_v1 = vpop.f32.mrb[86].mxu0  ;;  %v3404_v4 = vpop.f32.mrb[102].mxu1 }
0x13a8   :  { %v4267_v5 = vmul.f32 -1.442695, %v3407_v62  ;;  %v3364_v14 = vpop.f32.mrb[87].mxu0  ;;  %v3405_v0 = vpop.f32.mrb[103].mxu1 }
0x13a9   :  { %v4268_v17 = vmul.f32 -1.442695, %v3408_v26  ;;  %v4269_v57 = vmul.f32 -1.442695, %v3410_v27  ;;  %v7131_v26 = vld [vmem:[#allocation71_spill] sm:$0xff]  ;;  %v7132_v27 = vld [vmem:[#allocation72_spill] sm:$0xff] }
0x13aa   :  { %4896 = vpow2.f32 %v4267_v5  ;;  %v7133_v14 = vld [vmem:[#allocation73_spill] sm:$0xff] }
0x13ab   :  { %4898 = vpow2.f32 %v4268_v17  ;;  %v7134_v17 = vld [vmem:[#allocation74_spill] sm:$0xff] }
0x13ac   :  { %4900 = vpow2.f32 %v4269_v57 }
0x13ad   :  { %4902 = vtanh.f32 %v3409_v24 }
0x13b4   :  { %v4897_v21 = vpop.eup %4896 }
0x13b5   :  { %v4899_v33 = vpop.eup %4898  ;;  %v3414_v49 = vadd.f32 1.0, %v4897_v21 }
0x13b6   :  { %v3420_v10 = vadd.f32 1.0, %v4899_v33  ;;  %v4901_v56 = vpop.eup %4900 }
0x13b7   :  { %4904 = vrcp.f32 %v3414_v49  ;;  %v4903_v43 = vpop.eup %4902  ;;  %v3427_v6 = vadd.f32 1.0, %v4901_v56 }
0x13b8   :  { %4906 = vrcp.f32 %v3420_v10 }
0x13b9   :  { %4908 = vrcp.f32 %v3427_v6 }
0x13c1   :  { %v4905_v46 = vpop.eup %4904 }
0x13c2   :  { %v4907_v22 = vpop.eup %4906  ;;  %v3431_v29 = vmul.f32 %v4905_v46, %v4903_v43 }
0x13c3   :  { %v3430_v3 = vmul.f32 %v4907_v22, %v6757_v2  ;;  %v4909_v47 = vpop.eup %4908 }
0x13c5   :  { %v6803_v62 = vadd.f32 %v3431_v29, %v3430_v3 }
0x13c7   :  { %4910 = vtanh.f32 %v6803_v62 }
0x13d1   :  { %v4911_v61 = vpop.eup %4910 }
0x13d2   :  { %v6806_v7 = vmul.f32 %v4911_v61, %v4909_v47 }
0x13d4   :  { %v3435_v24 = vpack.c.bf16 %v6806_v7, %v6806_v7 }
0x13d6   :  { %3469 = vmatmul.mubr.bf16.vlgmr.msra.gmra.mrb[88].mxu0 %v3435_v24  ;;  %3510 = vmatmul.mubr.bf16.vlgmr.msra.gmra.mrb[104].mxu1 %v3435_v24 }
0x13d7   :  { %3548 = vmatpush1.bf16.msra.mxu0 %v6518_v39  ;;  %3589 = vmatpush1.bf16.msra.mxu1 %v6560_v51 }
0x13d8   :  { %3549 = vmatprep.subr.bf16.mxu0 %v6520_v45  ;;  %3590 = vmatprep.subr.bf16.mxu1 %v6562_v63 }
0x13d9   :  { %3579 = vmatprep.mubr.bf16.mxu0 %v7048_v36  ;;  %3620 = vmatprep.mubr.bf16.mxu1 %v7048_v36 }
0x13db   :  { %3550 = vmatpush1.bf16.msra.mxu0 %v6525_v48  ;;  %3591 = vmatpush1.bf16.msra.mxu1 %v6565_v25 }
0x13dc   :  { %3551 = vmatprep.subr.bf16.mxu0 %v6528_v11  ;;  %3592 = vmatprep.subr.bf16.mxu1 %v6569_v28 }
0x13df   :  { %3552 = vmatpush1.bf16.msra.mxu0 %v6531_v13  ;;  %3593 = vmatpush1.bf16.msra.mxu1 %v6572_v35 }
0x13e0   :  { %3553 = vmatprep.subr.bf16.mxu0 %v6535_v30  ;;  %3594 = vmatprep.subr.bf16.mxu1 %v6575_v19 }
0x13e3   :  { %3554 = vmatpush1.bf16.msra.mxu0 %v6538_v12  ;;  %3595 = vmatpush1.bf16.msra.mxu1 %v6578_v18 }
0x13e4   :  { %3555 = vmatprep.subr.bf16.mxu0 %v6541_v44  ;;  %3596 = vmatprep.subr.bf16.mxu1 %v6581_v50 }
0x13e7   :  { %3556 = vmatpush1.bf16.msra.mxu0 %v6544_v9  ;;  %3597 = vmatpush1.bf16.msra.mxu1 %v6584_v54 }
0x13e8   :  { %3557 = vmatprep.subr.bf16.mxu0 %v6547_v55  ;;  %3598 = vmatprep.subr.bf16.mxu1 %v6587_v41 }
0x13eb   :  { %3558 = vmatpush1.bf16.msra.mxu0 %v6550_v52  ;;  %3599 = vmatpush1.bf16.msra.mxu1 %v6590_v31 }
0x13ec   :  { %3559 = vmatprep.subr.bf16.mxu0 %v6553_v59  ;;  %3600 = vmatprep.subr.bf16.mxu1 %v6593_v32 }
0x13ef   :  { %3560 = vmatpush1.bf16.msra.mxu0 %v6556_v60  ;;  %3601 = vmatpush1.bf16.msra.mxu1 %v6596_v37 }
0x13f0   :  { %3561 = vmatprep.subr.bf16.mxu0 %v6600_v58  ;;  %3602 = vmatprep.subr.bf16.mxu1 %v6602_v38 }
0x13f3   :  { %3562 = vmatpush1.bf16.msra.mxu0 %v6604_v42  ;;  %3603 = vmatpush1.bf16.msra.mxu1 %v6606_v16 }
0x13f4   :  { %3658 = vmatprep.subr.bf16.mxu0 %v6514_v20  ;;  %3699 = vmatprep.subr.bf16.mxu1 %v6516_v23 }
0x14a9   :  { %v3470_v2 = vpop.f32.mrb[88].mxu0  ;;  %v3511_v34 = vpop.f32.mrb[104].mxu1 }
0x14aa   :  { %v3518_v8 = vadd.f32 %v3470_v2, %v7131_v26  ;;  %v3520_v1 = vadd.f32 %v3511_v34, %v7132_v27  ;;  %v3472_v4 = vpop.f32.mrb[89].mxu0  ;;  %v3513_v5 = vpop.f32.mrb[105].mxu1 }
0x14ab   :  { %v3519_v0 = vadd.f32 %v3472_v4, %v7133_v14  ;;  %v3521_v57 = vadd.f32 %v3513_v5, %v7134_v17  ;;  %v3474_v21 = vpop.f32.mrb[90].mxu0  ;;  %v3515_v33 = vpop.f32.mrb[106].mxu1 }
0x14ac   :  { %v4270_v49 = vmul.f32 -1.442695, %v3518_v8  ;;  %v3475_v10 = vpop.f32.mrb[91].mxu0  ;;  %v3516_v56 = vpop.f32.mrb[107].mxu1 }
0x14ad   :  { %v4271_v43 = vmul.f32 -1.442695, %v3519_v0  ;;  %v4272_v46 = vmul.f32 -1.442695, %v3521_v57 }
0x14ae   :  { %4912 = vpow2.f32 %v4270_v49 }
0x14af   :  { %4914 = vpow2.f32 %v4271_v43 }
0x14b0   :  { %4916 = vpow2.f32 %v4272_v46 }
0x14b1   :  { %4918 = vtanh.f32 %v3520_v1 }
0x14b8   :  { %v4913_v22 = vpop.eup %4912 }
0x14b9   :  { %v4915_v29 = vpop.eup %4914  ;;  %v3525_v6 = vadd.f32 1.0, %v4913_v22 }
0x14ba   :  { %v3531_v3 = vadd.f32 1.0, %v4915_v29  ;;  %v4917_v47 = vpop.eup %4916 }
0x14bb   :  { %4920 = vrcp.f32 %v3525_v6  ;;  %v4919_v61 = vpop.eup %4918  ;;  %v3538_v26 = vadd.f32 1.0, %v4917_v47 }
0x14bc   :  { %4922 = vrcp.f32 %v3531_v3 }
0x14bd   :  { %4924 = vrcp.f32 %v3538_v26  ;;  %v5008_v26 = vld [vmem:[#allocation16] ss:$16 sps:$4 sm:$0xff]  }
0x14c5   :  { %v4921_v24 = vpop.eup %4920 }
0x14c6   :  { %v4923_v2 = vpop.eup %4922  ;;  %v3542_v34 = vmul.f32 %v4921_v24, %v4919_v61 }
0x14c7   :  { %v3541_v8 = vmul.f32 %v4923_v2, %v6803_v62  ;;  %v4925_v4 = vpop.eup %4924 }
0x14c9   :  { %v6849_v27 = vadd.f32 %v3542_v34, %v3541_v8  ;;  %v5009_v8 = vld [vmem:[#allocation16 + $0x24] ss:$16 sps:$4 sm:$0xff]  }
0x14cb   :  { %4926 = vtanh.f32 %v6849_v27 }
0x14d5   :  { %v4927_v5 = vpop.eup %4926 }
0x14d6   :  { %v6852_v14 = vmul.f32 %v4927_v5, %v4925_v4  ;;  %v5011_v4 = vld [vmem:[#allocation16 + $0x44] ss:$16 sps:$4 sm:$0xff]   ;;  %v5012_v5 = vld [vmem:[#allocation16 + $0x40] ss:$16 sps:$4 sm:$0xff]  }
0x14d8   :  { %v3546_v1 = vpack.c.bf16 %v6852_v14, %v6852_v14 }
0x14da   :  { %3580 = vmatmul.mubr.bf16.vlgmr.msra.gmra.mrb[92].mxu0 %v3546_v1  ;;  %3621 = vmatmul.mubr.bf16.vlgmr.msra.gmra.mrb[108].mxu1 %v3546_v1 }
0x14db   :  { %3659 = vmatpush1.bf16.msra.mxu0 %v6518_v39  ;;  %3700 = vmatpush1.bf16.msra.mxu1 %v6560_v51 }
0x14dc   :  { %3660 = vmatprep.subr.bf16.mxu0 %v6520_v45  ;;  %3701 = vmatprep.subr.bf16.mxu1 %v6562_v63 }
0x14dd   :  { %3690 = vmatprep.mubr.bf16.mxu0 %v7048_v36  ;;  %3731 = vmatprep.mubr.bf16.mxu1 %v7048_v36 }
0x14df   :  { %3661 = vmatpush1.bf16.msra.mxu0 %v6525_v48  ;;  %3702 = vmatpush1.bf16.msra.mxu1 %v6565_v25  ;;  %v7135_v48 = vld [vmem:[#allocation75_spill] sm:$0xff] }
0x14e0   :  { %3662 = vmatprep.subr.bf16.mxu0 %v6528_v11  ;;  %3703 = vmatprep.subr.bf16.mxu1 %v6569_v28 }
0x14e3   :  { %3663 = vmatpush1.bf16.msra.mxu0 %v6531_v13  ;;  %3704 = vmatpush1.bf16.msra.mxu1 %v6572_v35  ;;  %v7136_v13 = vld [vmem:[#allocation76_spill] sm:$0xff] }
0x14e4   :  { %3664 = vmatprep.subr.bf16.mxu0 %v6535_v30  ;;  %3705 = vmatprep.subr.bf16.mxu1 %v6575_v19 }
0x14e7   :  { %3665 = vmatpush1.bf16.msra.mxu0 %v6538_v12  ;;  %3706 = vmatpush1.bf16.msra.mxu1 %v6578_v18 }
0x14e8   :  { %3666 = vmatprep.subr.bf16.mxu0 %v6541_v44  ;;  %3707 = vmatprep.subr.bf16.mxu1 %v6581_v50 }
0x14eb   :  { %3667 = vmatpush1.bf16.msra.mxu0 %v6544_v9  ;;  %3708 = vmatpush1.bf16.msra.mxu1 %v6584_v54  ;;  %v7137_v9 = vld [vmem:[#allocation77_spill] sm:$0xff] }
0x14ec   :  { %3668 = vmatprep.subr.bf16.mxu0 %v6547_v55  ;;  %3709 = vmatprep.subr.bf16.mxu1 %v6587_v41 }
0x14ef   :  { %3669 = vmatpush1.bf16.msra.mxu0 %v6550_v52  ;;  %3710 = vmatpush1.bf16.msra.mxu1 %v6590_v31  ;;  %v7138_v52 = vld [vmem:[#allocation78_spill] sm:$0xff] }
0x14f0   :  { %3670 = vmatprep.subr.bf16.mxu0 %v6553_v59  ;;  %3711 = vmatprep.subr.bf16.mxu1 %v6593_v32 }
0x14f3   :  { %3671 = vmatpush1.bf16.msra.mxu0 %v6556_v60  ;;  %3712 = vmatpush1.bf16.msra.mxu1 %v6596_v37 }
0x14f4   :  { %3672 = vmatprep.subr.bf16.mxu0 %v6600_v58  ;;  %3713 = vmatprep.subr.bf16.mxu1 %v6602_v38 }
0x14f7   :  { %3673 = vmatpush1.bf16.msra.mxu0 %v6604_v42  ;;  %3714 = vmatpush1.bf16.msra.mxu1 %v6606_v16 }
0x14f8   :  { %3769 = vmatprep.subr.bf16.mxu0 %v6514_v20  ;;  %3810 = vmatprep.subr.bf16.mxu1 %v6516_v23 }
0x15ad   :  { %v3581_v39 = vpop.f32.mrb[92].mxu0  ;;  %v3622_v45 = vpop.f32.mrb[108].mxu1 }
0x15ae   :  { %v3629_v11 = vadd.f32 %v3581_v39, %v7135_v48  ;;  %v3631_v30 = vadd.f32 %v3622_v45, %v7136_v13  ;;  %v3583_v12 = vpop.f32.mrb[93].mxu0  ;;  %v3624_v44 = vpop.f32.mrb[109].mxu1  ;;  %v7140_v39 = vld [vmem:[#allocation80_spill] sm:$0xff]  ;;  %v7142_v13 = vld [vmem:[#allocation82_spill] sm:$0xff] }
0x15af   :  { %v3630_v55 = vadd.f32 %v3583_v12, %v7137_v9  ;;  %v3632_v59 = vadd.f32 %v3624_v44, %v7138_v52  ;;  %v3585_v60 = vpop.f32.mrb[94].mxu0  ;;  %v3626_v62 = vpop.f32.mrb[110].mxu1 }
0x15b0   :  { %v4273_v0 = vmul.f32 -1.442695, %v3629_v11  ;;  %v3586_v17 = vpop.f32.mrb[95].mxu0  ;;  %v3627_v57 = vpop.f32.mrb[111].mxu1  ;;  %v7141_v11 = vld [vmem:[#allocation81_spill] sm:$0xff] }
0x15b1   :  { %v4274_v20 = vmul.f32 -1.442695, %v3630_v55  ;;  %v4275_v23 = vmul.f32 -1.442695, %v3632_v59 }
0x15b2   :  { %4928 = vpow2.f32 %v4273_v0 }
0x15b3   :  { %4930 = vpow2.f32 %v4274_v20 }
0x15b4   :  { %4932 = vpow2.f32 %v4275_v23 }
0x15b5   :  { %4934 = vtanh.f32 %v3631_v30 }
0x15bc   :  { %v4929_v21 = vpop.eup %4928 }
0x15bd   :  { %v4931_v33 = vpop.eup %4930  ;;  %v3636_v49 = vadd.f32 1.0, %v4929_v21 }
0x15be   :  { %v3642_v10 = vadd.f32 1.0, %v4931_v33  ;;  %v4933_v56 = vpop.eup %4932 }
0x15bf   :  { %4936 = vrcp.f32 %v3636_v49  ;;  %v4935_v43 = vpop.eup %4934  ;;  %v3649_v6 = vadd.f32 1.0, %v4933_v56 }
0x15c0   :  { %4938 = vrcp.f32 %v3642_v10 }
0x15c1   :  { %4940 = vrcp.f32 %v3649_v6  ;;  %v4705_v6 = vld [vmem:[#allocation19 + $0x18] sm:$0xff]  }
0x15c9   :  { %v4937_v46 = vpop.eup %4936 }
0x15ca   :  { %v4939_v22 = vpop.eup %4938  ;;  %v3653_v29 = vmul.f32 %v4937_v46, %v4935_v43  ;;  %v4703_v46 = vld [vmem:[#allocation19 + $0x8] sm:$0xff]  }
0x15cb   :  { %v3652_v3 = vmul.f32 %v4939_v22, %v6849_v27  ;;  %v4941_v61 = vpop.eup %4940  ;;  %v5010_v27 = vld [vmem:[#allocation16 + $0x20] ss:$16 sps:$4 sm:$0xff]   ;;  %v3895_v22 = vpack.c.bf16 %v6714_v15, %v6668_v40  ;;  %v3896_v15 = vpack.c.bf16 %v6806_v7, %v6760_v53 }
0x15cc   :  { %v4709_v40 = vld [vmem:[#allocation19 + $0x38] sm:$0xff]  }
0x15cd   :  { %v6895_v47 = vadd.f32 %v3653_v29, %v3652_v3  ;;  %v4704_v29 = vld [vmem:[#allocation19 + $0x10] sm:$0xff]   ;;  %v4706_v3 = vld [vmem:[#allocation19 + $0x20] sm:$0xff]  }
0x15cf   :  { %4942 = vtanh.f32 %v6895_v47 }
0x15d9   :  { %v4943_v24 = vpop.eup %4942 }
0x15da   :  { %v6898_v2 = vmul.f32 %v4943_v24, %v4941_v61  ;;  %v4708_v61 = vld [vmem:[#allocation19 + $0x30] sm:$0xff]  }
0x15dc   :  { %v3657_v34 = vpack.c.bf16 %v6898_v2, %v6898_v2  ;;  %v3897_v24 = vpack.c.bf16 %v6898_v2, %v6852_v14 }
0x15de   :  { %3691 = vmatmul.mubr.bf16.vlgmr.msra.gmra.mrb[96].mxu0 %v3657_v34  ;;  %3732 = vmatmul.mubr.bf16.vlgmr.msra.gmra.mrb[112].mxu1 %v3657_v34 }
0x15df   :  { %3770 = vmatpush1.bf16.msra.mxu0 %v5008_v26  ;;  %3811 = vmatpush1.bf16.msra.mxu1 %v6560_v51  ;;  %v5013_v51 = vld [vmem:[#allocation16 + $0x64] ss:$16 sps:$4 sm:$0xff]  }
0x15e0   :  { %3771 = vmatprep.subr.bf16.mxu0 %v5009_v8  ;;  %3812 = vmatprep.subr.bf16.mxu1 %v6562_v63  ;;  %v5014_v63 = vld [vmem:[#allocation16 + $0x60] ss:$16 sps:$4 sm:$0xff]   ;;  %v7143_v8 = vld [vmem:[#allocation83_spill] sm:$0xff] }
0x15e1   :  { %3801 = vmatprep.mubr.bf16.mxu0 %v7048_v36  ;;  %3842 = vmatprep.mubr.bf16.mxu1 %v7048_v36  ;;  %v5015_v36 = vld [vmem:[#allocation16 + $0x84] ss:$16 sps:$4 sm:$0xff]  }
0x15e3   :  { %3772 = vmatpush1.bf16.msra.mxu0 %v5010_v27  ;;  %3813 = vmatpush1.bf16.msra.mxu1 %v6565_v25  ;;  %v5016_v25 = vld [vmem:[#allocation16 + $0x80] ss:$16 sps:$4 sm:$0xff]  }
0x15e4   :  { %3773 = vmatprep.subr.bf16.mxu0 %v5011_v4  ;;  %3814 = vmatprep.subr.bf16.mxu1 %v6569_v28  ;;  %v5017_v28 = vld [vmem:[#allocation16 + $0xa4] ss:$16 sps:$4 sm:$0xff]  }
0x15e5   :  { %v7144_v4 = vld [vmem:[#allocation84_spill] sm:$0xff] }
0x15e7   :  { %3774 = vmatpush1.bf16.msra.mxu0 %v5012_v5  ;;  %3815 = vmatpush1.bf16.msra.mxu1 %v6572_v35  ;;  %v5018_v35 = vld [vmem:[#allocation16 + $0xa0] ss:$16 sps:$4 sm:$0xff]  }
0x15e8   :  { %3775 = vmatprep.subr.bf16.mxu0 %v5013_v51  ;;  %3816 = vmatprep.subr.bf16.mxu1 %v6575_v19  ;;  %v5019_v19 = vld [vmem:[#allocation16 + $0xc4] ss:$16 sps:$4 sm:$0xff]  }
0x15eb   :  { %3776 = vmatpush1.bf16.msra.mxu0 %v5014_v63  ;;  %3817 = vmatpush1.bf16.msra.mxu1 %v6578_v18  ;;  %v5020_v18 = vld [vmem:[#allocation16 + $0xc0] ss:$16 sps:$4 sm:$0xff]  }
0x15ec   :  { %3777 = vmatprep.subr.bf16.mxu0 %v5015_v36  ;;  %3818 = vmatprep.subr.bf16.mxu1 %v6581_v50  ;;  %v4702_v50 = vld [vmem:[#allocation19] sm:$0xff]  }
0x15ed   :  { %v7145_v36 = vld [vmem:[#allocation85_spill] sm:$0xff] }
0x15ef   :  { %3778 = vmatpush1.bf16.msra.mxu0 %v5016_v25  ;;  %3819 = vmatpush1.bf16.msra.mxu1 %v6584_v54 }
0x15f0   :  { %3779 = vmatprep.subr.bf16.mxu0 %v5017_v28  ;;  %3820 = vmatprep.subr.bf16.mxu1 %v6587_v41  ;;  %v7146_v28 = vld [vmem:[#allocation86_spill] sm:$0xff] }
0x15f3   :  { %3780 = vmatpush1.bf16.msra.mxu0 %v5018_v35  ;;  %3821 = vmatpush1.bf16.msra.mxu1 %v6590_v31  ;;  %v7139_v31 = vld [vmem:[#allocation79_spill] sm:$0xff] }
0x15f4   :  { %3781 = vmatprep.subr.bf16.mxu0 %v5019_v19  ;;  %3822 = vmatprep.subr.bf16.mxu1 %v6593_v32 }
0x15f7   :  { %3782 = vmatpush1.bf16.msra.mxu0 %v5020_v18  ;;  %3823 = vmatpush1.bf16.msra.mxu1 %v6596_v37 }
0x15f8   :  { %3783 = vmatprep.subr.bf16.mxu0 %v6600_v58  ;;  %3824 = vmatprep.subr.bf16.mxu1 %v6602_v38 }
0x15fb   :  { %3784 = vmatpush1.bf16.msra.mxu0 %v6604_v42  ;;  %3825 = vmatpush1.bf16.msra.mxu1 %v6606_v16 }
0x15fc   :  { %4426 = vmatprep.subr.bf16.mxu0 %v4702_v50 }
0x16b1   :  { %v3692_v54 = vpop.f32.mrb[96].mxu0  ;;  %v3733_v41 = vpop.f32.mrb[112].mxu1 }
0x16b2   :  { %v3740_v1 = vadd.f32 %v3692_v54, %v7139_v31  ;;  %v3742_v32 = vadd.f32 %v3733_v41, %v7140_v39  ;;  %v3694_v45 = vpop.f32.mrb[97].mxu0  ;;  %v3735_v48 = vpop.f32.mrb[113].mxu1 }
0x16b3   :  { %v3741_v37 = vadd.f32 %v3694_v45, %v7141_v11  ;;  %v3743_v58 = vadd.f32 %v3735_v48, %v7142_v13  ;;  %v3696_v30 = vpop.f32.mrb[98].mxu0  ;;  %v3737_v38 = vpop.f32.mrb[114].mxu1 }
0x16b4   :  { %v4276_v12 = vmul.f32 -1.442695, %v3740_v1  ;;  %v3697_v42 = vpop.f32.mrb[99].mxu0  ;;  %v3738_v44 = vpop.f32.mrb[115].mxu1 }
0x16b5   :  { %v4277_v16 = vmul.f32 -1.442695, %v3741_v37  ;;  %v4278_v9 = vmul.f32 -1.442695, %v3743_v58  ;;  %v4282_v58 = vld [vmem:[#allocation21] ss:$0 sm:$0xff] }
0x16b6   :  { %4944 = vpow2.f32 %v4276_v12 }
0x16b7   :  { %4946 = vpow2.f32 %v4277_v16 }
0x16b8   :  { %4948 = vpow2.f32 %v4278_v9 }
0x16b9   :  { %4950 = vtanh.f32 %v3742_v32 }
0x16c0   :  { %v4945_v55 = vpop.eup %4944 }
0x16c1   :  { %v4947_v52 = vpop.eup %4946  ;;  %v3747_v59 = vadd.f32 1.0, %v4945_v55 }
0x16c2   :  { %v3753_v60 = vadd.f32 1.0, %v4947_v52  ;;  %v4949_v62 = vpop.eup %4948 }
0x16c3   :  { %4952 = vrcp.f32 %v3747_v59  ;;  %v4951_v0 = vpop.eup %4950  ;;  %v3760_v23 = vadd.f32 1.0, %v4949_v62 }
0x16c4   :  { %4954 = vrcp.f32 %v3753_v60 }
0x16c5   :  { %4956 = vrcp.f32 %v3760_v23 }
0x16cd   :  { %v4953_v17 = vpop.eup %4952 }
0x16ce   :  { %v4955_v57 = vpop.eup %4954  ;;  %v3764_v20 = vmul.f32 %v4953_v17, %v4951_v0 }
0x16cf   :  { %v3763_v21 = vmul.f32 %v4955_v57, %v6895_v47  ;;  %v4957_v49 = vpop.eup %4956  ;;  %v4707_v47 = vld [vmem:[#allocation19 + $0x28] sm:$0xff]  }
0x16d1   :  { %v6926_v33 = vadd.f32 %v3764_v20, %v3763_v21 }
0x16d3   :  { %4958 = vtanh.f32 %v6926_v33 }
0x16dd   :  { %v4959_v10 = vpop.eup %4958 }
0x16de   :  { %v6929_v56 = vmul.f32 %v4959_v10, %v4957_v49 }
0x16e0   :  { %v3768_v43 = vpack.c.bf16 %v6929_v56, %v6929_v56 }
0x16e2   :  { %3802 = vmatmul.mubr.bf16.vlgmr.msra.gmra.mrb[100].mxu0 %v3768_v43  ;;  %3843 = vmatmul.mubr.bf16.vlgmr.msra.gmra.mrb[116].mxu1 %v3768_v43 }
0x16e3   :  { %4427 = vmatpush3.bf16.msra.mxu0 %v4702_v50  ;;  %4442 = vmatprep.mubr.bf16.mxu0 %v3895_v22 }
0x16e4   :  { %4428 = vmatprep.subr.bf16.mxu0 %v4703_v46 }
0x16e7   :  { %4429 = vmatpush3.bf16.msra.mxu0 %v4703_v46 }
0x16e8   :  { %4430 = vmatprep.subr.bf16.mxu0 %v4704_v29 }
0x16eb   :  { %4431 = vmatpush3.bf16.msra.mxu0 %v4704_v29 }
0x16ec   :  { %4432 = vmatprep.subr.bf16.mxu0 %v4705_v6 }
0x16ef   :  { %4433 = vmatpush3.bf16.msra.mxu0 %v4705_v6 }
0x16f0   :  { %4434 = vmatprep.subr.bf16.mxu0 %v4706_v3 }
0x16f3   :  { %4435 = vmatpush3.bf16.msra.mxu0 %v4706_v3 }
0x16f4   :  { %4436 = vmatprep.subr.bf16.mxu0 %v4707_v47 }
0x16f7   :  { %4437 = vmatpush3.bf16.msra.mxu0 %v4707_v47 }
0x16f8   :  { %4438 = vmatprep.subr.bf16.mxu0 %v4708_v61 }
0x16fb   :  { %4439 = vmatpush3.bf16.msra.mxu0 %v4708_v61 }
0x16fc   :  { %4440 = vmatprep.subr.bf16.mxu0 %v4709_v40 }
0x16ff   :  { %4441 = vmatpush3.bf16.msra.mxu0 %v4709_v40 }
0x1702   :  { %4443 = vmatmul.mubr.bf16.vlgmr.msra.gmra.mrb[104].mxu0 %v3896_v15 }
0x1703   :  { %4446 = vmatprep.mubr.bf16.mxu0 %v3897_v24 }
0x17b5   :  { %v3803_v34 = vpop.f32.mrb[100].mxu0  ;;  %v3844_v26 = vpop.f32.mrb[116].mxu1 }
0x17b6   :  { %v3851_v27 = vadd.f32 %v3803_v34, %v7143_v8  ;;  %v3853_v5 = vadd.f32 %v3844_v26, %v7144_v4  ;;  %v3805_v51 = vpop.f32.mrb[101].mxu0  ;;  %v3846_v63 = vpop.f32.mrb[117].mxu1 }
0x17b7   :  { %v3852_v25 = vadd.f32 %v3805_v51, %v7145_v36  ;;  %v3854_v35 = vadd.f32 %v3846_v63, %v7146_v28  ;;  %v3807_v19 = vpop.f32.mrb[102].mxu0  ;;  %v3848_v18 = vpop.f32.mrb[118].mxu1 }
0x17b8   :  { %v4279_v53 = vmul.f32 -1.442695, %v3851_v27  ;;  %v3808_v7 = vpop.f32.mrb[103].mxu0  ;;  %v3849_v50 = vpop.f32.mrb[119].mxu1 }
0x17b9   :  { %v4280_v14 = vmul.f32 -1.442695, %v3852_v25  ;;  %v4281_v2 = vmul.f32 -1.442695, %v3854_v35 }
0x17ba   :  { %4960 = vpow2.f32 %v4279_v53 }
0x17bb   :  { %4962 = vpow2.f32 %v4280_v14 }
0x17bc   :  { %4964 = vpow2.f32 %v4281_v2 }
0x17bd   :  { %4966 = vtanh.f32 %v3853_v5 }
0x17c4   :  { %v4961_v54 = vpop.eup %4960 }
0x17c5   :  { %v4963_v41 = vpop.eup %4962  ;;  %v3858_v31 = vadd.f32 1.0, %v4961_v54 }
0x17c6   :  { %v3864_v1 = vadd.f32 1.0, %v4963_v41  ;;  %v4965_v39 = vpop.eup %4964 }
0x17c7   :  { %4968 = vrcp.f32 %v3858_v31  ;;  %v4967_v32 = vpop.eup %4966  ;;  %v3871_v37 = vadd.f32 1.0, %v4965_v39 }
0x17c8   :  { %4970 = vrcp.f32 %v3864_v1 }
0x17c9   :  { %4972 = vrcp.f32 %v3871_v37 }
0x17d1   :  { %v4969_v45 = vpop.eup %4968 }
0x17d2   :  { %v4971_v48 = vpop.eup %4970  ;;  %v3875_v11 = vmul.f32 %v4969_v45, %v4967_v32 }
0x17d3   :  { %v3874_v13 = vmul.f32 %v4971_v48, %v6926_v33  ;;  %v4973_v59 = vpop.eup %4972 }
0x17d5   :  { %v4444_v30 = vpop.f32.mrb[104].mxu0  ;;  %v3876_v38 = vadd.f32 %v3875_v11, %v3874_v13 }
0x17d6   :  { %v3997_v12 = vadd.f32 %v4444_v30, %v4282_v58  ;;  %v3988_v42 = vpop.f32.mrb[105].mxu0 }
0x17d7   :  { %v3989_v44 = vadd.f32 %v4282_v58, %v3988_v42  ;;  %v4445_v16 = vpop.f32.mrb[106].mxu0  ;;  %4974 = vtanh.f32 %v3876_v38 }
0x17d8   :  { %4021 = vst [vmem:[%s7147_s9 + $0x10] sm:$0xff] %v3997_v12  ;;  %v4000_v9 = vadd.f32 %v4445_v16, %v4282_v58  ;;  %v3991_v55 = vpop.f32.mrb[107].mxu0 }
0x17d9   :  { %4019 = vst [vmem:[%s7147_s9] sm:$0xff] %v3989_v44  ;;  %v3992_v52 = vadd.f32 %v4282_v58, %v3991_v55 }
0x17da   :  { %4022 = vst [vmem:[%s7147_s9 + $0x18] sm:$0xff] %v4000_v9 }
0x17db   :  { %4020 = vst [vmem:[%s7147_s9 + $0x8] sm:$0xff] %v3992_v52 }
0x17e1   :  { %v4975_v60 = vpop.eup %4974 }
0x17e2   :  { %v3878_v62 = vmul.f32 %v4975_v60, %v4973_v59 }
0x17e4   :  { %v3898_v0 = vpack.c.bf16 %v3878_v62, %v6929_v56 }
0x17e6   :  { %4447 = vmatmul.mubr.bf16.gmra.mrb[108].mxu0 %v3898_v0 }
0x18b9   :  { %v4448_v17 = vpop.f32.mrb[108].mxu0 }
0x18ba   :  { %v4013_v57 = vadd.f32 %v4448_v17, %v4282_v58  ;;  %v4004_v20 = vpop.f32.mrb[109].mxu0 }
0x18bb   :  { %v4005_v23 = vadd.f32 %v4282_v58, %v4004_v20  ;;  %v4449_v21 = vpop.f32.mrb[110].mxu0 }
0x18bc   :  { %4025 = vst [vmem:[%s7147_s9 + $0x30] sm:$0xff] %v4013_v57  ;;  %v4016_v33 = vadd.f32 %v4449_v21, %v4282_v58  ;;  %v4007_v49 = vpop.f32.mrb[111].mxu0 }
0x18bd   :  { %4023 = vst [vmem:[%s7147_s9 + $0x20] sm:$0xff] %v4005_v23  ;;  %v4008_v10 = vadd.f32 %v4282_v58, %v4007_v49 }
0x18be   :  { %4026 = vst [vmem:[%s7147_s9 + $0x38] sm:$0xff] %v4016_v33 }
0x18bf   :  { %4024 = vst [vmem:[%s7147_s9 + $0x28] sm:$0xff] %v4008_v10 }
0x18c0   :  { %4035 = vsyncpa [#allocation3], 1 }
0x18c1   :  { %4036 = vsyncpa [#allocation5], 1 }
0x18c2   :  { %4037 = vsyncpa [#allocation8], 1 }
0x18c3   :  { %4038 = vsyncpa [#allocation11], 1 }
0x18c4   :  { %4039 = vsyncpa [#allocation14], 1 }
0x18c5   :  { %4040 = vsyncpa [#allocation17], 1 }
0x18c6   :  { %4041 = vsyncpa [#allocation20], 1 }

</bundles_post_ra>
